<compile_context>
chip_gen: v7x
topology: tpu7x:2x2x1
jax: 0.10.0
libtpu: 0.0.40
codegen_flags: <defaults>
</compile_context>

<pallas_src>
import math

import jax
import jax.numpy as jnp
from jax import lax
from jax.experimental import pallas as pl
from jax.experimental.pallas import tpu as pltpu

HIDDEN = 128
N_LAYERS = 8
LABEL_PAD = 128   # head output padded to a full 128-lane tile


# ----------------------------------------------------------------------------
# Kernel: one bidirectional LSTM layer per grid step + head epilogue
# ----------------------------------------------------------------------------
def _make_kernel(label_size):
    H = HIDDEN

    def kernel(x_ref, wih_ref, whh_ref, b_ref, wout_ref, bout_ref, out_ref,
               act_in, act_out, hh_ref):
        T, B, _ = x_ref.shape
        layer = pl.program_id(0)

        @pl.when(layer == 0)
        def _():
            act_in[...] = x_ref[...]                     # layer-0 input

        # Block-diagonal hidden-state operand; off-diagonal blocks stay zero.
        hh_ref[...] = jnp.zeros_like(hh_ref)

        src = act_in[...]                                # (T, B, 2H) f32

        # Hoisted input projection: both directions in ONE matmul, bias once.
        xin = src.reshape(T * B, 2 * H).astype(jnp.bfloat16)
        gx = jnp.dot(xin, wih_ref[0],
                     preferred_element_type=jnp.float32) + b_ref[0]
        gx = gx.reshape(T, B, 8 * H)                     # fwd gates | rev gates

        def lstm_cell(gates, c_prev):
            # PyTorch gate order: i, f, g, o (128-lane aligned slices)
            i_g = jax.nn.sigmoid(gates[:, 0 * H:1 * H])
            f_g = jax.nn.sigmoid(gates[:, 1 * H:2 * H])
            g_g = jnp.tanh(gates[:, 2 * H:3 * H])
            o_g = jax.nn.sigmoid(gates[:, 3 * H:4 * H])
            c = f_g * c_prev + i_g * g_g
            h = o_g * jnp.tanh(c)
            return h, c

        c_f = jnp.zeros((B, H), jnp.float32)
        c_r = jnp.zeros((B, H), jnp.float32)
        w_hh = whh_ref[0]                                # (2H, 4H) bf16

        # TODO(synk): for non-toy T replace the full unroll with
        # lax.fori_loop(..., unroll=2..4) to bound live ranges.
        for t in range(T):
            tr = T - 1 - t
            # One block-diagonal recurrent matmul for BOTH directions.
            g_hh = jnp.dot(hh_ref[...].astype(jnp.bfloat16), w_hh,
                           preferred_element_type=jnp.float32)   # (2B, 4H)
            g_f = gx[t, :, 0:4 * H] + g_hh[0:B]
            g_r = gx[tr, :, 4 * H:8 * H] + g_hh[B:2 * B]
            h_f, c_f = lstm_cell(g_f, c_f)
            h_r, c_r = lstm_cell(g_r, c_r)
            hh_ref[0:B, 0:H] = h_f
            hh_ref[B:2 * B, H:2 * H] = h_r
            act_out[t, :, 0:H] = h_f
            act_out[tr, :, H:2 * H] = h_r

        # Carry this layer's output to the next grid step (cheap VMEM copy).
        act_in[...] = act_out[...]

        # Head epilogue at the last layer: x[:, -1, :] -> Linear -> Softmax.
        @pl.when(layer == pl.num_programs(0) - 1)
        def _():
            final = act_out[...]                          # (T, B, 2H)
            last = final[:, B - 1, :]                     # (T, 2H)
            logits = (jnp.dot(last.astype(jnp.bfloat16), wout_ref[...],
                              preferred_element_type=jnp.float32)
                      + bout_ref[...])                    # (T, LABEL_PAD)
            m = jnp.max(logits, axis=1, keepdims=True)
            e = jnp.exp(logits - m)
            col = lax.broadcasted_iota(jnp.int32, e.shape, 1)
            e = jnp.where(col < label_size, e, 0.0)       # mask padded lanes
            denom = jnp.sum(e, axis=1, keepdims=True)
            inv = pl.reciprocal(denom, approx=True)       # EUP slot
            inv = inv * (2.0 - denom * inv)               # one Newton step
            out_ref[...] = (e * inv).astype(out_ref.dtype)

    return kernel


def fused_lstm_call(x, w_ih, w_hh, b_all, w_out, b_out, label_size):
    """x: (T, B, 2H) f32 -> (T, LABEL_PAD) f32 softmax probabilities."""
    T, B, _ = x.shape
    H = HIDDEN
    kernel = _make_kernel(label_size)
    return pl.pallas_call(
        kernel,
        out_shape=jax.ShapeDtypeStruct((T, LABEL_PAD), jnp.float32),
        grid_spec=pltpu.PrefetchScalarGridSpec(
            num_scalar_prefetch=0,
            grid=(N_LAYERS,),
            in_specs=[
                pl.BlockSpec((T, B, 2 * H), lambda l: (0, 0, 0)),       # x
                pl.BlockSpec((1, 2 * H, 8 * H), lambda l: (l, 0, 0)),   # W_ih
                pl.BlockSpec((1, 2 * H, 4 * H), lambda l: (l, 0, 0)),   # W_hh
                pl.BlockSpec((1, 1, 8 * H), lambda l: (l, 0, 0)),       # bias
                pl.BlockSpec((2 * H, LABEL_PAD), lambda l: (0, 0)),     # W_out
                pl.BlockSpec((1, LABEL_PAD), lambda l: (0, 0)),         # b_out
            ],
            out_specs=pl.BlockSpec((T, LABEL_PAD), lambda l: (0, 0)),
            scratch_shapes=[
                pltpu.VMEM((T, B, 2 * H), jnp.float32),   # layer input
                pltpu.VMEM((T, B, 2 * H), jnp.float32),   # layer output
                pltpu.VMEM((2 * B, 2 * H), jnp.float32),  # block-diag [h_f|h_r]
            ],
        ),
        compiler_params=pltpu.CompilerParams(
            dimension_semantics=("arbitrary",),
            vmem_limit_bytes=32 * 1024 * 1024),
    )(x, w_ih, w_hh, b_all, w_out, b_out)


# ----------------------------------------------------------------------------
# Parameter init (deterministic, synthetic) — weights pre-stacked + bf16
# ----------------------------------------------------------------------------
def init_params(key, vocab_size, word_dim, label_size):
    H = HIDDEN
    bound = 1.0 / math.sqrt(H)
    key, k_emb = jax.random.split(key)
    embedding = 0.1 * jax.random.normal(k_emb, (vocab_size, word_dim),
                                        jnp.float32)

    wih_layers, whh_layers, b_layers = [], [], []
    for layer in range(N_LAYERS):
        d_in = word_dim if layer == 0 else 2 * H
        wih_dirs, whh_dirs, b_dirs = [], [], []
        for _ in range(2):                        # forward / reverse
            key, k1, k2, k3 = jax.random.split(key, 4)
            w_ih = jax.random.uniform(k1, (d_in, 4 * H), jnp.float32,
                                      -bound, bound)
            w_hh = jax.random.uniform(k2, (H, 4 * H), jnp.float32,
                                      -bound, bound)
            # b_ih + b_hh folded into one bias (synthetic weights)
            b = jax.random.uniform(k3, (1, 4 * H), jnp.float32, -bound, bound)
            if d_in < 2 * H:                      # pad layer-0 input rows
                w_ih = jnp.pad(w_ih, ((0, 2 * H - d_in), (0, 0)))
            wih_dirs.append(w_ih)
            whh_dirs.append(w_hh)
            b_dirs.append(b)
        wih_layers.append(jnp.concatenate(wih_dirs, axis=1))   # (2H, 8H)
        whh_layers.append(jnp.concatenate(whh_dirs, axis=0))   # (2H, 4H)
        b_layers.append(jnp.concatenate(b_dirs, axis=1))       # (1, 8H)

    params = {
        "embedding": embedding,
        "w_ih": jnp.stack(wih_layers).astype(jnp.bfloat16),    # (L, 2H, 8H)
        "w_hh": jnp.stack(whh_layers).astype(jnp.bfloat16),    # (L, 2H, 4H)
        "b": jnp.stack(b_layers),                               # (L, 1, 8H) f32
    }

    # TODO(synk): the original declares nn.Linear(hidden_size, label_size)
    # which would shape-error against the 2*hidden bidirectional output;
    # here the head consumes the full 2*hidden features.
    key, kw, kb = jax.random.split(key, 3)
    w_out = jax.random.uniform(kw, (2 * H, label_size), jnp.float32,
                               -bound, bound)
    b_out = jax.random.uniform(kb, (1, label_size), jnp.float32,
                               -bound, bound)
    params["w_out"] = jnp.pad(
        w_out, ((0, 0), (0, LABEL_PAD - label_size))).astype(jnp.bfloat16)
    params["b_out"] = jnp.pad(b_out, ((0, 0), (0, LABEL_PAD - label_size)))
    return params


# ----------------------------------------------------------------------------
# Forward pass (mirrors Lstm.forward; `hid` accepted but unused, as in the
# original which calls self.lstm(x) without passing hid)
# ----------------------------------------------------------------------------
def lstm_forward(params, tokens, label_size, hid=None):
    emb = jnp.take(params["embedding"], tokens, axis=0)      # (batch, seq, D)
    x = emb.reshape(emb.shape[0], -1, emb.shape[-1])         # view(size(0),-1,D)
    # nn.LSTM (batch_first=False): dim0 = time, dim1 = batch.  Pad features
    # to 2*HIDDEN so layer 0 shares the uniform stacked-weight shape.
    pad = 2 * HIDDEN - x.shape[-1]
    x = jnp.pad(x.astype(jnp.float32), ((0, 0), (0, 0), (0, pad)))
    probs = fused_lstm_call(x, params["w_ih"], params["w_hh"], params["b"],
                            params["w_out"], params["b_out"], label_size)
    return probs[:, :label_size]


if __name__ == "__main__":
    vocab_size = 50
    word_dim = 32
    label_size = 6
    batch = 4       # becomes the "time" axis inside nn.LSTM (batch_first=False)
    seq_len = 8     # becomes the "batch" axis inside nn.LSTM

    key = jax.random.PRNGKey(0)
    key, k_tok = jax.random.split(key)
    params = init_params(key, vocab_size, word_dim, label_size)
    tokens = jax.random.randint(k_tok, (batch, seq_len), 0, vocab_size,
                                dtype=jnp.int32)

    fwd = jax.jit(lstm_forward, static_argnums=(2,))
    out = fwd(params, tokens, label_size)
    out = jax.block_until_ready(out)

    assert out.shape == (batch, label_size), out.shape
    assert bool(jnp.all(jnp.isfinite(out)))
    # softmax rows should sum to ~1
    assert bool(jnp.allclose(jnp.sum(out, axis=1), 1.0, atol=1e-4))
    print("KERNEL_OK")
</pallas_src>

<mosaic_0001>
module attributes {stable_mosaic.version = 11 : i64} {
  func.func @kernel(%arg0: i32, %arg1: memref<4x8x256xf32, #tpu.memory_space<vmem>>, %arg2: memref<1x256x1024xbf16, #tpu.memory_space<vmem>>, %arg3: memref<1x256x512xbf16, #tpu.memory_space<vmem>>, %arg4: memref<1x1x1024xf32, #tpu.memory_space<vmem>>, %arg5: memref<256x128xbf16, #tpu.memory_space<vmem>>, %arg6: memref<1x128xf32, #tpu.memory_space<vmem>>, %arg7: memref<4x128xf32, #tpu.memory_space<vmem>>, %arg8: memref<4x8x256xf32, #tpu.memory_space<vmem>>, %arg9: memref<4x8x256xf32, #tpu.memory_space<vmem>>, %arg10: memref<16x256xf32, #tpu.memory_space<vmem>>) attributes {dimension_semantics = [#tpu.dimension_semantics<arbitrary>], iteration_bounds = array<i64: 8>, scalar_prefetch = 0 : i64, scratch_operands = 3 : i64, tpu.core_type = #tpu.core_type<tc>, window_params = [{pipeline_mode = #tpu.pipeline_mode<synchronous>, transform_indices = @transform_0, window_bounds = array<i64: 4, 8, 256>}, {transform_indices = @transform_1, window_bounds = array<i64: 1, 256, 1024>}, {transform_indices = @transform_2, window_bounds = array<i64: 1, 256, 512>}, {transform_indices = @transform_3, window_bounds = array<i64: 1, 1, 1024>}, {pipeline_mode = #tpu.pipeline_mode<synchronous>, transform_indices = @transform_4, window_bounds = array<i64: 256, 128>}, {pipeline_mode = #tpu.pipeline_mode<synchronous>, transform_indices = @transform_5, window_bounds = array<i64: 1, 128>}, {pipeline_mode = #tpu.pipeline_mode<synchronous>, transform_indices = @transform_6, window_bounds = array<i64: 4, 128>}]} {
    %c0_i32 = arith.constant 0 : i32
    %0 = arith.cmpi eq, %arg0, %c0_i32 : i32
    %1 = arith.extui %0 : i1 to i32
    %c0_i32_0 = arith.constant 0 : i32
    %2 = arith.cmpi ne, %1, %c0_i32_0 : i32
    scf.if %2 {
      %c0_95 = arith.constant 0 : index
      %c0_96 = arith.constant 0 : index
      %c0_97 = arith.constant 0 : index
      %301 = vector.load %arg1[%c0_95, %c0_96, %c0_97] : memref<4x8x256xf32, #tpu.memory_space<vmem>>, vector<4x8x256xf32>
      %c0_98 = arith.constant 0 : index
      %c0_99 = arith.constant 0 : index
      %c0_100 = arith.constant 0 : index
      %302 = vector.load %arg8[%c0_98, %c0_99, %c0_100] : memref<4x8x256xf32, #tpu.memory_space<vmem>>, vector<4x8x256xf32>
      tpu.vector_store %arg8[%c0_98, %c0_99, %c0_100], %301 {strides = array<i32>} : memref<4x8x256xf32, #tpu.memory_space<vmem>>, vector<4x8x256xf32>,
    } else {
    }
    %cst = arith.constant 0.000000e+00 : f32
    %3 = vector.broadcast %cst : f32 to vector<16x256xf32>
    %c0 = arith.constant 0 : index
    %c0_1 = arith.constant 0 : index
    %4 = vector.load %arg10[%c0, %c0_1] : memref<16x256xf32, #tpu.memory_space<vmem>>, vector<16x256xf32>
    tpu.vector_store %arg10[%c0, %c0_1], %3 {strides = array<i32>} : memref<16x256xf32, #tpu.memory_space<vmem>>, vector<16x256xf32>,
    %c0_2 = arith.constant 0 : index
    %c0_3 = arith.constant 0 : index
    %c0_4 = arith.constant 0 : index
    %5 = vector.load %arg8[%c0_2, %c0_3, %c0_4] : memref<4x8x256xf32, #tpu.memory_space<vmem>>, vector<4x8x256xf32>
    %6 = vector.shape_cast %5 : vector<4x8x256xf32> to vector<32x256xf32>
    %7 = arith.truncf %6 : vector<32x256xf32> to vector<32x256xbf16>
    %c0_5 = arith.constant 0 : index
    %c0_6 = arith.constant 0 : index
    %c0_7 = arith.constant 0 : index
    %8 = vector.load %arg2[%c0_5, %c0_6, %c0_7] : memref<1x256x1024xbf16, #tpu.memory_space<vmem>>, vector<1x256x1024xbf16>
    %9 = vector.shape_cast %8 : vector<1x256x1024xbf16> to vector<256x1024xbf16>
    %cst_8 = arith.constant dense<0.000000e+00> : vector<32x1024xf32>
    %10 = tpu.matmul %7, %9, %cst_8 {dimension_numbers = #tpu.dot_dimension_numbers<[1], [0], [0], [1], [0, 0, 1, 1], [], []>} : vector<32x256xbf16>, vector<256x1024xbf16>, vector<32x1024xf32> -> vector<32x1024xf32>
    %c0_9 = arith.constant 0 : index
    %c0_10 = arith.constant 0 : index
    %c0_11 = arith.constant 0 : index
    %11 = vector.load %arg4[%c0_9, %c0_10, %c0_11] : memref<1x1x1024xf32, #tpu.memory_space<vmem>>, vector<1x1x1024xf32>
    %12 = vector.shape_cast %11 : vector<1x1x1024xf32> to vector<1x1024xf32>
    %13 = vector.broadcast %12 : vector<1x1024xf32> to vector<32x1024xf32>
    %14 = arith.addf %10, %13 : vector<32x1024xf32>
    %15 = vector.shape_cast %14 : vector<32x1024xf32> to vector<4x8x1024xf32>
    %cst_12 = arith.constant 0.000000e+00 : f32
    %16 = vector.broadcast %cst_12 : f32 to vector<8x128xf32>
    %cst_13 = arith.constant 0.000000e+00 : f32
    %17 = vector.broadcast %cst_13 : f32 to vector<8x128xf32>
    %c0_14 = arith.constant 0 : index
    %c0_15 = arith.constant 0 : index
    %c0_16 = arith.constant 0 : index
    %18 = vector.load %arg3[%c0_14, %c0_15, %c0_16] : memref<1x256x512xbf16, #tpu.memory_space<vmem>>, vector<1x256x512xbf16>
    %19 = vector.shape_cast %18 : vector<1x256x512xbf16> to vector<256x512xbf16>
    %c0_17 = arith.constant 0 : index
    %c0_18 = arith.constant 0 : index
    %20 = vector.load %arg10[%c0_17, %c0_18] : memref<16x256xf32, #tpu.memory_space<vmem>>, vector<16x256xf32>
    %21 = arith.truncf %20 : vector<16x256xf32> to vector<16x256xbf16>
    %cst_19 = arith.constant dense<0.000000e+00> : vector<16x512xf32>
    %22 = tpu.matmul %21, %19, %cst_19 {dimension_numbers = #tpu.dot_dimension_numbers<[1], [0], [0], [1], [0, 0, 1, 1], [], []>} : vector<16x256xbf16>, vector<256x512xbf16>, vector<16x512xf32> -> vector<16x512xf32>
    %23 = vector.extract_strided_slice %15 {offsets = [0, 0, 0], sizes = [1, 8, 512], strides = [1, 1, 1]} : vector<4x8x1024xf32> to vector<1x8x512xf32>
    %24 = vector.shape_cast %23 : vector<1x8x512xf32> to vector<8x512xf32>
    %25 = vector.extract_strided_slice %22 {offsets = [0, 0], sizes = [8, 512], strides = [1, 1]} : vector<16x512xf32> to vector<8x512xf32>
    %26 = arith.addf %24, %25 : vector<8x512xf32>
    %27 = vector.extract_strided_slice %15 {offsets = [3, 0, 512], sizes = [1, 8, 512], strides = [1, 1, 1]} : vector<4x8x1024xf32> to vector<1x8x512xf32>
    %28 = vector.shape_cast %27 : vector<1x8x512xf32> to vector<8x512xf32>
    %29 = vector.extract_strided_slice %22 {offsets = [8, 0], sizes = [8, 512], strides = [1, 1]} : vector<16x512xf32> to vector<8x512xf32>
    %30 = arith.addf %28, %29 : vector<8x512xf32>
    %31 = vector.extract_strided_slice %26 {offsets = [0, 0], sizes = [8, 128], strides = [1, 1]} : vector<8x512xf32> to vector<8x128xf32>
    %32 = arith.negf %31 : vector<8x128xf32>
    %33 = math.exp %32 : vector<8x128xf32>
    %cst_20 = arith.constant 1.000000e+00 : f32
    %34 = vector.broadcast %cst_20 : f32 to vector<8x128xf32>
    %35 = arith.addf %34, %33 : vector<8x128xf32>
    %36 = arith.divf %34, %35 : vector<8x128xf32>
    %37 = vector.extract_strided_slice %26 {offsets = [0, 128], sizes = [8, 128], strides = [1, 1]} : vector<8x512xf32> to vector<8x128xf32>
    %38 = arith.negf %37 : vector<8x128xf32>
    %39 = math.exp %38 : vector<8x128xf32>
    %cst_21 = arith.constant 1.000000e+00 : f32
    %40 = vector.broadcast %cst_21 : f32 to vector<8x128xf32>
    %41 = arith.addf %40, %39 : vector<8x128xf32>
    %42 = arith.divf %40, %41 : vector<8x128xf32>
    %43 = vector.extract_strided_slice %26 {offsets = [0, 256], sizes = [8, 128], strides = [1, 1]} : vector<8x512xf32> to vector<8x128xf32>
    %44 = math.tanh %43 : vector<8x128xf32>
    %45 = vector.extract_strided_slice %26 {offsets = [0, 384], sizes = [8, 128], strides = [1, 1]} : vector<8x512xf32> to vector<8x128xf32>
    %46 = arith.negf %45 : vector<8x128xf32>
    %47 = math.exp %46 : vector<8x128xf32>
    %cst_22 = arith.constant 1.000000e+00 : f32
    %48 = vector.broadcast %cst_22 : f32 to vector<8x128xf32>
    %49 = arith.addf %48, %47 : vector<8x128xf32>
    %50 = arith.divf %48, %49 : vector<8x128xf32>
    %51 = arith.mulf %42, %16 : vector<8x128xf32>
    %52 = arith.mulf %36, %44 : vector<8x128xf32>
    %53 = arith.addf %51, %52 : vector<8x128xf32>
    %54 = math.tanh %53 : vector<8x128xf32>
    %55 = arith.mulf %50, %54 : vector<8x128xf32>
    %56 = vector.extract_strided_slice %30 {offsets = [0, 0], sizes = [8, 128], strides = [1, 1]} : vector<8x512xf32> to vector<8x128xf32>
    %57 = arith.negf %56 : vector<8x128xf32>
    %58 = math.exp %57 : vector<8x128xf32>
    %cst_23 = arith.constant 1.000000e+00 : f32
    %59 = vector.broadcast %cst_23 : f32 to vector<8x128xf32>
    %60 = arith.addf %59, %58 : vector<8x128xf32>
    %61 = arith.divf %59, %60 : vector<8x128xf32>
    %62 = vector.extract_strided_slice %30 {offsets = [0, 128], sizes = [8, 128], strides = [1, 1]} : vector<8x512xf32> to vector<8x128xf32>
    %63 = arith.negf %62 : vector<8x128xf32>
    %64 = math.exp %63 : vector<8x128xf32>
    %cst_24 = arith.constant 1.000000e+00 : f32
    %65 = vector.broadcast %cst_24 : f32 to vector<8x128xf32>
    %66 = arith.addf %65, %64 : vector<8x128xf32>
    %67 = arith.divf %65, %66 : vector<8x128xf32>
    %68 = vector.extract_strided_slice %30 {offsets = [0, 256], sizes = [8, 128], strides = [1, 1]} : vector<8x512xf32> to vector<8x128xf32>
    %69 = math.tanh %68 : vector<8x128xf32>
    %70 = vector.extract_strided_slice %30 {offsets = [0, 384], sizes = [8, 128], strides = [1, 1]} : vector<8x512xf32> to vector<8x128xf32>
    %71 = arith.negf %70 : vector<8x128xf32>
    %72 = math.exp %71 : vector<8x128xf32>
    %cst_25 = arith.constant 1.000000e+00 : f32
    %73 = vector.broadcast %cst_25 : f32 to vector<8x128xf32>
    %74 = arith.addf %73, %72 : vector<8x128xf32>
    %75 = arith.divf %73, %74 : vector<8x128xf32>
    %76 = arith.mulf %67, %17 : vector<8x128xf32>
    %77 = arith.mulf %61, %69 : vector<8x128xf32>
    %78 = arith.addf %76, %77 : vector<8x128xf32>
    %79 = math.tanh %78 : vector<8x128xf32>
    %80 = arith.mulf %75, %79 : vector<8x128xf32>
    %c0_26 = arith.constant 0 : index
    %c0_27 = arith.constant 0 : index
    %81 = vector.load %arg10[%c0_26, %c0_27] : memref<16x256xf32, #tpu.memory_space<vmem>>, vector<8x128xf32>
    tpu.vector_store %arg10[%c0_26, %c0_27], %55 {strides = array<i32>} : memref<16x256xf32, #tpu.memory_space<vmem>>, vector<8x128xf32>,
    %c8 = arith.constant 8 : index
    %c128 = arith.constant 128 : index
    %82 = vector.load %arg10[%c8, %c128] : memref<16x256xf32, #tpu.memory_space<vmem>>, vector<8x128xf32>
    tpu.vector_store %arg10[%c8, %c128], %80 {strides = array<i32>} : memref<16x256xf32, #tpu.memory_space<vmem>>, vector<8x128xf32>,
    %c0_28 = arith.constant 0 : index
    %c0_29 = arith.constant 0 : index
    %c0_30 = arith.constant 0 : index
    %83 = vector.load %arg9[%c0_28, %c0_29, %c0_30] : memref<4x8x256xf32, #tpu.memory_space<vmem>>, vector<1x8x128xf32>
    %84 = vector.shape_cast %83 : vector<1x8x128xf32> to vector<8x128xf32>
    %85 = vector.shape_cast %55 : vector<8x128xf32> to vector<1x8x128xf32>
    tpu.vector_store %arg9[%c0_28, %c0_29, %c0_30], %85 {strides = array<i32>} : memref<4x8x256xf32, #tpu.memory_space<vmem>>, vector<1x8x128xf32>,
    %c3 = arith.constant 3 : index
    %c0_31 = arith.constant 0 : index
    %c128_32 = arith.constant 128 : index
    %86 = vector.load %arg9[%c3, %c0_31, %c128_32] : memref<4x8x256xf32, #tpu.memory_space<vmem>>, vector<1x8x128xf32>
    %87 = vector.shape_cast %86 : vector<1x8x128xf32> to vector<8x128xf32>
    %88 = vector.shape_cast %80 : vector<8x128xf32> to vector<1x8x128xf32>
    tpu.vector_store %arg9[%c3, %c0_31, %c128_32], %88 {strides = array<i32>} : memref<4x8x256xf32, #tpu.memory_space<vmem>>, vector<1x8x128xf32>,
    %c0_33 = arith.constant 0 : index
    %c0_34 = arith.constant 0 : index
    %89 = vector.load %arg10[%c0_33, %c0_34] : memref<16x256xf32, #tpu.memory_space<vmem>>, vector<16x256xf32>
    %90 = arith.truncf %89 : vector<16x256xf32> to vector<16x256xbf16>
    %cst_35 = arith.constant dense<0.000000e+00> : vector<16x512xf32>
    %91 = tpu.matmul %90, %19, %cst_35 {dimension_numbers = #tpu.dot_dimension_numbers<[1], [0], [0], [1], [0, 0, 1, 1], [], []>} : vector<16x256xbf16>, vector<256x512xbf16>, vector<16x512xf32> -> vector<16x512xf32>
    %92 = vector.extract_strided_slice %15 {offsets = [1, 0, 0], sizes = [1, 8, 512], strides = [1, 1, 1]} : vector<4x8x1024xf32> to vector<1x8x512xf32>
    %93 = vector.shape_cast %92 : vector<1x8x512xf32> to vector<8x512xf32>
    %94 = vector.extract_strided_slice %91 {offsets = [0, 0], sizes = [8, 512], strides = [1, 1]} : vector<16x512xf32> to vector<8x512xf32>
    %95 = arith.addf %93, %94 : vector<8x512xf32>
    %96 = vector.extract_strided_slice %15 {offsets = [2, 0, 512], sizes = [1, 8, 512], strides = [1, 1, 1]} : vector<4x8x1024xf32> to vector<1x8x512xf32>
    %97 = vector.shape_cast %96 : vector<1x8x512xf32> to vector<8x512xf32>
    %98 = vector.extract_strided_slice %91 {offsets = [8, 0], sizes = [8, 512], strides = [1, 1]} : vector<16x512xf32> to vector<8x512xf32>
    %99 = arith.addf %97, %98 : vector<8x512xf32>
    %100 = vector.extract_strided_slice %95 {offsets = [0, 0], sizes = [8, 128], strides = [1, 1]} : vector<8x512xf32> to vector<8x128xf32>
    %101 = arith.negf %100 : vector<8x128xf32>
    %102 = math.exp %101 : vector<8x128xf32>
    %cst_36 = arith.constant 1.000000e+00 : f32
    %103 = vector.broadcast %cst_36 : f32 to vector<8x128xf32>
    %104 = arith.addf %103, %102 : vector<8x128xf32>
    %105 = arith.divf %103, %104 : vector<8x128xf32>
    %106 = vector.extract_strided_slice %95 {offsets = [0, 128], sizes = [8, 128], strides = [1, 1]} : vector<8x512xf32> to vector<8x128xf32>
    %107 = arith.negf %106 : vector<8x128xf32>
    %108 = math.exp %107 : vector<8x128xf32>
    %cst_37 = arith.constant 1.000000e+00 : f32
    %109 = vector.broadcast %cst_37 : f32 to vector<8x128xf32>
    %110 = arith.addf %109, %108 : vector<8x128xf32>
    %111 = arith.divf %109, %110 : vector<8x128xf32>
    %112 = vector.extract_strided_slice %95 {offsets = [0, 256], sizes = [8, 128], strides = [1, 1]} : vector<8x512xf32> to vector<8x128xf32>
    %113 = math.tanh %112 : vector<8x128xf32>
    %114 = vector.extract_strided_slice %95 {offsets = [0, 384], sizes = [8, 128], strides = [1, 1]} : vector<8x512xf32> to vector<8x128xf32>
    %115 = arith.negf %114 : vector<8x128xf32>
    %116 = math.exp %115 : vector<8x128xf32>
    %cst_38 = arith.constant 1.000000e+00 : f32
    %117 = vector.broadcast %cst_38 : f32 to vector<8x128xf32>
    %118 = arith.addf %117, %116 : vector<8x128xf32>
    %119 = arith.divf %117, %118 : vector<8x128xf32>
    %120 = arith.mulf %111, %53 : vector<8x128xf32>
    %121 = arith.mulf %105, %113 : vector<8x128xf32>
    %122 = arith.addf %120, %121 : vector<8x128xf32>
    %123 = math.tanh %122 : vector<8x128xf32>
    %124 = arith.mulf %119, %123 : vector<8x128xf32>
    %125 = vector.extract_strided_slice %99 {offsets = [0, 0], sizes = [8, 128], strides = [1, 1]} : vector<8x512xf32> to vector<8x128xf32>
    %126 = arith.negf %125 : vector<8x128xf32>
    %127 = math.exp %126 : vector<8x128xf32>
    %cst_39 = arith.constant 1.000000e+00 : f32
    %128 = vector.broadcast %cst_39 : f32 to vector<8x128xf32>
    %129 = arith.addf %128, %127 : vector<8x128xf32>
    %130 = arith.divf %128, %129 : vector<8x128xf32>
    %131 = vector.extract_strided_slice %99 {offsets = [0, 128], sizes = [8, 128], strides = [1, 1]} : vector<8x512xf32> to vector<8x128xf32>
    %132 = arith.negf %131 : vector<8x128xf32>
    %133 = math.exp %132 : vector<8x128xf32>
    %cst_40 = arith.constant 1.000000e+00 : f32
    %134 = vector.broadcast %cst_40 : f32 to vector<8x128xf32>
    %135 = arith.addf %134, %133 : vector<8x128xf32>
    %136 = arith.divf %134, %135 : vector<8x128xf32>
    %137 = vector.extract_strided_slice %99 {offsets = [0, 256], sizes = [8, 128], strides = [1, 1]} : vector<8x512xf32> to vector<8x128xf32>
    %138 = math.tanh %137 : vector<8x128xf32>
    %139 = vector.extract_strided_slice %99 {offsets = [0, 384], sizes = [8, 128], strides = [1, 1]} : vector<8x512xf32> to vector<8x128xf32>
    %140 = arith.negf %139 : vector<8x128xf32>
    %141 = math.exp %140 : vector<8x128xf32>
    %cst_41 = arith.constant 1.000000e+00 : f32
    %142 = vector.broadcast %cst_41 : f32 to vector<8x128xf32>
    %143 = arith.addf %142, %141 : vector<8x128xf32>
    %144 = arith.divf %142, %143 : vector<8x128xf32>
    %145 = arith.mulf %136, %78 : vector<8x128xf32>
    %146 = arith.mulf %130, %138 : vector<8x128xf32>
    %147 = arith.addf %145, %146 : vector<8x128xf32>
    %148 = math.tanh %147 : vector<8x128xf32>
    %149 = arith.mulf %144, %148 : vector<8x128xf32>
    %c0_42 = arith.constant 0 : index
    %c0_43 = arith.constant 0 : index
    %150 = vector.load %arg10[%c0_42, %c0_43] : memref<16x256xf32, #tpu.memory_space<vmem>>, vector<8x128xf32>
    tpu.vector_store %arg10[%c0_42, %c0_43], %124 {strides = array<i32>} : memref<16x256xf32, #tpu.memory_space<vmem>>, vector<8x128xf32>,
    %c8_44 = arith.constant 8 : index
    %c128_45 = arith.constant 128 : index
    %151 = vector.load %arg10[%c8_44, %c128_45] : memref<16x256xf32, #tpu.memory_space<vmem>>, vector<8x128xf32>
    tpu.vector_store %arg10[%c8_44, %c128_45], %149 {strides = array<i32>} : memref<16x256xf32, #tpu.memory_space<vmem>>, vector<8x128xf32>,
    %c1 = arith.constant 1 : index
    %c0_46 = arith.constant 0 : index
    %c0_47 = arith.constant 0 : index
    %152 = vector.load %arg9[%c1, %c0_46, %c0_47] : memref<4x8x256xf32, #tpu.memory_space<vmem>>, vector<1x8x128xf32>
    %153 = vector.shape_cast %152 : vector<1x8x128xf32> to vector<8x128xf32>
    %154 = vector.shape_cast %124 : vector<8x128xf32> to vector<1x8x128xf32>
    tpu.vector_store %arg9[%c1, %c0_46, %c0_47], %154 {strides = array<i32>} : memref<4x8x256xf32, #tpu.memory_space<vmem>>, vector<1x8x128xf32>,
    %c2 = arith.constant 2 : index
    %c0_48 = arith.constant 0 : index
    %c128_49 = arith.constant 128 : index
    %155 = vector.load %arg9[%c2, %c0_48, %c128_49] : memref<4x8x256xf32, #tpu.memory_space<vmem>>, vector<1x8x128xf32>
    %156 = vector.shape_cast %155 : vector<1x8x128xf32> to vector<8x128xf32>
    %157 = vector.shape_cast %149 : vector<8x128xf32> to vector<1x8x128xf32>
    tpu.vector_store %arg9[%c2, %c0_48, %c128_49], %157 {strides = array<i32>} : memref<4x8x256xf32, #tpu.memory_space<vmem>>, vector<1x8x128xf32>,
    %c0_50 = arith.constant 0 : index
    %c0_51 = arith.constant 0 : index
    %158 = vector.load %arg10[%c0_50, %c0_51] : memref<16x256xf32, #tpu.memory_space<vmem>>, vector<16x256xf32>
    %159 = arith.truncf %158 : vector<16x256xf32> to vector<16x256xbf16>
    %cst_52 = arith.constant dense<0.000000e+00> : vector<16x512xf32>
    %160 = tpu.matmul %159, %19, %cst_52 {dimension_numbers = #tpu.dot_dimension_numbers<[1], [0], [0], [1], [0, 0, 1, 1], [], []>} : vector<16x256xbf16>, vector<256x512xbf16>, vector<16x512xf32> -> vector<16x512xf32>
    %161 = vector.extract_strided_slice %15 {offsets = [2, 0, 0], sizes = [1, 8, 512], strides = [1, 1, 1]} : vector<4x8x1024xf32> to vector<1x8x512xf32>
    %162 = vector.shape_cast %161 : vector<1x8x512xf32> to vector<8x512xf32>
    %163 = vector.extract_strided_slice %160 {offsets = [0, 0], sizes = [8, 512], strides = [1, 1]} : vector<16x512xf32> to vector<8x512xf32>
    %164 = arith.addf %162, %163 : vector<8x512xf32>
    %165 = vector.extract_strided_slice %15 {offsets = [1, 0, 512], sizes = [1, 8, 512], strides = [1, 1, 1]} : vector<4x8x1024xf32> to vector<1x8x512xf32>
    %166 = vector.shape_cast %165 : vector<1x8x512xf32> to vector<8x512xf32>
    %167 = vector.extract_strided_slice %160 {offsets = [8, 0], sizes = [8, 512], strides = [1, 1]} : vector<16x512xf32> to vector<8x512xf32>
    %168 = arith.addf %166, %167 : vector<8x512xf32>
    %169 = vector.extract_strided_slice %164 {offsets = [0, 0], sizes = [8, 128], strides = [1, 1]} : vector<8x512xf32> to vector<8x128xf32>
    %170 = arith.negf %169 : vector<8x128xf32>
    %171 = math.exp %170 : vector<8x128xf32>
    %cst_53 = arith.constant 1.000000e+00 : f32
    %172 = vector.broadcast %cst_53 : f32 to vector<8x128xf32>
    %173 = arith.addf %172, %171 : vector<8x128xf32>
    %174 = arith.divf %172, %173 : vector<8x128xf32>
    %175 = vector.extract_strided_slice %164 {offsets = [0, 128], sizes = [8, 128], strides = [1, 1]} : vector<8x512xf32> to vector<8x128xf32>
    %176 = arith.negf %175 : vector<8x128xf32>
    %177 = math.exp %176 : vector<8x128xf32>
    %cst_54 = arith.constant 1.000000e+00 : f32
    %178 = vector.broadcast %cst_54 : f32 to vector<8x128xf32>
    %179 = arith.addf %178, %177 : vector<8x128xf32>
    %180 = arith.divf %178, %179 : vector<8x128xf32>
    %181 = vector.extract_strided_slice %164 {offsets = [0, 256], sizes = [8, 128], strides = [1, 1]} : vector<8x512xf32> to vector<8x128xf32>
    %182 = math.tanh %181 : vector<8x128xf32>
    %183 = vector.extract_strided_slice %164 {offsets = [0, 384], sizes = [8, 128], strides = [1, 1]} : vector<8x512xf32> to vector<8x128xf32>
    %184 = arith.negf %183 : vector<8x128xf32>
    %185 = math.exp %184 : vector<8x128xf32>
    %cst_55 = arith.constant 1.000000e+00 : f32
    %186 = vector.broadcast %cst_55 : f32 to vector<8x128xf32>
    %187 = arith.addf %186, %185 : vector<8x128xf32>
    %188 = arith.divf %186, %187 : vector<8x128xf32>
    %189 = arith.mulf %180, %122 : vector<8x128xf32>
    %190 = arith.mulf %174, %182 : vector<8x128xf32>
    %191 = arith.addf %189, %190 : vector<8x128xf32>
    %192 = math.tanh %191 : vector<8x128xf32>
    %193 = arith.mulf %188, %192 : vector<8x128xf32>
    %194 = vector.extract_strided_slice %168 {offsets = [0, 0], sizes = [8, 128], strides = [1, 1]} : vector<8x512xf32> to vector<8x128xf32>
    %195 = arith.negf %194 : vector<8x128xf32>
    %196 = math.exp %195 : vector<8x128xf32>
    %cst_56 = arith.constant 1.000000e+00 : f32
    %197 = vector.broadcast %cst_56 : f32 to vector<8x128xf32>
    %198 = arith.addf %197, %196 : vector<8x128xf32>
    %199 = arith.divf %197, %198 : vector<8x128xf32>
    %200 = vector.extract_strided_slice %168 {offsets = [0, 128], sizes = [8, 128], strides = [1, 1]} : vector<8x512xf32> to vector<8x128xf32>
    %201 = arith.negf %200 : vector<8x128xf32>
    %202 = math.exp %201 : vector<8x128xf32>
    %cst_57 = arith.constant 1.000000e+00 : f32
    %203 = vector.broadcast %cst_57 : f32 to vector<8x128xf32>
    %204 = arith.addf %203, %202 : vector<8x128xf32>
    %205 = arith.divf %203, %204 : vector<8x128xf32>
    %206 = vector.extract_strided_slice %168 {offsets = [0, 256], sizes = [8, 128], strides = [1, 1]} : vector<8x512xf32> to vector<8x128xf32>
    %207 = math.tanh %206 : vector<8x128xf32>
    %208 = vector.extract_strided_slice %168 {offsets = [0, 384], sizes = [8, 128], strides = [1, 1]} : vector<8x512xf32> to vector<8x128xf32>
    %209 = arith.negf %208 : vector<8x128xf32>
    %210 = math.exp %209 : vector<8x128xf32>
    %cst_58 = arith.constant 1.000000e+00 : f32
    %211 = vector.broadcast %cst_58 : f32 to vector<8x128xf32>
    %212 = arith.addf %211, %210 : vector<8x128xf32>
    %213 = arith.divf %211, %212 : vector<8x128xf32>
    %214 = arith.mulf %205, %147 : vector<8x128xf32>
    %215 = arith.mulf %199, %207 : vector<8x128xf32>
    %216 = arith.addf %214, %215 : vector<8x128xf32>
    %217 = math.tanh %216 : vector<8x128xf32>
    %218 = arith.mulf %213, %217 : vector<8x128xf32>
    %c0_59 = arith.constant 0 : index
    %c0_60 = arith.constant 0 : index
    %219 = vector.load %arg10[%c0_59, %c0_60] : memref<16x256xf32, #tpu.memory_space<vmem>>, vector<8x128xf32>
    tpu.vector_store %arg10[%c0_59, %c0_60], %193 {strides = array<i32>} : memref<16x256xf32, #tpu.memory_space<vmem>>, vector<8x128xf32>,
    %c8_61 = arith.constant 8 : index
    %c128_62 = arith.constant 128 : index
    %220 = vector.load %arg10[%c8_61, %c128_62] : memref<16x256xf32, #tpu.memory_space<vmem>>, vector<8x128xf32>
    tpu.vector_store %arg10[%c8_61, %c128_62], %218 {strides = array<i32>} : memref<16x256xf32, #tpu.memory_space<vmem>>, vector<8x128xf32>,
    %c2_63 = arith.constant 2 : index
    %c0_64 = arith.constant 0 : index
    %c0_65 = arith.constant 0 : index
    %221 = vector.load %arg9[%c2_63, %c0_64, %c0_65] : memref<4x8x256xf32, #tpu.memory_space<vmem>>, vector<1x8x128xf32>
    %222 = vector.shape_cast %221 : vector<1x8x128xf32> to vector<8x128xf32>
    %223 = vector.shape_cast %193 : vector<8x128xf32> to vector<1x8x128xf32>
    tpu.vector_store %arg9[%c2_63, %c0_64, %c0_65], %223 {strides = array<i32>} : memref<4x8x256xf32, #tpu.memory_space<vmem>>, vector<1x8x128xf32>,
    %c1_66 = arith.constant 1 : index
    %c0_67 = arith.constant 0 : index
    %c128_68 = arith.constant 128 : index
    %224 = vector.load %arg9[%c1_66, %c0_67, %c128_68] : memref<4x8x256xf32, #tpu.memory_space<vmem>>, vector<1x8x128xf32>
    %225 = vector.shape_cast %224 : vector<1x8x128xf32> to vector<8x128xf32>
    %226 = vector.shape_cast %218 : vector<8x128xf32> to vector<1x8x128xf32>
    tpu.vector_store %arg9[%c1_66, %c0_67, %c128_68], %226 {strides = array<i32>} : memref<4x8x256xf32, #tpu.memory_space<vmem>>, vector<1x8x128xf32>,
    %c0_69 = arith.constant 0 : index
    %c0_70 = arith.constant 0 : index
    %227 = vector.load %arg10[%c0_69, %c0_70] : memref<16x256xf32, #tpu.memory_space<vmem>>, vector<16x256xf32>
    %228 = arith.truncf %227 : vector<16x256xf32> to vector<16x256xbf16>
    %cst_71 = arith.constant dense<0.000000e+00> : vector<16x512xf32>
    %229 = tpu.matmul %228, %19, %cst_71 {dimension_numbers = #tpu.dot_dimension_numbers<[1], [0], [0], [1], [0, 0, 1, 1], [], []>} : vector<16x256xbf16>, vector<256x512xbf16>, vector<16x512xf32> -> vector<16x512xf32>
    %230 = vector.extract_strided_slice %15 {offsets = [3, 0, 0], sizes = [1, 8, 512], strides = [1, 1, 1]} : vector<4x8x1024xf32> to vector<1x8x512xf32>
    %231 = vector.shape_cast %230 : vector<1x8x512xf32> to vector<8x512xf32>
    %232 = vector.extract_strided_slice %229 {offsets = [0, 0], sizes = [8, 512], strides = [1, 1]} : vector<16x512xf32> to vector<8x512xf32>
    %233 = arith.addf %231, %232 : vector<8x512xf32>
    %234 = vector.extract_strided_slice %15 {offsets = [0, 0, 512], sizes = [1, 8, 512], strides = [1, 1, 1]} : vector<4x8x1024xf32> to vector<1x8x512xf32>
    %235 = vector.shape_cast %234 : vector<1x8x512xf32> to vector<8x512xf32>
    %236 = vector.extract_strided_slice %229 {offsets = [8, 0], sizes = [8, 512], strides = [1, 1]} : vector<16x512xf32> to vector<8x512xf32>
    %237 = arith.addf %235, %236 : vector<8x512xf32>
    %238 = vector.extract_strided_slice %233 {offsets = [0, 0], sizes = [8, 128], strides = [1, 1]} : vector<8x512xf32> to vector<8x128xf32>
    %239 = arith.negf %238 : vector<8x128xf32>
    %240 = math.exp %239 : vector<8x128xf32>
    %cst_72 = arith.constant 1.000000e+00 : f32
    %241 = vector.broadcast %cst_72 : f32 to vector<8x128xf32>
    %242 = arith.addf %241, %240 : vector<8x128xf32>
    %243 = arith.divf %241, %242 : vector<8x128xf32>
    %244 = vector.extract_strided_slice %233 {offsets = [0, 128], sizes = [8, 128], strides = [1, 1]} : vector<8x512xf32> to vector<8x128xf32>
    %245 = arith.negf %244 : vector<8x128xf32>
    %246 = math.exp %245 : vector<8x128xf32>
    %cst_73 = arith.constant 1.000000e+00 : f32
    %247 = vector.broadcast %cst_73 : f32 to vector<8x128xf32>
    %248 = arith.addf %247, %246 : vector<8x128xf32>
    %249 = arith.divf %247, %248 : vector<8x128xf32>
    %250 = vector.extract_strided_slice %233 {offsets = [0, 256], sizes = [8, 128], strides = [1, 1]} : vector<8x512xf32> to vector<8x128xf32>
    %251 = math.tanh %250 : vector<8x128xf32>
    %252 = vector.extract_strided_slice %233 {offsets = [0, 384], sizes = [8, 128], strides = [1, 1]} : vector<8x512xf32> to vector<8x128xf32>
    %253 = arith.negf %252 : vector<8x128xf32>
    %254 = math.exp %253 : vector<8x128xf32>
    %cst_74 = arith.constant 1.000000e+00 : f32
    %255 = vector.broadcast %cst_74 : f32 to vector<8x128xf32>
    %256 = arith.addf %255, %254 : vector<8x128xf32>
    %257 = arith.divf %255, %256 : vector<8x128xf32>
    %258 = arith.mulf %249, %191 : vector<8x128xf32>
    %259 = arith.mulf %243, %251 : vector<8x128xf32>
    %260 = arith.addf %258, %259 : vector<8x128xf32>
    %261 = math.tanh %260 : vector<8x128xf32>
    %262 = arith.mulf %257, %261 : vector<8x128xf32>
    %263 = vector.extract_strided_slice %237 {offsets = [0, 0], sizes = [8, 128], strides = [1, 1]} : vector<8x512xf32> to vector<8x128xf32>
    %264 = arith.negf %263 : vector<8x128xf32>
    %265 = math.exp %264 : vector<8x128xf32>
    %cst_75 = arith.constant 1.000000e+00 : f32
    %266 = vector.broadcast %cst_75 : f32 to vector<8x128xf32>
    %267 = arith.addf %266, %265 : vector<8x128xf32>
    %268 = arith.divf %266, %267 : vector<8x128xf32>
    %269 = vector.extract_strided_slice %237 {offsets = [0, 128], sizes = [8, 128], strides = [1, 1]} : vector<8x512xf32> to vector<8x128xf32>
    %270 = arith.negf %269 : vector<8x128xf32>
    %271 = math.exp %270 : vector<8x128xf32>
    %cst_76 = arith.constant 1.000000e+00 : f32
    %272 = vector.broadcast %cst_76 : f32 to vector<8x128xf32>
    %273 = arith.addf %272, %271 : vector<8x128xf32>
    %274 = arith.divf %272, %273 : vector<8x128xf32>
    %275 = vector.extract_strided_slice %237 {offsets = [0, 256], sizes = [8, 128], strides = [1, 1]} : vector<8x512xf32> to vector<8x128xf32>
    %276 = math.tanh %275 : vector<8x128xf32>
    %277 = vector.extract_strided_slice %237 {offsets = [0, 384], sizes = [8, 128], strides = [1, 1]} : vector<8x512xf32> to vector<8x128xf32>
    %278 = arith.negf %277 : vector<8x128xf32>
    %279 = math.exp %278 : vector<8x128xf32>
    %cst_77 = arith.constant 1.000000e+00 : f32
    %280 = vector.broadcast %cst_77 : f32 to vector<8x128xf32>
    %281 = arith.addf %280, %279 : vector<8x128xf32>
    %282 = arith.divf %280, %281 : vector<8x128xf32>
    %283 = arith.mulf %274, %216 : vector<8x128xf32>
    %284 = arith.mulf %268, %276 : vector<8x128xf32>
    %285 = arith.addf %283, %284 : vector<8x128xf32>
    %286 = math.tanh %285 : vector<8x128xf32>
    %287 = arith.mulf %282, %286 : vector<8x128xf32>
    %c0_78 = arith.constant 0 : index
    %c0_79 = arith.constant 0 : index
    %288 = vector.load %arg10[%c0_78, %c0_79] : memref<16x256xf32, #tpu.memory_space<vmem>>, vector<8x128xf32>
    tpu.vector_store %arg10[%c0_78, %c0_79], %262 {strides = array<i32>} : memref<16x256xf32, #tpu.memory_space<vmem>>, vector<8x128xf32>,
    %c8_80 = arith.constant 8 : index
    %c128_81 = arith.constant 128 : index
    %289 = vector.load %arg10[%c8_80, %c128_81] : memref<16x256xf32, #tpu.memory_space<vmem>>, vector<8x128xf32>
    tpu.vector_store %arg10[%c8_80, %c128_81], %287 {strides = array<i32>} : memref<16x256xf32, #tpu.memory_space<vmem>>, vector<8x128xf32>,
    %c3_82 = arith.constant 3 : index
    %c0_83 = arith.constant 0 : index
    %c0_84 = arith.constant 0 : index
    %290 = vector.load %arg9[%c3_82, %c0_83, %c0_84] : memref<4x8x256xf32, #tpu.memory_space<vmem>>, vector<1x8x128xf32>
    %291 = vector.shape_cast %290 : vector<1x8x128xf32> to vector<8x128xf32>
    %292 = vector.shape_cast %262 : vector<8x128xf32> to vector<1x8x128xf32>
    tpu.vector_store %arg9[%c3_82, %c0_83, %c0_84], %292 {strides = array<i32>} : memref<4x8x256xf32, #tpu.memory_space<vmem>>, vector<1x8x128xf32>,
    %c0_85 = arith.constant 0 : index
    %c0_86 = arith.constant 0 : index
    %c128_87 = arith.constant 128 : index
    %293 = vector.load %arg9[%c0_85, %c0_86, %c128_87] : memref<4x8x256xf32, #tpu.memory_space<vmem>>, vector<1x8x128xf32>
    %294 = vector.shape_cast %293 : vector<1x8x128xf32> to vector<8x128xf32>
    %295 = vector.shape_cast %287 : vector<8x128xf32> to vector<1x8x128xf32>
    tpu.vector_store %arg9[%c0_85, %c0_86, %c128_87], %295 {strides = array<i32>} : memref<4x8x256xf32, #tpu.memory_space<vmem>>, vector<1x8x128xf32>,
    %c0_88 = arith.constant 0 : index
    %c0_89 = arith.constant 0 : index
    %c0_90 = arith.constant 0 : index
    %296 = vector.load %arg9[%c0_88, %c0_89, %c0_90] : memref<4x8x256xf32, #tpu.memory_space<vmem>>, vector<4x8x256xf32>
    %c0_91 = arith.constant 0 : index
    %c0_92 = arith.constant 0 : index
    %c0_93 = arith.constant 0 : index
    %297 = vector.load %arg8[%c0_91, %c0_92, %c0_93] : memref<4x8x256xf32, #tpu.memory_space<vmem>>, vector<4x8x256xf32>
    tpu.vector_store %arg8[%c0_91, %c0_92, %c0_93], %296 {strides = array<i32>} : memref<4x8x256xf32, #tpu.memory_space<vmem>>, vector<4x8x256xf32>,
    %c7_i32 = arith.constant 7 : i32
    %298 = arith.cmpi eq, %arg0, %c7_i32 : i32
    %299 = arith.extui %298 : i1 to i32
    %c0_i32_94 = arith.constant 0 : i32
    %300 = arith.cmpi ne, %299, %c0_i32_94 : i32
    scf.if %300 {
      %c0_95 = arith.constant 0 : index
      %c0_96 = arith.constant 0 : index
      %c0_97 = arith.constant 0 : index
      %301 = vector.load %arg9[%c0_95, %c0_96, %c0_97] : memref<4x8x256xf32, #tpu.memory_space<vmem>>, vector<4x8x256xf32>
      %302 = vector.extract_strided_slice %301 {offsets = [0, 7, 0], sizes = [4, 1, 256], strides = [1, 1, 1]} : vector<4x8x256xf32> to vector<4x1x256xf32>
      %303 = vector.shape_cast %302 : vector<4x1x256xf32> to vector<4x256xf32>
      %304 = arith.truncf %303 : vector<4x256xf32> to vector<4x256xbf16>
      %c0_98 = arith.constant 0 : index
      %c0_99 = arith.constant 0 : index
      %305 = vector.load %arg5[%c0_98, %c0_99] : memref<256x128xbf16, #tpu.memory_space<vmem>>, vector<256x128xbf16>
      %cst_100 = arith.constant dense<0.000000e+00> : vector<4x128xf32>
      %306 = tpu.matmul %304, %305, %cst_100 {dimension_numbers = #tpu.dot_dimension_numbers<[1], [0], [0], [1], [0, 0, 1, 1], [], []>} : vector<4x256xbf16>, vector<256x128xbf16>, vector<4x128xf32> -> vector<4x128xf32>
      %c0_101 = arith.constant 0 : index
      %c0_102 = arith.constant 0 : index
      %307 = vector.load %arg6[%c0_101, %c0_102] : memref<1x128xf32, #tpu.memory_space<vmem>>, vector<1x128xf32>
      %308 = vector.broadcast %307 : vector<1x128xf32> to vector<4x128xf32>
      %309 = arith.addf %306, %308 : vector<4x128xf32>
      %cst_103 = arith.constant dense<0xFF800000> : vector<4xf32>
      %310 = vector.multi_reduction <maximumf>, %309, %cst_103 [1] : vector<4x128xf32> to vector<4xf32>
      %311 = vector.shape_cast %310 : vector<4xf32> to vector<4x1xf32>
      %312 = vector.broadcast %311 : vector<4x1xf32> to vector<4x128xf32>
      %313 = arith.subf %309, %312 : vector<4x128xf32>
      %314 = math.exp %313 : vector<4x128xf32>
      %315 = tpu.iota {dimensions = array<i32: 1>} : vector<4x128xi32>
      %c6_i32 = arith.constant 6 : i32
      %316 = vector.broadcast %c6_i32 : i32 to vector<4x128xi32>
      %317 = arith.cmpi slt, %315, %316 : vector<4x128xi32>
      %cst_104 = arith.constant 0.000000e+00 : f32
      %318 = vector.broadcast %cst_104 : f32 to vector<4x128xf32>
      %319 = arith.select %317, %314, %318 : vector<4x128xi1>, vector<4x128xf32>
      %cst_105 = arith.constant dense<0.000000e+00> : vector<4xf32>
      %320 = vector.multi_reduction <add>, %319, %cst_105 [1] : vector<4x128xf32> to vector<4xf32>
      %321 = vector.shape_cast %320 : vector<4xf32> to vector<4x1xf32>
      %322 = tpu.reciprocal %321 {approx = true} : vector<4x1xf32> -> vector<4x1xf32>
      %323 = arith.mulf %321, %322 : vector<4x1xf32>
      %cst_106 = arith.constant 2.000000e+00 : f32
      %324 = vector.broadcast %cst_106 : f32 to vector<4x1xf32>
      %325 = arith.subf %324, %323 : vector<4x1xf32>
      %326 = arith.mulf %322, %325 : vector<4x1xf32>
      %327 = vector.broadcast %326 : vector<4x1xf32> to vector<4x128xf32>
      %328 = arith.mulf %319, %327 : vector<4x128xf32>
      %c0_107 = arith.constant 0 : index
      %c0_108 = arith.constant 0 : index
      %329 = vector.load %arg7[%c0_107, %c0_108] : memref<4x128xf32, #tpu.memory_space<vmem>>, vector<4x128xf32>
      tpu.vector_store %arg7[%c0_107, %c0_108], %328 {strides = array<i32>} : memref<4x128xf32, #tpu.memory_space<vmem>>, vector<4x128xf32>,
    } else {
    }
    return
  }
  func.func @transform_0(%arg0: i32) -> (i32, i32, i32) {
    %c0_i32 = arith.constant 0 : i32
    %c0_i32_0 = arith.constant 0 : i32
    %c0_i32_1 = arith.constant 0 : i32
    %c0_i32_2 = arith.constant 0 : i32
    return %c0_i32, %c0_i32_0, %c0_i32_1 : i32, i32, i32
  }
  func.func @transform_1(%arg0: i32) -> (i32, i32, i32) {
    %c0_i32 = arith.constant 0 : i32
    %c0_i32_0 = arith.constant 0 : i32
    %c0_i32_1 = arith.constant 0 : i32
    return %arg0, %c0_i32, %c0_i32_0 : i32, i32, i32
  }
  func.func @transform_2(%arg0: i32) -> (i32, i32, i32) {
    %c0_i32 = arith.constant 0 : i32
    %c0_i32_0 = arith.constant 0 : i32
    %c0_i32_1 = arith.constant 0 : i32
    return %arg0, %c0_i32, %c0_i32_0 : i32, i32, i32
  }
  func.func @transform_3(%arg0: i32) -> (i32, i32, i32) {
    %c0_i32 = arith.constant 0 : i32
    %c0_i32_0 = arith.constant 0 : i32
    %c0_i32_1 = arith.constant 0 : i32
    return %arg0, %c0_i32, %c0_i32_0 : i32, i32, i32
  }
  func.func @transform_4(%arg0: i32) -> (i32, i32) {
    %c0_i32 = arith.constant 0 : i32
    %c0_i32_0 = arith.constant 0 : i32
    %c0_i32_1 = arith.constant 0 : i32
    return %c0_i32, %c0_i32_0 : i32, i32
  }
  func.func @transform_5(%arg0: i32) -> (i32, i32) {
    %c0_i32 = arith.constant 0 : i32
    %c0_i32_0 = arith.constant 0 : i32
    %c0_i32_1 = arith.constant 0 : i32
    return %c0_i32, %c0_i32_0 : i32, i32
  }
  func.func @transform_6(%arg0: i32) -> (i32, i32) {
    %c0_i32 = arith.constant 0 : i32
    %c0_i32_0 = arith.constant 0 : i32
    %c0_i32_1 = arith.constant 0 : i32
    return %c0_i32, %c0_i32_0 : i32, i32
  }
}

</mosaic_0001>

<bundles_post_ra>
// kernel: lstm_forward.1
= control target key start
LH: loop header
LB: loop body
LE: loop exit
PB: predicated region body
PF: predicated region fallthrough
CT: control target
= control target key end

     0   :  { %s4729_s0 = inlined_call_operand.vmem [shape: f32[4,8,256], index: 0, kind: input, shape index: {}]   ;;  %s4730_s1 = inlined_call_operand.hbm [shape: bf16[8,256,1024], index: 1, kind: input, shape index: {}]   ;;  %s4731_s2 = inlined_call_operand.hbm [shape: bf16[8,256,512], index: 2, kind: input, shape index: {}]   ;;  %s4732_s3 = inlined_call_operand.hbm [shape: f32[8,1,1024], index: 3, kind: input, shape index: {}]   ;;  %s4733_s4 = inlined_call_operand.hbm [shape: bf16[256,128], index: 4, kind: input, shape index: {}]   ;;  %s4734_s5 = inlined_call_operand.hbm [shape: f32[1,128], index: 5, kind: input, shape index: {}]   ;;  %s4735_s6 = inlined_call_operand.hbm [shape: f32[4,128], index: 6, kind: output, shape index: {}]  }
   0x1   :  { %4816 = sst [smem:[#allocation78_spill]] %s4731_s2 }
   0x2   :  { %11 = vsyncpa [#allocation6], 0 }
   0x3   :  { %13 = vsyncpa [#allocation6 + $0x1], 0 }
   0x4   :  { %14 = vsyncpa [#allocation9], 0 }
   0x5   :  { %16 = vsyncpa [#allocation9 + $0x1], 0 }
   0x6   :  { %17 = vsyncpa [#allocation12], 0 }
   0x7   :  { %18 = vsyncpa [#allocation7], 0  ;;  %s3683_s21 = smov 0   ;;  %s3685_s22 = smov 0  }
   0x8   :  { %s3687_s23 = smov 0   ;;  %s3689_s24 = smov 0  }
   0x9 LB: > { %4817 = sst [smem:[#allocation19_spill]] %s3628_s23  ;;  %s3702_s25 = sadd.s32 4294967295, %s3632_s24   ;;  %s3632_s24 = sphi %s3689_s24, %s4983_s24   ;;  %s3628_s23 = sphi %s3687_s23, %s4980_s23   ;;  %s3624_s22 = sphi %s3685_s22, %s4982_s22   ;;  %s3620_s21 = sphi %s3683_s21, %s4981_s21  }
   0xa   : > { %s3705_s26 = sadd.s32 1, %s3632_s24   ;;  %s52_s28 = sadd.s32 1, %s3628_s23 }
   0xb   : > { %s49_s27 = ssub.s32 %s3632_s24, %s3705_s26  ;;  %p59_p1 = scmp.ne.s32.totalorder %s3628_s23, %s3624_s22 }
   0xc   : > { %p50_p0 = scmp.eq.s32.totalorder %s49_s27, 0  ;;  %p60_p2 = scmp.eq.s32.totalorder %s3632_s24, 0 }
   0xd   : > { %p65_p3 = scmp.ne.s32.totalorder %s3624_s22, %s3620_s21  ;;  %p4736_p5 = scmp.eq.s32.totalorder %s3702_s25, 0 }
   0xe   : > { %s3715_s29 = scalar_select %p50_p0, %s3628_s23, %s52_s28  }
   0xf   : > { %p3717_p4 = por %p60_p2, %p59_p1  ;;  %p2802_p6 = scmp.ge.s32.totalorder %s3632_s24, 1 }
  0x10   : > { %4818 = sst [smem:[#allocation20_spill]] %s3715_s29  ;;  %p191_p7 = scmp.lt.s32.totalorder %s3632_s24, 9 }
  0x11   : > { %p3726_p8 = por %p4736_p5, %p65_p3  ;;  %s3634_s9 = smov [#allocation11]  }
  0x12   : > { %p3731_p10 = pnand %p2802_p6, %p191_p7  ;;  %s206_s10 = sshll.u32 %s3634_s9, 4  ;;  %s207_s10 = int_to_ptr.vmem [resolvable:$true] %s206_s10 }
  0x13   : > { %s4820_s7 = scalar_select %p3726_p8, 1, 0 }
  0x14   : > { %s4821_s8 = scalar_select %p3731_p10, 1, 0 }
  0x15   : > { %p3103_p11 = pneg %p3731_p10  ;;  %p3122_p13 = scmp.lt.s32.totalorder %s3632_s24, 8 }
  0x16   : > { %s3745_s12 = sand.u32 1, %s3628_s23   ;;  %s252_s13 = sand.u32 1, %s3632_s24  }
  0x17   : > { %p3739_p12 = pnand %p3103_p11, %p4736_p5  ;;  %p3750_p0 = pnand %p3122_p13, %p3717_p4 }
  0x18   : > { %s3414_s17 = scalar_lea.hbm %s4733_s4, 2048 }
  0x19   : > { %s4822_s11 = scalar_select %p3739_p12, 1, 0 }
  0x1a   : > { %s4823_s14 = scalar_select %p3750_p0, 1, 0 }
  0x1b   : > { %p3415_p1 = scmp.ne.s32.totalorder %s4733_s4, %s3414_s17  ;;  %p4741_p2 = pneg %p3739_p12 }
  0x1c   : > { %p3421_p4 = scmp.lt.u32.totalorder %s3414_s17, %s4733_s4 }
  0x1d   : > { %p3417_p3 = pnand %p4741_p2, %p3415_p1 }
  0x1f   : > { %p3418_p6 = pneg %p3417_p3 }
  0x21   : > { %p3423_p7 = pnand %p3421_p4, %p3418_p6 }
  0x23   : > { %3426 = shalt.err (!%p3423_p7)
}
  0x24   : > { %s3427_s27 = scalar_lea.vmem %s207_s10, 2048  ;;  %p3435_p5 = scmp.lt.s32.totalorder %s207_s10, %s207_s10 }
  0x25   : > { %p3428_p11 = scmp.ne.s32.totalorder %s207_s10, %s3427_s27  ;;  %p3436_p8 = scmp.lt.s32.totalorder %s3427_s27, %s3427_s27 }
  0x27   : > { %p3430_p13 = pnand %p3428_p11, %p4741_p2  ;;  %p3437_p10 = por %p3436_p8, %p3435_p5 }
  0x29   : > { %p3431_p9 = pneg %p3430_p13 }
  0x2b   : > { %p3438_p0 = pnand %p3437_p10, %p3431_p9 }
  0x2d   : > { %3441 = shalt.err (!%p3438_p0)
}
  0x2e   : > { %s3635_s28 = smov 64   ;;  %s3636_s30 = smov 4  }
  0x2f   : > { %3106 = dma.hbm_to_vmem [thread:$0]  (!%p3739_p12), %s4733_s4, 2048, %s207_s10, [#allocation12], %s3635_s28, %s3635_s28, %s3636_s30  }
  0x30   : > { %s2809_s16 = sshll.u32 %s3745_s12, 9  ;;  %s3061_s17 = sshll.u32 %s3632_s24, 13 }
  0x31   : > { %s4824_s2 = sld [smem:[#allocation78_spill]]  ;;  %s256_s21 = scalar_lea.vmem [#allocation8], %s2809_s16 }
  0x32   : > { %s263_s27 = sshll.u32 %s256_s21, 4  ;;  %s3785_s29 = scalar_lea.sflag [#allocation9], %s252_s13  ;;  %s3783_s27 = int_to_ptr.vmem [resolvable:$true] %s263_s27 }
  0x33   : > { %p4825_p8 = scmp.ne.s32.totalorder %s4823_s14, 0 }
  0x35   : > { %p3791_p9 = pneg %p4825_p8 }
  0x37   : > { %s3781_s20 = scalar_lea.hbm %s4824_s2, %s3061_s17  ;;  %s3447_s9 = scalar_lea.hbm %s4824_s2, 65536 }
  0x38   : > { %s3442_s23 = scalar_lea.hbm %s3781_s20, 8192  ;;  %p3448_p1 = scmp.lt.u32.totalorder %s3781_s20, %s4824_s2 }
  0x39   : > { %p3443_p5 = scmp.ne.s32.totalorder %s3781_s20, %s3442_s23  ;;  %p3449_p3 = scmp.lt.u32.totalorder %s3447_s9, %s3442_s23 }
  0x3a   : > { %s4826_s10 = scalar_select %p3791_p9, 1, 0 }
  0x3b   : > { %p3445_p10 = pnand %p3791_p9, %p3443_p5  ;;  %p3450_p6 = por %p3449_p3, %p3448_p1 }
  0x3c   : > { %p3451_p4 = scmp.lt.u32.totalorder %s3442_s23, %s3781_s20 }
  0x3d   : > { %p3446_p0 = pneg %p3445_p10 }
  0x3e   : > { %p3452_p7 = por %p3451_p4, %p3450_p6 }
  0x40   : > { %p3453_p11 = pnand %p3452_p7, %p3446_p0 }
  0x42   : > { %3456 = shalt.err (!%p3453_p11)
}
  0x43   : > { %s3457_s13 = scalar_lea.vmem %s3783_s27, 8192  ;;  %s3637_s17 = smov [#allocation8]  }
  0x44   : > { %p3458_p13 = scmp.ne.s32.totalorder %s3783_s27, %s3457_s13  ;;  %s3462_s18 = sshll.u32 %s3637_s17, 4  ;;  %s3463_s18 = int_to_ptr.vmem [resolvable:$false] %s3462_s18 }
  0x45   : > { %s3464_s19 = scalar_lea.vmem %s3463_s18, 16384  ;;  %p3465_p2 = scmp.lt.s32.totalorder %s3783_s27, %s3463_s18 }
  0x46   : > { %p3460_p5 = pnand %p3458_p13, %p3791_p9  ;;  %p3466_p12 = scmp.lt.s32.totalorder %s3464_s19, %s3457_s13 }
  0x48   : > { %p3461_p10 = pneg %p3460_p5  ;;  %p3467_p1 = por %p3466_p12, %p3465_p2 }
  0x4a   : > { %p3468_p3 = pnand %p3467_p1, %p3461_p10 }
  0x4c   : > { %3471 = shalt.err (!%p3468_p3)
}
  0x4d   : > { %s3638_s23 = smov 256   ;;  %s3639_s21 = smov 16  }
  0x4e   : > { %3116 = dma.hbm_to_vmem [thread:$0]  (!%p4825_p8), %s3781_s20, 8192, %s3783_s27, %s3785_s29, %s3638_s23, %s3638_s23, %s3639_s21  }
  0x4f   : > { %s3640_s28 = smov [#allocation13]   ;;  %s2806_s9 = sshll.u32 %s3745_s12, 10 }
  0x50   : > { %s220_s30 = sshll.u32 %s3640_s28, 4  ;;  %s3472_s13 = scalar_lea.hbm %s4734_s5, 16  ;;  %s221_s30 = int_to_ptr.vmem [resolvable:$true] %s220_s30 }
  0x51   : > { %p3473_p12 = scmp.ne.s32.totalorder %s4734_s5, %s3472_s13  ;;  %p4827_p2 = scmp.ne.s32.totalorder %s4822_s11, 0 }
  0x52   : > { %p3479_p7 = scmp.lt.u32.totalorder %s3472_s13, %s4734_s5 }
  0x53   : > { %p4828_p0 = pneg %p4827_p2 }
  0x55   : > { %p3475_p6 = pnand %p3473_p12, %p4828_p0 }
  0x57   : > { %p3476_p4 = pneg %p3475_p6 }
  0x59   : > { %p3481_p11 = pnand %p3479_p7, %p3476_p4 }
  0x5b   : > { %3484 = shalt.err (!%p3481_p11)
}
  0x5c   : > { %s3485_s20 = scalar_lea.vmem %s221_s30, 16  ;;  %p4829_p5 = pmov %p4828_p0 }
  0x5d   : > { %p3486_p13 = scmp.ne.s32.totalorder %s221_s30, %s3485_s20  ;;  %s3492_s27 = scalar_lea.vmem %s221_s30, 32 }
  0x5e   : > { %p3493_p3 = scmp.lt.s32.totalorder %s221_s30, %s221_s30  ;;  %p3494_p8 = scmp.lt.s32.totalorder %s3492_s27, %s3485_s20 }
  0x5f   : > { %p3488_p10 = pnand %p3486_p13, %p4829_p5 }
  0x60   : > { %p3495_p9 = por %p3494_p8, %p3493_p3 }
  0x61   : > { %p3489_p1 = pneg %p3488_p10 }
  0x63   : > { %p3496_p0 = pnand %p3495_p9, %p3489_p1 }
  0x65   : > { %3499 = shalt.err (!%p3496_p0)
}
  0x66   : > { %3109 = dma.hbm_to_vmem [thread:$0]  (!%p4827_p2), %s4734_s5, 16, %s221_s30, [#allocation12]  }
  0x67   : > { %s3060_s21 = sshll.u32 %s3632_s24, 14  ;;  %s235_s28 = scalar_lea.vmem [#allocation5], %s2806_s9 }
  0x68   : > { %s242_s15 = sshll.u32 %s235_s28, 4  ;;  %s3840_s17 = scalar_lea.hbm %s4730_s1, %s3060_s21  ;;  %s3842_s15 = int_to_ptr.vmem [resolvable:$true] %s242_s15 }
  0x69   : > { %s232_s11 = scalar_lea.sflag [#allocation6], %s3745_s12  ;;  %s3500_s18 = scalar_lea.hbm %s3840_s17, 16384 }
  0x6a   : > { %p3501_p8 = scmp.ne.s32.totalorder %s3840_s17, %s3500_s18  ;;  %p4830_p9 = scmp.ne.s32.totalorder %s4826_s10, 0 }
  0x6b   : > { %s3505_s19 = scalar_lea.hbm %s4730_s1, 131072  ;;  %p3506_p6 = scmp.lt.u32.totalorder %s3840_s17, %s4730_s1 }
  0x6c   : > { %p3503_p12 = pnand %p3501_p8, %p4830_p9  ;;  %p3507_p4 = scmp.lt.u32.totalorder %s3505_s19, %s3500_s18 }
  0x6d   : > { %p3509_p11 = scmp.lt.u32.totalorder %s3500_s18, %s3840_s17 }
  0x6e   : > { %p3504_p2 = pneg %p3503_p12  ;;  %p3508_p7 = por %p3507_p4, %p3506_p6 }
  0x70   : > { %p3510_p13 = por %p3509_p11, %p3508_p7 }
  0x72   : > { %p3511_p5 = pnand %p3510_p13, %p3504_p2 }
  0x74   : > { %3514 = shalt.err (!%p3511_p5)
}
  0x75   : > { %s3515_s23 = scalar_lea.vmem %s3842_s15, 16384  ;;  %s3641_s2 = smov [#allocation5]  }
  0x76   : > { %p3516_p10 = scmp.ne.s32.totalorder %s3842_s15, %s3515_s23  ;;  %s3520_s21 = sshll.u32 %s3641_s2, 4  ;;  %s3521_s21 = int_to_ptr.vmem [resolvable:$false] %s3520_s21 }
  0x77   : > { %s3522_s28 = scalar_lea.vmem %s3521_s21, 32768  ;;  %p3523_p0 = scmp.lt.s32.totalorder %s3842_s15, %s3521_s21 }
  0x78   : > { %p3518_p1 = pnand %p3516_p10, %p4830_p9  ;;  %p3524_p8 = scmp.lt.s32.totalorder %s3522_s28, %s3515_s23 }
  0x7a   : > { %p3519_p3 = pneg %p3518_p1  ;;  %p3525_p12 = por %p3524_p8, %p3523_p0 }
  0x7c   : > { %p3526_p6 = pnand %p3525_p12, %p3519_p3 }
  0x7e   : > { %3529 = shalt.err (!%p3526_p6)
}
  0x7f   : > { %s3642_s16 = smov 512   ;;  %s3643_s13 = smov 32  }
  0x80   : > { %p4831_p2 = scmp.ne.s32.totalorder %s4823_s14, 0  ;;  %s2812_s18 = sshll.u32 %s3745_s12, 3 }
  0x81   : > { %s3062_s30 = sshll.u32 %s3632_s24, 7  ;;  %s277_s27 = scalar_lea.vmem [#allocation10], %s2812_s18 }
  0x82   : > { %3113 = dma.hbm_to_vmem [thread:$0]  (!%p4831_p2), %s3840_s17, 16384, %s3842_s15, %s232_s11, %s3642_s16, %s3642_s16, %s3643_s13  }
  0x83   : > { %s3873_s20 = scalar_lea.hbm %s4732_s3, %s3062_s30  ;;  %s285_s23 = sshll.u32 %s277_s27, 4  ;;  %s286_s23 = int_to_ptr.vmem [resolvable:$true] %s285_s23 }
  0x84   : > { %s3530_s2 = scalar_lea.hbm %s3873_s20, 128  ;;  %s3535_s24 = scalar_lea.hbm %s4732_s3, 1024 }
  0x85   : > { %p3531_p4 = scmp.ne.s32.totalorder %s3873_s20, %s3530_s2  ;;  %p3536_p13 = scmp.lt.u32.totalorder %s3873_s20, %s4732_s3 }
  0x86   : > { %p3537_p5 = scmp.lt.u32.totalorder %s3535_s24, %s3530_s2  ;;  %p3539_p1 = scmp.lt.u32.totalorder %s3530_s2, %s3873_s20 }
  0x87   : > { %p3533_p7 = pnand %p3531_p4, %p4830_p9 }
  0x88   : > { %p3538_p10 = por %p3537_p5, %p3536_p13 }
  0x89   : > { %p3534_p11 = pneg %p3533_p7 }
  0x8a   : > { %p3540_p3 = por %p3539_p1, %p3538_p10 }
  0x8c   : > { %p3541_p0 = pnand %p3540_p3, %p3534_p11 }
  0x8e   : > { %3544 = shalt.err (!%p3541_p0)
}
  0x8f   : > { %s3545_s21 = scalar_lea.vmem %s286_s23, 128  ;;  %s3644_s28 = smov [#allocation10]  }
  0x90   : > { %p3546_p8 = scmp.ne.s32.totalorder %s286_s23, %s3545_s21  ;;  %s3550_s16 = sshll.u32 %s3644_s28, 4  ;;  %s3551_s16 = int_to_ptr.vmem [resolvable:$false] %s3550_s16 }
  0x91   : > { %s3552_s13 = scalar_lea.vmem %s3551_s16, 256  ;;  %p3553_p4 = scmp.lt.s32.totalorder %s286_s23, %s3551_s16 }
  0x92   : > { %p3548_p12 = pnand %p3546_p8, %p4830_p9  ;;  %p3554_p7 = scmp.lt.s32.totalorder %s3552_s13, %s3545_s21 }
  0x94   : > { %p3549_p6 = pneg %p3548_p12  ;;  %p3555_p2 = por %p3554_p7, %p3553_p4 }
  0x96   : > { %p3556_p5 = pnand %p3555_p2, %p3549_p6 }
  0x98   : > { %3559 = shalt.err (!%p3556_p5)
}
  0x99   : > { %p4832_p13 = scmp.ne.s32.totalorder %s4823_s14, 0  ;;  %p4833_p11 = scmp.ne.s32.totalorder %s4821_s8, 0 }
  0x9b   : > { %3119 = dma.hbm_to_vmem [thread:$0]  (!%p4832_p13), %s3873_s20, 128, %s286_s23, %s3785_s29  }
  0x9c   : > { %294 = sbr.rel (%p4833_p11) target bundleno = 2015 (0x7df), region = 44 }
  0xa3   : > { %s296_s10 = sand.u32 1, %s3624_s22   ;;  %p4834_p9 = scmp.ne.s32.totalorder %s4820_s7, 0 }
  0xa4   : > { %s2816_s18 = sshll.u32 %s296_s10, 10  ;;  %s297_s30 = scalar_lea.sflag [#allocation6], %s296_s10 }
  0xa5   : > { %s3896_s9 = scalar_lea.vmem [#allocation5], %s2816_s18 }
  0xa6   : > { %3603 = dma.done.wait (%p4834_p9), %s297_s30, 16384  }
  0xa7   : > { %3605 = vsyncadd (%p4834_p9), %s297_s30, 4294950912  ;;  %s305_s14 = sand.u32 1, %s3702_s25   ;;  %s2817_s19 = sshll.u32 %s296_s10, 9 }
  0xa8   : > { %s306_s29 = scalar_lea.sflag [#allocation9], %s305_s14  ;;  %s3903_s20 = scalar_lea.vmem [#allocation8], %s2817_s19 }
  0xa9   : > { %3607 = dma.done.wait (%p4834_p9), %s306_s29, 8320  }
  0xaa   : > { %3609 = vsyncadd (%p4834_p9), %s306_s29, 4294958976  ;;  %s2818_s8 = sshll.u32 %s296_s10, 3  ;;  %p4835_p2 = scmp.eq.s32.totalorder %s3702_s25, 0 }
  0xab   : > { %s3909_s27 = scalar_lea.vmem [#allocation10], %s2818_s8 }
  0xac   : > { %3611 = dma.done.wait (%p4835_p2), [#allocation12], 2064   ;;  %p4836_p10 = pmov %p4835_p2 }
  0xad   : > { %p4837_p1 = scmp.ne.s32.totalorder %s3702_s25, 0 }
  0xae   : > { %3613 = vsyncadd (%p4836_p10), [#allocation12], 4294965232  ;;  %v365_v0 = vld [vmem:[%s4729_s0] sm:$0xff] (!%p4837_p1)  ;;  %v366_v1 = vld [vmem:[%s4729_s0 + $0x8] sm:$0xff] (!%p4837_p1) }
  0xaf   : > { %364 = sbr.rel (%p4837_p1) target bundleno = 182 (0xb6), region = 68  ;;  %v367_v2 = vld [vmem:[%s4729_s0 + $0x10] sm:$0xff] (!%p4837_p1)  ;;  %373 = vst [vmem:[#allocation2] sm:$0xff] (!%p4837_p1), %v365_v0  ;;  %374 = vst [vmem:[#allocation2 + $0x8] sm:$0xff] (!%p4837_p1), %v366_v1  ;;  %v368_v3 = vld [vmem:[%s4729_s0 + $0x18] sm:$0xff] (!%p4837_p1) }
  0xb0   : > { %375 = vst [vmem:[#allocation2 + $0x10] sm:$0xff] (!%p4837_p1), %v367_v2  ;;  %v369_v4 = vld [vmem:[%s4729_s0 + $0x20] sm:$0xff] (!%p4837_p1)  ;;  %v370_v5 = vld [vmem:[%s4729_s0 + $0x28] sm:$0xff] (!%p4837_p1)  ;;  %376 = vst [vmem:[#allocation2 + $0x18] sm:$0xff] (!%p4837_p1), %v368_v3 }
  0xb1   : > { %377 = vst [vmem:[#allocation2 + $0x20] sm:$0xff] (!%p4837_p1), %v369_v4  ;;  %378 = vst [vmem:[#allocation2 + $0x28] sm:$0xff] (!%p4837_p1), %v370_v5  ;;  %v371_v6 = vld [vmem:[%s4729_s0 + $0x30] sm:$0xff] (!%p4837_p1)  ;;  %v372_v7 = vld [vmem:[%s4729_s0 + $0x38] sm:$0xff] (!%p4837_p1) }
  0xb2   : > { %379 = vst [vmem:[#allocation2 + $0x30] sm:$0xff] (!%p4837_p1), %v371_v6  ;;  %380 = vst [vmem:[#allocation2 + $0x38] sm:$0xff] (!%p4837_p1), %v372_v7 }
  0xb6 PF: > { %v397_v8 = vld [vmem:[%s3896_s9] sm:$0xff]  ;;  %v398_v10 = vld [vmem:[%s3896_s9 + $0x8] sm:$0xff]  ;;  %p3038_p3 = scmp.ne.s32.totalorder %s3702_s25, 7 }
  0xb7   : > { %v401_v9 = vld [vmem:[%s3896_s9 + $0x20] sm:$0xff]  ;;  %v402_v12 = vld [vmem:[%s3896_s9 + $0x28] sm:$0xff]  ;;  %v388_v62 = vld [vmem:[#allocation2 + $0x18] sm:$0xff]  ;;  %vm2507_vm0 = vcmask (!%p3038_p3), 1041409   ;;  %vm2510_vm1 = vcmask (!%p3038_p3), 1042434   ;;  %vm2513_vm2 = vcmask (!%p3038_p3), 1043459  }
  0xb8   : > { %v2823_v11 = vcombine.high %v397_v8, %v401_v9  ;;  %v2822_v13 = vcombine.low %v397_v8, %v401_v9  ;;  %v405_v14 = vld [vmem:[%s3896_s9 + $0x40] sm:$0xff]  ;;  %v2825_v16 = vcombine.high %v398_v10, %v402_v12  ;;  %v2824_v17 = vcombine.low %v398_v10, %v402_v12  ;;  %v406_v19 = vld [vmem:[%s3896_s9 + $0x48] sm:$0xff] }
  0xb9   : > { %v409_v15 = vld [vmem:[%s3896_s9 + $0x60] sm:$0xff]  ;;  %v410_v20 = vld [vmem:[%s3896_s9 + $0x68] sm:$0xff]  ;;  %vm2662_vm3 = vcmask (!%p3038_p3), 1043456  }
  0xba   : > { %v2831_v18 = vcombine.high %v405_v14, %v409_v15  ;;  %v413_v21 = vld [vmem:[%s3896_s9 + $0x80] sm:$0xff]  ;;  %1207 = vmatprep.subr.bf16.mxu0 %v2823_v11  ;;  %v2833_v22 = vcombine.high %v406_v19, %v410_v20  ;;  %v414_v24 = vld [vmem:[%s3896_s9 + $0x88] sm:$0xff]  ;;  %1260 = vmatprep.subr.bf16.mxu1 %v2825_v16  ;;  %v2830_v26 = vcombine.low %v405_v14, %v409_v15 }
  0xbb   : > { %v417_v23 = vld [vmem:[%s3896_s9 + $0xa0] sm:$0xff]  ;;  %v418_v25 = vld [vmem:[%s3896_s9 + $0xa8] sm:$0xff]  ;;  %1208 = vmatpush1.bf16.msra.mxu0 %v2822_v13  ;;  %1261 = vmatpush1.bf16.msra.mxu1 %v2824_v17  ;;  %v2832_v27 = vcombine.low %v406_v19, %v410_v20 }
  0xbc   : > { %1209 = vmatprep.subr.bf16.mxu0 %v2831_v18  ;;  %v2839_v28 = vcombine.high %v413_v21, %v417_v23  ;;  %1262 = vmatprep.subr.bf16.mxu1 %v2833_v22  ;;  %v2841_v29 = vcombine.high %v414_v24, %v418_v25  ;;  %v421_v30 = vld [vmem:[%s3896_s9 + $0xc0] sm:$0xff]  ;;  %v422_v32 = vld [vmem:[%s3896_s9 + $0xc8] sm:$0xff]  ;;  %v2838_v34 = vcombine.low %v413_v21, %v417_v23 }
  0xbd   : > { %v425_v31 = vld [vmem:[%s3896_s9 + $0xe0] sm:$0xff]  ;;  %v426_v33 = vld [vmem:[%s3896_s9 + $0xe8] sm:$0xff]  ;;  %v2840_v35 = vcombine.low %v414_v24, %v418_v25 }
  0xbe   : > { %v2847_v36 = vcombine.high %v421_v30, %v425_v31  ;;  %v2849_v37 = vcombine.high %v422_v32, %v426_v33  ;;  %v429_v38 = vld [vmem:[%s3896_s9 + $0x100] sm:$0xff]  ;;  %v430_v40 = vld [vmem:[%s3896_s9 + $0x108] sm:$0xff]  ;;  %v2846_v42 = vcombine.low %v421_v30, %v425_v31  ;;  %v2848_v43 = vcombine.low %v422_v32, %v426_v33 }
  0xbf   : > { %1210 = vmatpush1.bf16.msra.mxu0 %v2830_v26  ;;  %1263 = vmatpush1.bf16.msra.mxu1 %v2832_v27  ;;  %v433_v39 = vld [vmem:[%s3896_s9 + $0x120] sm:$0xff]  ;;  %v434_v41 = vld [vmem:[%s3896_s9 + $0x128] sm:$0xff] }
  0xc0   : > { %1211 = vmatprep.subr.bf16.mxu0 %v2839_v28  ;;  %1264 = vmatprep.subr.bf16.mxu1 %v2841_v29  ;;  %v2855_v44 = vcombine.high %v429_v38, %v433_v39  ;;  %v2857_v45 = vcombine.high %v430_v40, %v434_v41  ;;  %v437_v46 = vld [vmem:[%s3896_s9 + $0x140] sm:$0xff]  ;;  %v438_v48 = vld [vmem:[%s3896_s9 + $0x148] sm:$0xff]  ;;  %v2854_v50 = vcombine.low %v429_v38, %v433_v39 }
  0xc1   : > { %v441_v47 = vld [vmem:[%s3896_s9 + $0x160] sm:$0xff]  ;;  %v442_v49 = vld [vmem:[%s3896_s9 + $0x168] sm:$0xff]  ;;  %v2856_v51 = vcombine.low %v430_v40, %v434_v41 }
  0xc2   : > { %v2863_v52 = vcombine.high %v437_v46, %v441_v47  ;;  %v2865_v53 = vcombine.high %v438_v48, %v442_v49  ;;  %v445_v54 = vld [vmem:[%s3896_s9 + $0x180] sm:$0xff]  ;;  %v446_v56 = vld [vmem:[%s3896_s9 + $0x188] sm:$0xff]  ;;  %v2862_v58 = vcombine.low %v437_v46, %v441_v47  ;;  %v2864_v59 = vcombine.low %v438_v48, %v442_v49 }
  0xc3   : > { %1212 = vmatpush1.bf16.msra.mxu0 %v2838_v34  ;;  %1265 = vmatpush1.bf16.msra.mxu1 %v2840_v35  ;;  %v449_v55 = vld [vmem:[%s3896_s9 + $0x1a0] sm:$0xff]  ;;  %v450_v57 = vld [vmem:[%s3896_s9 + $0x1a8] sm:$0xff] }
  0xc4   : > { %1213 = vmatprep.subr.bf16.mxu0 %v2847_v36  ;;  %1266 = vmatprep.subr.bf16.mxu1 %v2849_v37  ;;  %v2871_v60 = vcombine.high %v445_v54, %v449_v55  ;;  %v386_v61 = vld [vmem:[#allocation2 + $0x8] sm:$0xff]  ;;  %v2873_v63 = vcombine.high %v446_v56, %v450_v57  ;;  %v453_v0 = vld [vmem:[%s3896_s9 + $0x1c0] sm:$0xff]  ;;  %v2870_v5 = vcombine.low %v445_v54, %v449_v55 }
  0xc5   : > { %v457_v1 = vld [vmem:[%s3896_s9 + $0x1e0] sm:$0xff]  ;;  %v3971_v2 = vpack.c.bf16 %v388_v62, %v386_v61  ;;  %v454_v3 = vld [vmem:[%s3896_s9 + $0x1c8] sm:$0xff]  ;;  %v2872_v6 = vcombine.low %v446_v56, %v450_v57 }
  0xc6   : > { %v458_v4 = vld [vmem:[%s3896_s9 + $0x1e8] sm:$0xff]  ;;  %v2879_v7 = vcombine.high %v453_v0, %v457_v1  ;;  %v461_v9 = vld [vmem:[%s3896_s9 + $0x200] sm:$0xff]  ;;  %v2878_v13 = vcombine.low %v453_v0, %v457_v1 }
  0xc7   : > { %1214 = vmatpush1.bf16.msra.mxu0 %v2846_v42  ;;  %1267 = vmatpush1.bf16.msra.mxu1 %v2848_v43  ;;  %v2881_v8 = vcombine.high %v454_v3, %v458_v4  ;;  %v465_v10 = vld [vmem:[%s3896_s9 + $0x220] sm:$0xff]  ;;  %v462_v11 = vld [vmem:[%s3896_s9 + $0x208] sm:$0xff]  ;;  %v2880_v14 = vcombine.low %v454_v3, %v458_v4 }
  0xc8   : > { %1215 = vmatprep.subr.bf16.mxu0 %v2855_v44  ;;  %1268 = vmatprep.subr.bf16.mxu1 %v2857_v45  ;;  %v466_v12 = vld [vmem:[%s3896_s9 + $0x228] sm:$0xff]  ;;  %v2887_v15 = vcombine.high %v461_v9, %v465_v10  ;;  %v469_v17 = vld [vmem:[%s3896_s9 + $0x240] sm:$0xff]  ;;  %v2886_v21 = vcombine.low %v461_v9, %v465_v10  ;;  %v399_v9 = vld [vmem:[%s3896_s9 + $0x10] sm:$0xff] }
  0xc9   : > { %1239 = vmatprep.mubr.bf16.mxu0 %v3971_v2  ;;  %1292 = vmatprep.mubr.bf16.mxu1 %v3971_v2  ;;  %v2889_v16 = vcombine.high %v462_v11, %v466_v12  ;;  %v473_v18 = vld [vmem:[%s3896_s9 + $0x260] sm:$0xff]  ;;  %v470_v19 = vld [vmem:[%s3896_s9 + $0x248] sm:$0xff]  ;;  %v2888_v22 = vcombine.low %v462_v11, %v466_v12  ;;  %v403_v12 = vld [vmem:[%s3896_s9 + $0x30] sm:$0xff] }
  0xca   : > { %v474_v20 = vld [vmem:[%s3896_s9 + $0x268] sm:$0xff]  ;;  %v2895_v23 = vcombine.high %v469_v17, %v473_v18  ;;  %v477_v25 = vld [vmem:[%s3896_s9 + $0x280] sm:$0xff]  ;;  %v2894_v29 = vcombine.low %v469_v17, %v473_v18  ;;  %v407_v17 = vld [vmem:[%s3896_s9 + $0x50] sm:$0xff] }
  0xcb   : > { %1216 = vmatpush1.bf16.msra.mxu0 %v2854_v50  ;;  %1269 = vmatpush1.bf16.msra.mxu1 %v2856_v51  ;;  %v2897_v24 = vcombine.high %v470_v19, %v474_v20  ;;  %v481_v26 = vld [vmem:[%s3896_s9 + $0x2a0] sm:$0xff]  ;;  %v478_v27 = vld [vmem:[%s3896_s9 + $0x288] sm:$0xff]  ;;  %v2896_v30 = vcombine.low %v470_v19, %v474_v20  ;;  %v2827_v19 = vcombine.high %v399_v9, %v403_v12  ;;  %v411_v20 = vld [vmem:[%s3896_s9 + $0x70] sm:$0xff] }
  0xcc   : > { %1217 = vmatprep.subr.bf16.mxu0 %v2863_v52  ;;  %1270 = vmatprep.subr.bf16.mxu1 %v2865_v53  ;;  %v482_v28 = vld [vmem:[%s3896_s9 + $0x2a8] sm:$0xff]  ;;  %v2903_v31 = vcombine.high %v477_v25, %v481_v26  ;;  %v485_v33 = vld [vmem:[%s3896_s9 + $0x2c0] sm:$0xff]  ;;  %v2902_v37 = vcombine.low %v477_v25, %v481_v26  ;;  %v392_v26 = vld [vmem:[#allocation2 + $0x38] sm:$0xff] }
  0xcd   : > { %v2905_v32 = vcombine.high %v478_v27, %v482_v28  ;;  %v489_v34 = vld [vmem:[%s3896_s9 + $0x2e0] sm:$0xff]  ;;  %v486_v35 = vld [vmem:[%s3896_s9 + $0x2c8] sm:$0xff]  ;;  %v2904_v38 = vcombine.low %v478_v27, %v482_v28  ;;  %v2826_v27 = vcombine.low %v399_v9, %v403_v12  ;;  %v459_v12 = vld [vmem:[%s3896_s9 + $0x1f0] sm:$0xff] }
  0xce   : > { %v490_v36 = vld [vmem:[%s3896_s9 + $0x2e8] sm:$0xff]  ;;  %v2911_v39 = vcombine.high %v485_v33, %v489_v34  ;;  %v493_v41 = vld [vmem:[%s3896_s9 + $0x300] sm:$0xff]  ;;  %v2910_v45 = vcombine.low %v485_v33, %v489_v34  ;;  %v416_v33 = vld [vmem:[%s3896_s9 + $0x98] sm:$0xff] }
  0xcf   : > { %1218 = vmatpush1.bf16.msra.mxu0 %v2862_v58  ;;  %1271 = vmatpush1.bf16.msra.mxu1 %v2864_v59  ;;  %v2913_v40 = vcombine.high %v486_v35, %v490_v36  ;;  %v497_v42 = vld [vmem:[%s3896_s9 + $0x320] sm:$0xff]  ;;  %v494_v43 = vld [vmem:[%s3896_s9 + $0x308] sm:$0xff]  ;;  %v2912_v46 = vcombine.low %v486_v35, %v490_v36  ;;  %v420_v35 = vld [vmem:[%s3896_s9 + $0xb8] sm:$0xff]  ;;  %v2834_v36 = vcombine.low %v407_v17, %v411_v20 }
  0xd0   : > { %1219 = vmatprep.subr.bf16.mxu0 %v2871_v60  ;;  %1272 = vmatprep.subr.bf16.mxu1 %v2873_v63  ;;  %v498_v44 = vld [vmem:[%s3896_s9 + $0x328] sm:$0xff]  ;;  %v2919_v47 = vcombine.high %v493_v41, %v497_v42  ;;  %v501_v48 = vld [vmem:[%s3896_s9 + $0x340] sm:$0xff]  ;;  %v2918_v53 = vcombine.low %v493_v41, %v497_v42  ;;  %v423_v41 = vld [vmem:[%s3896_s9 + $0xd0] sm:$0xff]  ;;  %v2845_v42 = vcombine.high %v416_v33, %v420_v35 }
  0xd1   : > { %v2921_v49 = vcombine.high %v494_v43, %v498_v44  ;;  %v505_v50 = vld [vmem:[%s3896_s9 + $0x360] sm:$0xff]  ;;  %v502_v51 = vld [vmem:[%s3896_s9 + $0x348] sm:$0xff]  ;;  %v2920_v54 = vcombine.low %v494_v43, %v498_v44  ;;  %v427_v43 = vld [vmem:[%s3896_s9 + $0xf0] sm:$0xff] }
  0xd2   : > { %v506_v52 = vld [vmem:[%s3896_s9 + $0x368] sm:$0xff]  ;;  %v2927_v55 = vcombine.high %v501_v48, %v505_v50  ;;  %v509_v56 = vld [vmem:[%s3896_s9 + $0x380] sm:$0xff]  ;;  %v2926_v61 = vcombine.low %v501_v48, %v505_v50  ;;  %v424_v44 = vld [vmem:[%s3896_s9 + $0xd8] sm:$0xff]  ;;  %v2844_v48 = vcombine.low %v416_v33, %v420_v35 }
  0xd3   : > { %1220 = vmatpush1.bf16.msra.mxu0 %v2870_v5  ;;  %1273 = vmatpush1.bf16.msra.mxu1 %v2872_v6  ;;  %v2929_v57 = vcombine.high %v502_v51, %v506_v52  ;;  %v513_v58 = vld [vmem:[%s3896_s9 + $0x3a0] sm:$0xff]  ;;  %v510_v59 = vld [vmem:[%s3896_s9 + $0x388] sm:$0xff]  ;;  %v2928_v62 = vcombine.low %v502_v51, %v506_v52  ;;  %v431_v50 = vld [vmem:[%s3896_s9 + $0x110] sm:$0xff] }
  0xd4   : > { %1221 = vmatprep.subr.bf16.mxu0 %v2879_v7  ;;  %1274 = vmatprep.subr.bf16.mxu1 %v2881_v8  ;;  %v514_v60 = vld [vmem:[%s3896_s9 + $0x3a8] sm:$0xff]  ;;  %v2935_v63 = vcombine.high %v509_v56, %v513_v58  ;;  %v517_v0 = vld [vmem:[%s3896_s9 + $0x3c0] sm:$0xff]  ;;  %v2934_v6 = vcombine.low %v509_v56, %v513_v58  ;;  %v435_v52 = vld [vmem:[%s3896_s9 + $0x130] sm:$0xff] }
  0xd5   : > { %v2937_v1 = vcombine.high %v510_v59, %v514_v60  ;;  %v521_v3 = vld [vmem:[%s3896_s9 + $0x3e0] sm:$0xff]  ;;  %v518_v4 = vld [vmem:[%s3896_s9 + $0x3c8] sm:$0xff]  ;;  %v2936_v7 = vcombine.low %v510_v59, %v514_v60  ;;  %v439_v58 = vld [vmem:[%s3896_s9 + $0x150] sm:$0xff] }
  0xd6   : > { %v522_v5 = vld [vmem:[%s3896_s9 + $0x3e8] sm:$0xff]  ;;  %v2943_v8 = vcombine.high %v517_v0, %v521_v3  ;;  %v385_v11 = vld [vmem:[#allocation2] sm:$0xff]  ;;  %v443_v60 = vld [vmem:[%s3896_s9 + $0x170] sm:$0xff] }
  0xd7   : > { %1222 = vmatpush1.bf16.msra.mxu0 %v2878_v13  ;;  %1275 = vmatpush1.bf16.msra.mxu1 %v2880_v14  ;;  %v2945_v10 = vcombine.high %v518_v4, %v522_v5  ;;  %v400_v13 = vld [vmem:[%s3896_s9 + $0x18] sm:$0xff]  ;;  %v2944_v18 = vcombine.low %v518_v4, %v522_v5  ;;  %v390_v25 = vld [vmem:[#allocation2 + $0x28] sm:$0xff]  ;;  %v451_v5 = vld [vmem:[%s3896_s9 + $0x1b0] sm:$0xff] }
  0xd8   : > { %1223 = vmatprep.subr.bf16.mxu0 %v2887_v15  ;;  %1276 = vmatprep.subr.bf16.mxu1 %v2889_v16  ;;  %v404_v14 = vld [vmem:[%s3896_s9 + $0x38] sm:$0xff]  ;;  %v2942_v15 = vcombine.low %v517_v0, %v521_v3  ;;  %v387_v16 = vld [vmem:[#allocation2 + $0x10] sm:$0xff]  ;;  %v4022_v34 = vpack.c.bf16 %v392_v26, %v390_v25 }
  0xd9   : > { %v2828_v28 = vcombine.low %v400_v13, %v404_v14  ;;  %v447_v3 = vld [vmem:[%s3896_s9 + $0x190] sm:$0xff] }
  0xda   : > { %v2875_v9 = vcombine.high %v447_v3, %v451_v5 }
  0xdb   : > { %1224 = vmatpush1.bf16.msra.mxu0 %v2886_v21  ;;  %1277 = vmatpush1.bf16.msra.mxu1 %v2888_v22  ;;  %v2829_v21 = vcombine.high %v400_v13, %v404_v14  ;;  %v408_v22 = vld [vmem:[%s3896_s9 + $0x58] sm:$0xff] }
  0xdc   : > { %1225 = vmatprep.subr.bf16.mxu0 %v2895_v23  ;;  %1278 = vmatprep.subr.bf16.mxu1 %v2897_v24  ;;  %v4016_v23 = vpack.c.bf16 %v387_v16, %v385_v11  ;;  %v412_v24 = vld [vmem:[%s3896_s9 + $0x78] sm:$0xff] }
  0xdd   : > { %v456_v13 = vld [vmem:[%s3896_s9 + $0x1d8] sm:$0xff] }
  0xde   : > { %v460_v14 = vld [vmem:[%s3896_s9 + $0x1f8] sm:$0xff] }
  0xdf   : > { %1226 = vmatpush1.bf16.msra.mxu0 %v2894_v29  ;;  %1279 = vmatpush1.bf16.msra.mxu1 %v2896_v30  ;;  %v2835_v29 = vcombine.high %v407_v17, %v411_v20  ;;  %v415_v30 = vld [vmem:[%s3896_s9 + $0x90] sm:$0xff]  ;;  %v2884_v25 = vcombine.low %v456_v13, %v460_v14 }
  0xe0   : > { %1227 = vmatprep.subr.bf16.mxu0 %v2903_v31  ;;  %1280 = vmatprep.subr.bf16.mxu1 %v2905_v32  ;;  %v2837_v31 = vcombine.high %v408_v22, %v412_v24  ;;  %v419_v32 = vld [vmem:[%s3896_s9 + $0xb0] sm:$0xff] }
  0xe1   : > { %v467_v20 = vld [vmem:[%s3896_s9 + $0x230] sm:$0xff] }
  0xe3   : > { %1228 = vmatpush1.bf16.msra.mxu0 %v2902_v37  ;;  %1281 = vmatpush1.bf16.msra.mxu1 %v2904_v38  ;;  %v389_v37 = vld [vmem:[#allocation2 + $0x20] sm:$0xff]  ;;  %v391_v38 = vld [vmem:[#allocation2 + $0x30] sm:$0xff] }
  0xe4   : > { %1229 = vmatprep.subr.bf16.mxu0 %v2911_v39  ;;  %1282 = vmatprep.subr.bf16.mxu1 %v2913_v40  ;;  %v2836_v39 = vcombine.low %v408_v22, %v412_v24  ;;  %v2843_v40 = vcombine.high %v415_v30, %v419_v32  ;;  %v468_v22 = vld [vmem:[%s3896_s9 + $0x238] sm:$0xff] }
  0xe7   : > { %1230 = vmatpush1.bf16.msra.mxu0 %v2910_v45  ;;  %1283 = vmatpush1.bf16.msra.mxu1 %v2912_v46  ;;  %v428_v45 = vld [vmem:[%s3896_s9 + $0xf8] sm:$0xff]  ;;  %v4032_v46 = vpack.c.bf16 %v391_v38, %v389_v37  ;;  %v479_v37 = vld [vmem:[%s3896_s9 + $0x290] sm:$0xff] }
  0xe8   : > { %1231 = vmatprep.subr.bf16.mxu0 %v2919_v47  ;;  %1284 = vmatprep.subr.bf16.mxu1 %v2921_v49  ;;  %v2842_v47 = vcombine.low %v415_v30, %v419_v32  ;;  %v2851_v49 = vcombine.high %v423_v41, %v427_v43  ;;  %v2853_v51 = vcombine.high %v424_v44, %v428_v45  ;;  %v472_v30 = vld [vmem:[%s3896_s9 + $0x258] sm:$0xff]  ;;  %v483_v38 = vld [vmem:[%s3896_s9 + $0x2b0] sm:$0xff] }
  0xe9   : > { %v2852_v56 = vcombine.low %v424_v44, %v428_v45  ;;  %v487_v45 = vld [vmem:[%s3896_s9 + $0x2d0] sm:$0xff] }
  0xeb   : > { %1232 = vmatpush1.bf16.msra.mxu0 %v2918_v53  ;;  %1285 = vmatpush1.bf16.msra.mxu1 %v2920_v54  ;;  %v432_v53 = vld [vmem:[%s3896_s9 + $0x118] sm:$0xff] }
  0xec   : > { %1233 = vmatprep.subr.bf16.mxu0 %v2927_v55  ;;  %1286 = vmatprep.subr.bf16.mxu1 %v2929_v57  ;;  %v436_v54 = vld [vmem:[%s3896_s9 + $0x138] sm:$0xff]  ;;  %v2850_v55 = vcombine.low %v423_v41, %v427_v43  ;;  %v2859_v57 = vcombine.high %v431_v50, %v435_v52  ;;  %v2907_v43 = vcombine.high %v479_v37, %v483_v38 }
  0xed   : > { %v2861_v59 = vcombine.high %v432_v53, %v436_v54  ;;  %v2860_v0 = vcombine.low %v432_v53, %v436_v54  ;;  %v495_v54 = vld [vmem:[%s3896_s9 + $0x310] sm:$0xff] }
  0xef   : > { %1234 = vmatpush1.bf16.msra.mxu0 %v2926_v61  ;;  %1287 = vmatpush1.bf16.msra.mxu1 %v2928_v62  ;;  %v440_v61 = vld [vmem:[%s3896_s9 + $0x158] sm:$0xff] }
  0xf0   : > { %1235 = vmatprep.subr.bf16.mxu0 %v2935_v63  ;;  %1288 = vmatprep.subr.bf16.mxu1 %v2937_v1  ;;  %v444_v62 = vld [vmem:[%s3896_s9 + $0x178] sm:$0xff]  ;;  %v2858_v63 = vcombine.low %v431_v50, %v435_v52  ;;  %v2867_v1 = vcombine.high %v439_v58, %v443_v60  ;;  %v2906_v50 = vcombine.low %v479_v37, %v483_v38  ;;  %v4137_v37 = vld [vmem:[%s3903_s20 + $0x64] ss:$16 sps:$4 sm:$0xff]  }
  0xf1   : > { %v2869_v4 = vcombine.high %v440_v61, %v444_v62  ;;  %v4141_v38 = vld [vmem:[%s3903_s20 + $0x6c] ss:$16 sps:$4 sm:$0xff]  }
  0xf3   : > { %1236 = vmatpush1.bf16.msra.mxu0 %v2934_v6  ;;  %1289 = vmatpush1.bf16.msra.mxu1 %v2936_v7  ;;  %v448_v6 = vld [vmem:[%s3896_s9 + $0x198] sm:$0xff] }
  0xf4   : > { %1237 = vmatprep.subr.bf16.mxu0 %v2943_v8  ;;  %1290 = vmatprep.subr.bf16.mxu1 %v2945_v10  ;;  %v452_v7 = vld [vmem:[%s3896_s9 + $0x1b8] sm:$0xff]  ;;  %v2866_v8 = vcombine.low %v439_v58, %v443_v60  ;;  %v455_v10 = vld [vmem:[%s3896_s9 + $0x1d0] sm:$0xff] }
  0xf5   : > { %v2877_v11 = vcombine.high %v448_v6, %v452_v7  ;;  %v2876_v16 = vcombine.low %v448_v6, %v452_v7  ;;  %v2883_v17 = vcombine.high %v455_v10, %v459_v12  ;;  %v2882_v24 = vcombine.low %v455_v10, %v459_v12  ;;  %v511_v7 = vld [vmem:[%s3896_s9 + $0x390] sm:$0xff] }
  0xf7   : > { %1238 = vmatpush1.bf16.msra.mxu0 %v2942_v15  ;;  %1291 = vmatpush1.bf16.msra.mxu1 %v2944_v18  ;;  %v2874_v15 = vcombine.low %v447_v3, %v451_v5  ;;  %v2885_v18 = vcombine.high %v456_v13, %v460_v14  ;;  %v519_v14 = vld [vmem:[%s3896_s9 + $0x3d0] sm:$0xff] }
  0xf8   : > { %1313 = vmatprep.subr.bf16.mxu0 %v2827_v19  ;;  %1366 = vmatprep.subr.bf16.mxu1 %v2829_v21  ;;  %v463_v19 = vld [vmem:[%s3896_s9 + $0x210] sm:$0xff]  ;;  %v464_v21 = vld [vmem:[%s3896_s9 + $0x218] sm:$0xff] }
  0xf9   : > { %v2891_v26 = vcombine.high %v463_v19, %v467_v20  ;;  %v2890_v32 = vcombine.low %v463_v19, %v467_v20  ;;  %v2892_v33 = vcombine.low %v464_v21, %v468_v22 }
  0xfa   : > { %1240 = vmatmul.mubr.bf16.vlgmr.msra.gmra.mrb[0].mxu0 %v4016_v23  ;;  %1293 = vmatmul.mubr.bf16.vlgmr.msra.gmra.mrb[0].mxu1 %v4016_v23 }
  0xfb   : > { %1314 = vmatpush1.bf16.msra.mxu0 %v2826_v27  ;;  %1367 = vmatpush1.bf16.msra.mxu1 %v2828_v28  ;;  %v2893_v27 = vcombine.high %v464_v21, %v468_v22  ;;  %v471_v28 = vld [vmem:[%s3896_s9 + $0x250] sm:$0xff] }
  0xfc   : > { %1315 = vmatprep.subr.bf16.mxu0 %v2835_v29  ;;  %1368 = vmatprep.subr.bf16.mxu1 %v2837_v31  ;;  %v475_v29 = vld [vmem:[%s3896_s9 + $0x270] sm:$0xff]  ;;  %v476_v31 = vld [vmem:[%s3896_s9 + $0x278] sm:$0xff] }
  0xfd   : > { %1249 = vmatprep.mubr.bf16.mxu0 %v4022_v34  ;;  %1302 = vmatprep.mubr.bf16.mxu1 %v4022_v34  ;;  %v2899_v35 = vcombine.high %v471_v28, %v475_v29  ;;  %v2898_v41 = vcombine.low %v471_v28, %v475_v29  ;;  %v4098_v28 = vld [vmem:[%s3903_s20 + $0x8] ss:$16 sps:$4 sm:$0xff]   ;;  %v4101_v29 = vld [vmem:[%s3903_s20 + $0x24] ss:$16 sps:$4 sm:$0xff]  }
  0xff   : > { %1316 = vmatpush1.bf16.msra.mxu0 %v2834_v36  ;;  %1369 = vmatpush1.bf16.msra.mxu1 %v2836_v39  ;;  %v2901_v36 = vcombine.high %v472_v30, %v476_v31  ;;  %v480_v39 = vld [vmem:[%s3896_s9 + $0x298] sm:$0xff] }
 0x100   : > { %1317 = vmatprep.subr.bf16.mxu0 %v2843_v40  ;;  %1370 = vmatprep.subr.bf16.mxu1 %v2845_v42  ;;  %v484_v40 = vld [vmem:[%s3896_s9 + $0x2b8] sm:$0xff]  ;;  %v2900_v42 = vcombine.low %v472_v30, %v476_v31  ;;  %v4111_v31 = vld [vmem:[%s3903_s20 + $0x20] ss:$16 sps:$4 sm:$0xff]  }
 0x101   : > { %v2909_v44 = vcombine.high %v480_v39, %v484_v40  ;;  %v4105_v30 = vld [vmem:[%s3903_s20 + $0x2c] ss:$16 sps:$4 sm:$0xff]  }
 0x102   : > { %1250 = vmatmul.mubr.bf16.gmra.mrb[4].mxu0 %v4032_v46  ;;  %1303 = vmatmul.mubr.bf16.gmra.mrb[4].mxu1 %v4032_v46 }
 0x103   : > { %1318 = vmatpush1.bf16.msra.mxu0 %v2842_v47  ;;  %1371 = vmatpush1.bf16.msra.mxu1 %v2844_v48  ;;  %v491_v47 = vld [vmem:[%s3896_s9 + $0x2f0] sm:$0xff]  ;;  %v488_v48 = vld [vmem:[%s3896_s9 + $0x2d8] sm:$0xff] }
 0x104   : > { %1319 = vmatprep.subr.bf16.mxu0 %v2851_v49  ;;  %1372 = vmatprep.subr.bf16.mxu1 %v2853_v51  ;;  %v492_v49 = vld [vmem:[%s3896_s9 + $0x2f8] sm:$0xff]  ;;  %v2908_v51 = vcombine.low %v480_v39, %v484_v40  ;;  %v2915_v52 = vcombine.high %v487_v45, %v491_v47  ;;  %v2914_v58 = vcombine.low %v487_v45, %v491_v47  ;;  %v4155_v40 = vld [vmem:[%s3903_s20 + $0x84] ss:$16 sps:$4 sm:$0xff]   ;;  %v4181_v47 = vld [vmem:[%s3903_s20 + $0xa0] ss:$16 sps:$4 sm:$0xff]  }
 0x105   : > { %1345 = vmatprep.mubr.bf16.mxu0 %v3971_v2  ;;  %1398 = vmatprep.mubr.bf16.mxu1 %v3971_v2  ;;  %v2868_v2 = vcombine.low %v440_v61, %v444_v62  ;;  %v2917_v53 = vcombine.high %v488_v48, %v492_v49  ;;  %v503_v62 = vld [vmem:[%s3896_s9 + $0x350] sm:$0xff]  ;;  %v4152_v39 = vld [vmem:[%s3903_s20 + $0x68] ss:$16 sps:$4 sm:$0xff]   ;;  %v4177_v45 = vld [vmem:[%s3903_s20 + $0xac] ss:$16 sps:$4 sm:$0xff]  }
 0x107   : > { %1320 = vmatpush1.bf16.msra.mxu0 %v2850_v55  ;;  %1373 = vmatpush1.bf16.msra.mxu1 %v2852_v56  ;;  %v499_v55 = vld [vmem:[%s3896_s9 + $0x330] sm:$0xff]  ;;  %v496_v56 = vld [vmem:[%s3896_s9 + $0x318] sm:$0xff] }
 0x108   : > { %1321 = vmatprep.subr.bf16.mxu0 %v2859_v57  ;;  %1374 = vmatprep.subr.bf16.mxu1 %v2861_v59  ;;  %v500_v57 = vld [vmem:[%s3896_s9 + $0x338] sm:$0xff]  ;;  %v2916_v59 = vcombine.low %v488_v48, %v492_v49  ;;  %v2923_v60 = vcombine.high %v495_v54, %v499_v55  ;;  %v2922_v3 = vcombine.low %v495_v54, %v499_v55  ;;  %v4189_v49 = vld [vmem:[%s3903_s20 + $0xc4] ss:$16 sps:$4 sm:$0xff]   ;;  %v4213_v55 = vld [vmem:[%s3903_s20 + $0xe0] ss:$16 sps:$4 sm:$0xff]  }
 0x109   : > { %v2925_v61 = vcombine.high %v496_v56, %v500_v57  ;;  %v4186_v48 = vld [vmem:[%s3903_s20 + $0xa8] ss:$16 sps:$4 sm:$0xff]   ;;  %v4209_v54 = vld [vmem:[%s3903_s20 + $0xec] ss:$16 sps:$4 sm:$0xff]  }
 0x10b   : > { %1322 = vmatpush1.bf16.msra.mxu0 %v2858_v63  ;;  %1375 = vmatpush1.bf16.msra.mxu1 %v2860_v0  ;;  %v507_v63 = vld [vmem:[%s3896_s9 + $0x370] sm:$0xff]  ;;  %v504_v0 = vld [vmem:[%s3896_s9 + $0x358] sm:$0xff] }
 0x10c   : > { %1323 = vmatprep.subr.bf16.mxu0 %v2867_v1  ;;  %1376 = vmatprep.subr.bf16.mxu1 %v2869_v4  ;;  %v508_v1 = vld [vmem:[%s3896_s9 + $0x378] sm:$0xff]  ;;  %v2924_v4 = vcombine.low %v496_v56, %v500_v57  ;;  %v2931_v5 = vcombine.high %v503_v62, %v507_v63  ;;  %v2930_v10 = vcombine.low %v503_v62, %v507_v63  ;;  %v4221_v57 = vld [vmem:[%s3903_s20 + $0x104] ss:$16 sps:$4 sm:$0xff]   ;;  %v4245_v63 = vld [vmem:[%s3903_s20 + $0x120] ss:$16 sps:$4 sm:$0xff]  }
 0x10d   : > { %v2933_v6 = vcombine.high %v504_v0, %v508_v1  ;;  %v4218_v56 = vld [vmem:[%s3903_s20 + $0xe8] ss:$16 sps:$4 sm:$0xff]   ;;  %v4241_v62 = vld [vmem:[%s3903_s20 + $0x12c] ss:$16 sps:$4 sm:$0xff]   ;;  %4845 = vst [vmem:[#allocation28_spill] sm:$0xff] %v4245_v63 }
 0x10e   : > { %4844 = vst [vmem:[#allocation27_spill] sm:$0xff] %v4241_v62 }
 0x10f   : > { %1324 = vmatpush1.bf16.msra.mxu0 %v2866_v8  ;;  %1377 = vmatpush1.bf16.msra.mxu1 %v2868_v2  ;;  %v515_v8 = vld [vmem:[%s3896_s9 + $0x3b0] sm:$0xff]  ;;  %v512_v2 = vld [vmem:[%s3896_s9 + $0x398] sm:$0xff] }
 0x110   : > { %1325 = vmatprep.subr.bf16.mxu0 %v2875_v9  ;;  %1378 = vmatprep.subr.bf16.mxu1 %v2877_v11  ;;  %v516_v9 = vld [vmem:[%s3896_s9 + $0x3b8] sm:$0xff]  ;;  %v2932_v11 = vcombine.low %v504_v0, %v508_v1  ;;  %v2939_v12 = vcombine.high %v511_v7, %v515_v8  ;;  %v4253_v1 = vld [vmem:[%s3903_s20 + $0x144] ss:$16 sps:$4 sm:$0xff]  }
 0x111   : > { %v2941_v13 = vcombine.high %v512_v2, %v516_v9  ;;  %v2940_v19 = vcombine.low %v512_v2, %v516_v9  ;;  %v4250_v0 = vld [vmem:[%s3903_s20 + $0x128] ss:$16 sps:$4 sm:$0xff]   ;;  %4847 = vst [vmem:[#allocation30_spill] sm:$0xff] %v4253_v1  ;;  %v4285_v9 = vld [vmem:[%s3903_s20 + $0x184] ss:$16 sps:$4 sm:$0xff]  }
 0x112   : > { %4846 = vst [vmem:[#allocation29_spill] sm:$0xff] %v4250_v0  ;;  %v4282_v2 = vld [vmem:[%s3903_s20 + $0x168] ss:$16 sps:$4 sm:$0xff]   ;;  %4855 = vst [vmem:[#allocation38_spill] sm:$0xff] %v4285_v9 }
 0x113   : > { %1326 = vmatpush1.bf16.msra.mxu0 %v2874_v15  ;;  %1379 = vmatpush1.bf16.msra.mxu1 %v2876_v16  ;;  %v523_v15 = vld [vmem:[%s3896_s9 + $0x3f0] sm:$0xff]  ;;  %v520_v16 = vld [vmem:[%s3896_s9 + $0x3d8] sm:$0xff]  ;;  %4854 = vst [vmem:[#allocation37_spill] sm:$0xff] %v4282_v2 }
 0x114   : > { %1327 = vmatprep.subr.bf16.mxu0 %v2883_v17  ;;  %1380 = vmatprep.subr.bf16.mxu1 %v2885_v18  ;;  %v524_v17 = vld [vmem:[%s3896_s9 + $0x3f8] sm:$0xff]  ;;  %v2938_v18 = vcombine.low %v511_v7, %v515_v8  ;;  %v2947_v20 = vcombine.high %v519_v14, %v523_v15  ;;  %v2946_v22 = vcombine.low %v519_v14, %v523_v15  ;;  %v4277_v8 = vld [vmem:[%s3903_s20 + $0x160] ss:$16 sps:$4 sm:$0xff]  }
 0x115   : > { %v2949_v21 = vcombine.high %v520_v16, %v524_v17  ;;  %v4273_v7 = vld [vmem:[%s3903_s20 + $0x16c] ss:$16 sps:$4 sm:$0xff]   ;;  %4853 = vst [vmem:[#allocation36_spill] sm:$0xff] %v4277_v8  ;;  %v4309_v15 = vld [vmem:[%s3903_s20 + $0x1a0] ss:$16 sps:$4 sm:$0xff]  }
 0x116   : > { %4852 = vst [vmem:[#allocation35_spill] sm:$0xff] %v4273_v7  ;;  %v4305_v14 = vld [vmem:[%s3903_s20 + $0x1ac] ss:$16 sps:$4 sm:$0xff]   ;;  %4861 = vst [vmem:[#allocation44_spill] sm:$0xff] %v4309_v15 }
 0x117   : > { %1328 = vmatpush1.bf16.msra.mxu0 %v2882_v24  ;;  %1381 = vmatpush1.bf16.msra.mxu1 %v2884_v25  ;;  %v2948_v24 = vcombine.low %v520_v16, %v524_v17  ;;  %v4088_v25 = vld [vmem:[%s3903_s20 + $0x4] ss:$16 sps:$4 sm:$0xff]   ;;  %4860 = vst [vmem:[#allocation43_spill] sm:$0xff] %v4305_v14  ;;  %v4314_v16 = vld [vmem:[%s3903_s20 + $0x1a8] ss:$16 sps:$4 sm:$0xff]  }
 0x118   : > { %1329 = vmatprep.subr.bf16.mxu0 %v2891_v26  ;;  %1382 = vmatprep.subr.bf16.mxu1 %v2893_v27  ;;  %4838 = vst [vmem:[#allocation21_spill] sm:$0xff] %v4088_v25  ;;  %v4091_v26 = vld [vmem:[%s3903_s20 + $0xc] ss:$16 sps:$4 sm:$0xff]   ;;  %v4094_v27 = vld [vmem:[%s3903_s20] ss:$16 sps:$4 sm:$0xff]   ;;  %4862 = vst [vmem:[#allocation45_spill] sm:$0xff] %v4314_v16 }
 0x119   : > { %4839 = vst [vmem:[#allocation22_spill] sm:$0xff] %v4091_v26  ;;  %v4317_v17 = vld [vmem:[%s3903_s20 + $0x1c4] ss:$16 sps:$4 sm:$0xff]  }
 0x11a   : > { %4863 = vst [vmem:[#allocation46_spill] sm:$0xff] %v4317_v17 }
 0x11b   : > { %1330 = vmatpush1.bf16.msra.mxu0 %v2890_v32  ;;  %1383 = vmatpush1.bf16.msra.mxu1 %v2892_v33  ;;  %v4116_v32 = vld [vmem:[%s3903_s20 + $0x28] ss:$16 sps:$4 sm:$0xff]   ;;  %v4119_v33 = vld [vmem:[%s3903_s20 + $0x44] ss:$16 sps:$4 sm:$0xff]  }
 0x11c   : > { %1331 = vmatprep.subr.bf16.mxu0 %v2899_v35  ;;  %1384 = vmatprep.subr.bf16.mxu1 %v2901_v36  ;;  %v4123_v35 = vld [vmem:[%s3903_s20 + $0x4c] ss:$16 sps:$4 sm:$0xff]   ;;  %v4134_v36 = vld [vmem:[%s3903_s20 + $0x48] ss:$16 sps:$4 sm:$0xff]  }
 0x11f   : > { %1332 = vmatpush1.bf16.msra.mxu0 %v2898_v41  ;;  %1385 = vmatpush1.bf16.msra.mxu1 %v2900_v42  ;;  %v4159_v41 = vld [vmem:[%s3903_s20 + $0x8c] ss:$16 sps:$4 sm:$0xff]   ;;  %v4747_v42 = vmov 0.0|0.0  }
 0x120   : > { %1333 = vmatprep.subr.bf16.mxu0 %v2907_v43  ;;  %1386 = vmatprep.subr.bf16.mxu1 %v2909_v44  ;;  %v4170_v43 = vld [vmem:[%s3903_s20 + $0x88] ss:$16 sps:$4 sm:$0xff]   ;;  %v4173_v44 = vld [vmem:[%s3903_s20 + $0xa4] ss:$16 sps:$4 sm:$0xff]  }
 0x123   : > { %1334 = vmatpush1.bf16.msra.mxu0 %v2906_v50  ;;  %1387 = vmatpush1.bf16.msra.mxu1 %v2908_v51  ;;  %v4193_v50 = vld [vmem:[%s3903_s20 + $0xcc] ss:$16 sps:$4 sm:$0xff]   ;;  %v4197_v51 = vld [vmem:[%s3903_s20 + $0xc0] ss:$16 sps:$4 sm:$0xff]  }
 0x124   : > { %1335 = vmatprep.subr.bf16.mxu0 %v2915_v52  ;;  %1388 = vmatprep.subr.bf16.mxu1 %v2917_v53  ;;  %v4202_v52 = vld [vmem:[%s3903_s20 + $0xc8] ss:$16 sps:$4 sm:$0xff]   ;;  %v4205_v53 = vld [vmem:[%s3903_s20 + $0xe4] ss:$16 sps:$4 sm:$0xff]  }
 0x127   : > { %1336 = vmatpush1.bf16.msra.mxu0 %v2914_v58  ;;  %1389 = vmatpush1.bf16.msra.mxu1 %v2916_v59  ;;  %v4225_v58 = vld [vmem:[%s3903_s20 + $0x10c] ss:$16 sps:$4 sm:$0xff]   ;;  %v4229_v59 = vld [vmem:[%s3903_s20 + $0x100] ss:$16 sps:$4 sm:$0xff]  }
 0x128   : > { %1337 = vmatprep.subr.bf16.mxu0 %v2923_v60  ;;  %1390 = vmatprep.subr.bf16.mxu1 %v2925_v61  ;;  %4840 = vst [vmem:[#allocation23_spill] sm:$0xff] %v4225_v58  ;;  %4841 = vst [vmem:[#allocation24_spill] sm:$0xff] %v4229_v59  ;;  %v4234_v60 = vld [vmem:[%s3903_s20 + $0x108] ss:$16 sps:$4 sm:$0xff]   ;;  %v4237_v61 = vld [vmem:[%s3903_s20 + $0x124] ss:$16 sps:$4 sm:$0xff]  }
 0x129   : > { %4842 = vst [vmem:[#allocation25_spill] sm:$0xff] %v4234_v60  ;;  %4843 = vst [vmem:[#allocation26_spill] sm:$0xff] %v4237_v61 }
 0x12b   : > { %1338 = vmatpush1.bf16.msra.mxu0 %v2922_v3  ;;  %1391 = vmatpush1.bf16.msra.mxu1 %v2924_v4  ;;  %v4257_v3 = vld [vmem:[%s3903_s20 + $0x14c] ss:$16 sps:$4 sm:$0xff]   ;;  %v4261_v4 = vld [vmem:[%s3903_s20 + $0x140] ss:$16 sps:$4 sm:$0xff]  }
 0x12c   : > { %1339 = vmatprep.subr.bf16.mxu0 %v2931_v5  ;;  %1392 = vmatprep.subr.bf16.mxu1 %v2933_v6  ;;  %4848 = vst [vmem:[#allocation31_spill] sm:$0xff] %v4257_v3  ;;  %4849 = vst [vmem:[#allocation32_spill] sm:$0xff] %v4261_v4  ;;  %v4266_v5 = vld [vmem:[%s3903_s20 + $0x148] ss:$16 sps:$4 sm:$0xff]   ;;  %v4269_v6 = vld [vmem:[%s3903_s20 + $0x164] ss:$16 sps:$4 sm:$0xff]  }
 0x12d   : > { %4850 = vst [vmem:[#allocation33_spill] sm:$0xff] %v4266_v5  ;;  %4851 = vst [vmem:[#allocation34_spill] sm:$0xff] %v4269_v6 }
 0x12f   : > { %1340 = vmatpush1.bf16.msra.mxu0 %v2930_v10  ;;  %1393 = vmatpush1.bf16.msra.mxu1 %v2932_v11  ;;  %v4289_v10 = vld [vmem:[%s3903_s20 + $0x18c] ss:$16 sps:$4 sm:$0xff]   ;;  %v4293_v11 = vld [vmem:[%s3903_s20 + $0x180] ss:$16 sps:$4 sm:$0xff]  }
 0x130   : > { %1341 = vmatprep.subr.bf16.mxu0 %v2939_v12  ;;  %1394 = vmatprep.subr.bf16.mxu1 %v2941_v13  ;;  %4856 = vst [vmem:[#allocation39_spill] sm:$0xff] %v4289_v10  ;;  %4857 = vst [vmem:[#allocation40_spill] sm:$0xff] %v4293_v11  ;;  %v4298_v12 = vld [vmem:[%s3903_s20 + $0x188] ss:$16 sps:$4 sm:$0xff]   ;;  %v4301_v13 = vld [vmem:[%s3903_s20 + $0x1a4] ss:$16 sps:$4 sm:$0xff]  }
 0x131   : > { %4858 = vst [vmem:[#allocation41_spill] sm:$0xff] %v4298_v12  ;;  %4859 = vst [vmem:[#allocation42_spill] sm:$0xff] %v4301_v13 }
 0x133   : > { %1342 = vmatpush1.bf16.msra.mxu0 %v2938_v18  ;;  %1395 = vmatpush1.bf16.msra.mxu1 %v2940_v19  ;;  %v4321_v18 = vld [vmem:[%s3903_s20 + $0x1cc] ss:$16 sps:$4 sm:$0xff]   ;;  %v4325_v19 = vld [vmem:[%s3903_s20 + $0x1c0] ss:$16 sps:$4 sm:$0xff]  }
 0x134   : > { %1343 = vmatprep.subr.bf16.mxu0 %v2947_v20  ;;  %1396 = vmatprep.subr.bf16.mxu1 %v2949_v21  ;;  %4864 = vst [vmem:[#allocation47_spill] sm:$0xff] %v4321_v18  ;;  %4865 = vst [vmem:[#allocation48_spill] sm:$0xff] %v4325_v19  ;;  %v4330_v20 = vld [vmem:[%s3903_s20 + $0x1c8] ss:$16 sps:$4 sm:$0xff]   ;;  %v4333_v21 = vld [vmem:[%s3903_s20 + $0x1e4] ss:$16 sps:$4 sm:$0xff]  }
 0x135   : > { %4866 = vst [vmem:[#allocation49_spill] sm:$0xff] %v4330_v20  ;;  %4867 = vst [vmem:[#allocation50_spill] sm:$0xff] %v4333_v21 }
 0x137   : > { %1344 = vmatpush1.bf16.msra.mxu0 %v2946_v22  ;;  %1397 = vmatpush1.bf16.msra.mxu1 %v2948_v24  ;;  %v4337_v22 = vld [vmem:[%s3903_s20 + $0x1ec] ss:$16 sps:$4 sm:$0xff]   ;;  %v4341_v24 = vld [vmem:[%s3903_s20 + $0x1e0] ss:$16 sps:$4 sm:$0xff]  }
 0x138   : > { %1809 = vmatprep.subr.bf16.mxu0 %v4088_v25  ;;  %1852 = vmatprep.subr.bf16.mxu1 %v4091_v26  ;;  %4868 = vst [vmem:[#allocation51_spill] sm:$0xff] %v4337_v22  ;;  %4869 = vst [vmem:[#allocation52_spill] sm:$0xff] %v4341_v24 }
 0x13a   : > { %1346 = vmatmul.mubr.bf16.vlgmr.msra.gmra.mrb[8].mxu0 %v4016_v23  ;;  %1399 = vmatmul.mubr.bf16.vlgmr.msra.gmra.mrb[8].mxu1 %v4016_v23  ;;  %v4129_v23 = vld [vmem:[%s3903_s20 + $0x40] ss:$16 sps:$4 sm:$0xff]  }
 0x13b   : > { %1810 = vmatpush1.bf16.msra.mxu0 %v4094_v27  ;;  %1853 = vmatpush1.bf16.msra.mxu1 %v4098_v28 }
 0x13c   : > { %1811 = vmatprep.subr.bf16.mxu0 %v4101_v29  ;;  %1854 = vmatprep.subr.bf16.mxu1 %v4105_v30 }
 0x13d   : > { %1355 = vmatprep.mubr.bf16.mxu0 %v4022_v34  ;;  %1408 = vmatprep.mubr.bf16.mxu1 %v4022_v34  ;;  %v4146_v34 = vld [vmem:[%s3903_s20 + $0x60] ss:$16 sps:$4 sm:$0xff]  }
 0x13f   : > { %1812 = vmatpush1.bf16.msra.mxu0 %v4111_v31  ;;  %1855 = vmatpush1.bf16.msra.mxu1 %v4116_v32 }
 0x140   : > { %1813 = vmatprep.subr.bf16.mxu0 %v4119_v33  ;;  %1856 = vmatprep.subr.bf16.mxu1 %v4123_v35 }
 0x142   : > { %1356 = vmatmul.mubr.bf16.gmra.mrb[12].mxu0 %v4032_v46  ;;  %1409 = vmatmul.mubr.bf16.gmra.mrb[12].mxu1 %v4032_v46  ;;  %v4165_v46 = vld [vmem:[%s3903_s20 + $0x80] ss:$16 sps:$4 sm:$0xff]  }
 0x143   : > { %1814 = vmatpush1.bf16.msra.mxu0 %v4129_v23  ;;  %1857 = vmatpush1.bf16.msra.mxu1 %v4134_v36 }
 0x144   : > { %1815 = vmatprep.subr.bf16.mxu0 %v4137_v37  ;;  %1858 = vmatprep.subr.bf16.mxu1 %v4141_v38 }
 0x145   : > { %1841 = vmatprep.mubr.bf16.mxu0 %v4747_v42  ;;  %1884 = vmatprep.mubr.bf16.mxu1 %v4747_v42  ;;  %v4346_v42 = vld [vmem:[%s3903_s20 + $0x1e8] ss:$16 sps:$4 sm:$0xff]  }
 0x146   : > { %4870 = vst [vmem:[#allocation53_spill] sm:$0xff] %v4346_v42 }
 0x147   : > { %1816 = vmatpush1.bf16.msra.mxu0 %v4146_v34  ;;  %1859 = vmatpush1.bf16.msra.mxu1 %v4152_v39 }
 0x148   : > { %1817 = vmatprep.subr.bf16.mxu0 %v4155_v40  ;;  %1860 = vmatprep.subr.bf16.mxu1 %v4159_v41 }
 0x14b   : > { %1818 = vmatpush1.bf16.msra.mxu0 %v4165_v46  ;;  %1861 = vmatpush1.bf16.msra.mxu1 %v4170_v43 }
 0x14c   : > { %1819 = vmatprep.subr.bf16.mxu0 %v4173_v44  ;;  %1862 = vmatprep.subr.bf16.mxu1 %v4177_v45 }
 0x14f   : > { %1820 = vmatpush1.bf16.msra.mxu0 %v4181_v47  ;;  %1863 = vmatpush1.bf16.msra.mxu1 %v4186_v48 }
 0x150   : > { %1821 = vmatprep.subr.bf16.mxu0 %v4189_v49  ;;  %1864 = vmatprep.subr.bf16.mxu1 %v4193_v50 }
 0x153   : > { %1822 = vmatpush1.bf16.msra.mxu0 %v4197_v51  ;;  %1865 = vmatpush1.bf16.msra.mxu1 %v4202_v52 }
 0x154   : > { %1823 = vmatprep.subr.bf16.mxu0 %v4205_v53  ;;  %1866 = vmatprep.subr.bf16.mxu1 %v4209_v54 }
 0x157   : > { %1824 = vmatpush1.bf16.msra.mxu0 %v4213_v55  ;;  %1867 = vmatpush1.bf16.msra.mxu1 %v4218_v56 }
 0x158   : > { %1825 = vmatprep.subr.bf16.mxu0 %v4221_v57  ;;  %1868 = vmatprep.subr.bf16.mxu1 %v4225_v58 }
 0x15b   : > { %1826 = vmatpush1.bf16.msra.mxu0 %v4229_v59  ;;  %1869 = vmatpush1.bf16.msra.mxu1 %v4234_v60 }
 0x15c   : > { %1827 = vmatprep.subr.bf16.mxu0 %v4237_v61  ;;  %1870 = vmatprep.subr.bf16.mxu1 %v4241_v62 }
 0x15f   : > { %1828 = vmatpush1.bf16.msra.mxu0 %v4245_v63  ;;  %1871 = vmatpush1.bf16.msra.mxu1 %v4250_v0 }
 0x160   : > { %1829 = vmatprep.subr.bf16.mxu0 %v4253_v1  ;;  %1872 = vmatprep.subr.bf16.mxu1 %v4257_v3 }
 0x163   : > { %1830 = vmatpush1.bf16.msra.mxu0 %v4261_v4  ;;  %1873 = vmatpush1.bf16.msra.mxu1 %v4266_v5 }
 0x164   : > { %1831 = vmatprep.subr.bf16.mxu0 %v4269_v6  ;;  %1874 = vmatprep.subr.bf16.mxu1 %v4273_v7 }
 0x167   : > { %1832 = vmatpush1.bf16.msra.mxu0 %v4277_v8  ;;  %1875 = vmatpush1.bf16.msra.mxu1 %v4282_v2 }
 0x168   : > { %1833 = vmatprep.subr.bf16.mxu0 %v4285_v9  ;;  %1876 = vmatprep.subr.bf16.mxu1 %v4289_v10 }
 0x16b   : > { %1834 = vmatpush1.bf16.msra.mxu0 %v4293_v11  ;;  %1877 = vmatpush1.bf16.msra.mxu1 %v4298_v12 }
 0x16c   : > { %1835 = vmatprep.subr.bf16.mxu0 %v4301_v13  ;;  %1878 = vmatprep.subr.bf16.mxu1 %v4305_v14 }
 0x16f   : > { %1836 = vmatpush1.bf16.msra.mxu0 %v4309_v15  ;;  %1879 = vmatpush1.bf16.msra.mxu1 %v4314_v16 }
 0x170   : > { %1837 = vmatprep.subr.bf16.mxu0 %v4317_v17  ;;  %1880 = vmatprep.subr.bf16.mxu1 %v4321_v18  ;;  %v4871_v18 = vmov 0.0|0.0  }
 0x173   : > { %1838 = vmatpush1.bf16.msra.mxu0 %v4325_v19  ;;  %1881 = vmatpush1.bf16.msra.mxu1 %v4330_v20 }
 0x174   : > { %1839 = vmatprep.subr.bf16.mxu0 %v4333_v21  ;;  %1882 = vmatprep.subr.bf16.mxu1 %v4337_v22 }
 0x177   : > { %1840 = vmatpush1.bf16.msra.mxu0 %v4341_v24  ;;  %1883 = vmatpush1.bf16.msra.mxu1 %v4346_v42 }
 0x178   : > { %1962 = vmatprep.subr.bf16.mxu0 %v4088_v25  ;;  %2005 = vmatprep.subr.bf16.mxu1 %v4091_v26 }
 0x17a   : > { %1842 = vmatmul.mubr.bf16.vlgmr.msra.gmra.mrb[16].mxu0 %v4871_v18  ;;  %1885 = vmatmul.mubr.bf16.vlgmr.msra.gmra.mrb[16].mxu1 %v4871_v18  ;;  %v4872_v18 = vld [vmem:[#allocation47_spill] sm:$0xff] }
 0x17b   : > { %1963 = vmatpush1.bf16.msra.mxu0 %v4094_v27  ;;  %2006 = vmatpush1.bf16.msra.mxu1 %v4098_v28 }
 0x17c   : > { %1964 = vmatprep.subr.bf16.mxu0 %v4101_v29  ;;  %2007 = vmatprep.subr.bf16.mxu1 %v4105_v30 }
 0x17f   : > { %1965 = vmatpush1.bf16.msra.mxu0 %v4111_v31  ;;  %2008 = vmatpush1.bf16.msra.mxu1 %v4116_v32 }
 0x180   : > { %1966 = vmatprep.subr.bf16.mxu0 %v4119_v33  ;;  %2009 = vmatprep.subr.bf16.mxu1 %v4123_v35 }
 0x183   : > { %1967 = vmatpush1.bf16.msra.mxu0 %v4129_v23  ;;  %2010 = vmatpush1.bf16.msra.mxu1 %v4134_v36 }
 0x184   : > { %1968 = vmatprep.subr.bf16.mxu0 %v4137_v37  ;;  %2011 = vmatprep.subr.bf16.mxu1 %v4141_v38 }
 0x187   : > { %1969 = vmatpush1.bf16.msra.mxu0 %v4146_v34  ;;  %2012 = vmatpush1.bf16.msra.mxu1 %v4152_v39 }
 0x188   : > { %1970 = vmatprep.subr.bf16.mxu0 %v4155_v40  ;;  %2013 = vmatprep.subr.bf16.mxu1 %v4159_v41 }
 0x18b   : > { %1971 = vmatpush1.bf16.msra.mxu0 %v4165_v46  ;;  %2014 = vmatpush1.bf16.msra.mxu1 %v4170_v43 }
 0x18c   : > { %1972 = vmatprep.subr.bf16.mxu0 %v4173_v44  ;;  %2015 = vmatprep.subr.bf16.mxu1 %v4177_v45 }
 0x18f   : > { %1973 = vmatpush1.bf16.msra.mxu0 %v4181_v47  ;;  %2016 = vmatpush1.bf16.msra.mxu1 %v4186_v48 }
 0x190   : > { %1974 = vmatprep.subr.bf16.mxu0 %v4189_v49  ;;  %2017 = vmatprep.subr.bf16.mxu1 %v4193_v50 }
 0x193   : > { %1975 = vmatpush1.bf16.msra.mxu0 %v4197_v51  ;;  %2018 = vmatpush1.bf16.msra.mxu1 %v4202_v52 }
 0x194   : > { %1976 = vmatprep.subr.bf16.mxu0 %v4205_v53  ;;  %2019 = vmatprep.subr.bf16.mxu1 %v4209_v54 }
 0x197   : > { %1977 = vmatpush1.bf16.msra.mxu0 %v4213_v55  ;;  %2020 = vmatpush1.bf16.msra.mxu1 %v4218_v56 }
 0x198   : > { %1978 = vmatprep.subr.bf16.mxu0 %v4221_v57  ;;  %2021 = vmatprep.subr.bf16.mxu1 %v4225_v58 }
 0x19b   : > { %1979 = vmatpush1.bf16.msra.mxu0 %v4229_v59  ;;  %2022 = vmatpush1.bf16.msra.mxu1 %v4234_v60 }
 0x19c   : > { %1980 = vmatprep.subr.bf16.mxu0 %v4237_v61  ;;  %2023 = vmatprep.subr.bf16.mxu1 %v4241_v62 }
 0x19f   : > { %1981 = vmatpush1.bf16.msra.mxu0 %v4245_v63  ;;  %2024 = vmatpush1.bf16.msra.mxu1 %v4250_v0 }
 0x1a0   : > { %1982 = vmatprep.subr.bf16.mxu0 %v4253_v1  ;;  %2025 = vmatprep.subr.bf16.mxu1 %v4257_v3 }
 0x1a3   : > { %1983 = vmatpush1.bf16.msra.mxu0 %v4261_v4  ;;  %2026 = vmatpush1.bf16.msra.mxu1 %v4266_v5 }
 0x1a4   : > { %1984 = vmatprep.subr.bf16.mxu0 %v4269_v6  ;;  %2027 = vmatprep.subr.bf16.mxu1 %v4273_v7 }
 0x1a7   : > { %1985 = vmatpush1.bf16.msra.mxu0 %v4277_v8  ;;  %2028 = vmatpush1.bf16.msra.mxu1 %v4282_v2 }
 0x1a8   : > { %1986 = vmatprep.subr.bf16.mxu0 %v4285_v9  ;;  %2029 = vmatprep.subr.bf16.mxu1 %v4289_v10 }
 0x1ab   : > { %1987 = vmatpush1.bf16.msra.mxu0 %v4293_v11  ;;  %2030 = vmatpush1.bf16.msra.mxu1 %v4298_v12 }
 0x1ac   : > { %1988 = vmatprep.subr.bf16.mxu0 %v4301_v13  ;;  %2031 = vmatprep.subr.bf16.mxu1 %v4305_v14 }
 0x1af   : > { %1989 = vmatpush1.bf16.msra.mxu0 %v4309_v15  ;;  %2032 = vmatpush1.bf16.msra.mxu1 %v4314_v16  ;;  %v4775_v16 = vlaneseq  ;;  %v525_v15 = vld [vmem:[%s3909_s27] sm:$0xff] }
 0x1b0   : > { %1990 = vmatprep.subr.bf16.mxu0 %v4317_v17  ;;  %2033 = vmatprep.subr.bf16.mxu1 %v4872_v18 }
 0x1b1   : > { %v528_v17 = vshrl.u32 %v4775_v16, 7 }
 0x1b3   : > { %1991 = vmatpush1.bf16.msra.mxu0 %v4325_v19  ;;  %2034 = vmatpush1.bf16.msra.mxu1 %v4330_v20  ;;  %v529_v18 = vsub.s32 0, %v528_v17  ;;  %v537_v19 = vsub.s32 2, %v528_v17  ;;  %v541_v14 = vsub.s32 3, %v528_v17  ;;  %v533_v20 = vsub.s32 1, %v528_v17 }
 0x1b4   : > { %1992 = vmatprep.subr.bf16.mxu0 %v4333_v21  ;;  %2035 = vmatprep.subr.bf16.mxu1 %v4337_v22  ;;  %v553_v5 = vsub.s32 6, %v528_v17 }
 0x1b5   : > { %v4421_v13 = vrot.slane %v525_v15, %v529_v18  ;;  %v4425_v22 = vrot.slane %v525_v15, %v537_v19 }
 0x1b6   : > { %v554_v3 = vrot.slane %v525_v15, %v553_v5 }
 0x1b7   : > { %1993 = vmatpush1.bf16.msra.mxu0 %v4341_v24  ;;  %2036 = vmatpush1.bf16.msra.mxu1 %v4346_v42 }
 0x1b8   : > { %2116 = vmatprep.subr.bf16.mxu0 %v4088_v25  ;;  %2159 = vmatprep.subr.bf16.mxu1 %v4091_v26  ;;  %v4431_v25 = vrot.slane %v525_v15, %v541_v14  ;;  %v4433_v26 = vrot.slane %v525_v15, %v533_v20 }
 0x1cd   : > { %v4423_v21 = vpop.f32.mrb[0].mxu0  ;;  %v4429_v42 = vpop.f32.mrb[0].mxu1 }
 0x1ce   : > { %v4427_v24 = vpop.f32.mrb[1].mxu0  ;;  %v4435_v12 = vpop.f32.mrb[1].mxu1 }
 0x1cf   : > { %v1245_v16 = vpop.f32.mrb[2].mxu0  ;;  %v1298_v10 = vpop.f32.mrb[2].mxu1 }
 0x1d0   : > { %v4438_v11 = vadd.f32 %v1245_v16, %v4421_v13  ;;  %v1247_v18 = vpop.f32.mrb[3].mxu0  ;;  %v4444_v19 = vadd.f32 %v1298_v10, %v4425_v22  ;;  %v1300_v2 = vpop.f32.mrb[3].mxu1 }
 0x1d1   : > { %v4441_v9 = vadd.f32 %v1247_v18, %v4433_v26  ;;  %v4447_v14 = vadd.f32 %v1300_v2, %v4431_v25 }
 0x1d2   : > { %4873 = vst [vmem:[#allocation54_spill] sm:$0xff] %v4438_v11  ;;  %4875 = vst [vmem:[#allocation56_spill] sm:$0xff] %v4444_v19 }
 0x1d3   : > { %4874 = vst [vmem:[#allocation55_spill] sm:$0xff] %v4441_v9  ;;  %4876 = vst [vmem:[#allocation57_spill] sm:$0xff] %v4447_v14 }
 0x1d5   : > { %v1251_v20 = vpop.f32.mrb[4].mxu0  ;;  %v1304_v6 = vpop.f32.mrb[4].mxu1 }
 0x1d6   : > { %v4450_v8 = vadd.f32 %v1251_v20, %v4421_v13  ;;  %v1253_v7 = vpop.f32.mrb[5].mxu0  ;;  %v4456_v18 = vadd.f32 %v1304_v6, %v4425_v22  ;;  %v1306_v9 = vpop.f32.mrb[5].mxu1  ;;  %v545_v6 = vsub.s32 4, %v528_v17 }
 0x1d7   : > { %v4453_v16 = vadd.f32 %v1253_v7, %v4433_v26  ;;  %v1255_v11 = vpop.f32.mrb[6].mxu0  ;;  %v4462_v2 = vadd.f32 %v1306_v9, %v4431_v25  ;;  %v1308_v14 = vpop.f32.mrb[6].mxu1 }
 0x1d8   : > { %4877 = vst [vmem:[#allocation58_spill] sm:$0xff] %v4450_v8  ;;  %4879 = vst [vmem:[#allocation60_spill] sm:$0xff] %v4456_v18  ;;  %v4459_v10 = vadd.f32 %v1255_v11, %v4421_v13  ;;  %v1257_v19 = vpop.f32.mrb[7].mxu0  ;;  %v4468_v8 = vadd.f32 %v1308_v14, %v4425_v22  ;;  %v1310_v7 = vpop.f32.mrb[7].mxu1  ;;  %v549_v18 = vsub.s32 5, %v528_v17  ;;  %v557_v11 = vsub.s32 7, %v528_v17 }
 0x1d9   : > { %4878 = vst [vmem:[#allocation59_spill] sm:$0xff] %v4453_v16  ;;  %4881 = vst [vmem:[#allocation62_spill] sm:$0xff] %v4462_v2  ;;  %v4465_v20 = vadd.f32 %v1257_v19, %v4433_v26  ;;  %v4471_v16 = vadd.f32 %v1310_v7, %v4431_v25 }
 0x1da   : > { %4880 = vst [vmem:[#allocation61_spill] sm:$0xff] %v4459_v10  ;;  %4883 = vst [vmem:[#allocation64_spill] sm:$0xff] %v4468_v8  ;;  %v546_v10 = vrot.slane %v525_v15, %v545_v6  ;;  %v550_v4 = vrot.slane %v525_v15, %v549_v18  ;;  %v558_v9 = vrot.slane %v525_v15, %v557_v11 }
 0x1db   : > { %4882 = vst [vmem:[#allocation63_spill] sm:$0xff] %v4465_v20  ;;  %4884 = vst [vmem:[#allocation65_spill] sm:$0xff] %v4471_v16 }
 0x20d   : > { %v1347_v2 = vpop.f32.mrb[8].mxu0  ;;  %v1400_v20 = vpop.f32.mrb[8].mxu1 }
 0x20e   : > { %v4473_v1 = vadd.f32 %v1347_v2, %v546_v10  ;;  %v1349_v19 = vpop.f32.mrb[9].mxu0  ;;  %v4477_v8 = vadd.f32 %v1400_v20, %v554_v3  ;;  %v1402_v7 = vpop.f32.mrb[9].mxu1 }
 0x20f   : > { %v4475_v0 = vadd.f32 %v1349_v19, %v550_v4  ;;  %v1351_v14 = vpop.f32.mrb[10].mxu0  ;;  %v4481_v62 = vadd.f32 %v1402_v7, %v558_v9  ;;  %v1404_v17 = vpop.f32.mrb[10].mxu1 }
 0x210   : > { %4885 = vst [vmem:[#allocation66_spill] sm:$0xff] %v4473_v1  ;;  %4887 = vst [vmem:[#allocation68_spill] sm:$0xff] %v4477_v8  ;;  %v4479_v16 = vadd.f32 %v1351_v14, %v546_v10  ;;  %v1353_v63 = vpop.f32.mrb[11].mxu0  ;;  %v4485_v5 = vadd.f32 %v1404_v17, %v554_v3  ;;  %v1406_v15 = vpop.f32.mrb[11].mxu1 }
 0x211   : > { %4886 = vst [vmem:[#allocation67_spill] sm:$0xff] %v4475_v0  ;;  %4889 = vst [vmem:[#allocation70_spill] sm:$0xff] %v4481_v62  ;;  %v4483_v18 = vadd.f32 %v1353_v63, %v550_v4  ;;  %v4487_v2 = vadd.f32 %v1406_v15, %v558_v9  ;;  %v1242_v15 = vadd.f32 %v4423_v21, %v4421_v13 }
 0x212   : > { %4888 = vst [vmem:[#allocation69_spill] sm:$0xff] %v4479_v16  ;;  %4891 = vst [vmem:[#allocation72_spill] sm:$0xff] %v4485_v5 }
 0x213   : > { %4890 = vst [vmem:[#allocation71_spill] sm:$0xff] %v4483_v18  ;;  %4892 = vst [vmem:[#allocation73_spill] sm:$0xff] %v4487_v2  ;;  %v1295_v2 = vadd.f32 %v4429_v42, %v4425_v22 }
 0x215   : > { %v1357_v6 = vpop.f32.mrb[12].mxu0  ;;  %v1410_v20 = vpop.f32.mrb[12].mxu1 }
 0x216   : > { %v4489_v11 = vadd.f32 %v1357_v6, %v546_v10  ;;  %v1359_v19 = vpop.f32.mrb[13].mxu0  ;;  %v4493_v8 = vadd.f32 %v1410_v20, %v554_v3  ;;  %v1412_v7 = vpop.f32.mrb[13].mxu1  ;;  %v1244_v6 = vadd.f32 %v4427_v24, %v4433_v26  ;;  %v1297_v20 = vadd.f32 %v4435_v12, %v4431_v25 }
 0x217   : > { %v4491_v0 = vadd.f32 %v1359_v19, %v550_v4  ;;  %v1361_v14 = vpop.f32.mrb[14].mxu0  ;;  %v4495_v1 = vadd.f32 %v1412_v7, %v558_v9  ;;  %v1414_v63 = vpop.f32.mrb[14].mxu1 }
 0x218   : > { %4893 = vst [vmem:[#allocation74_spill] sm:$0xff] %v4489_v11  ;;  %4895 = vst [vmem:[#allocation76_spill] sm:$0xff] %v4493_v8  ;;  %v1363_v62 = vpop.f32.mrb[15].mxu0  ;;  %v1416_v17 = vpop.f32.mrb[15].mxu1  ;;  %v1415_v19 = vadd.f32 %v1414_v63, %v554_v3  ;;  %v1362_v5 = vadd.f32 %v1361_v14, %v546_v10 }
 0x219   : > { %4894 = vst [vmem:[#allocation75_spill] sm:$0xff] %v4491_v0  ;;  %4896 = vst [vmem:[#allocation77_spill] sm:$0xff] %v4495_v1  ;;  %v1417_v16 = vadd.f32 %v1416_v17, %v558_v9  ;;  %v1364_v8 = vadd.f32 %v1363_v62, %v550_v4 }
 0x24d   : > { %v1843_v18 = vpop.f32.mrb[16].mxu0  ;;  %v1886_v1 = vpop.f32.mrb[16].mxu1 }
 0x24e   : > { %v1895_v7 = vadd.f32 %v1843_v18, %v1242_v15  ;;  %v1845_v0 = vpop.f32.mrb[17].mxu0  ;;  %v1897_v11 = vadd.f32 %v1886_v1, %v1295_v2  ;;  %v1888_v13 = vpop.f32.mrb[17].mxu1 }
 0x24f   : > { %v1896_v61 = vadd.f32 %v1845_v0, %v1244_v6  ;;  %v1847_v21 = vpop.f32.mrb[18].mxu0  ;;  %v1898_v26 = vadd.f32 %v1888_v13, %v1297_v20  ;;  %v1890_v42 = vpop.f32.mrb[18].mxu1 }
 0x250   : > { %v3014_v60 = vmul.f32 -1.442695, %v1895_v7  ;;  %v1899_v24 = vadd.f32 %v1847_v21, %v1362_v5  ;;  %v1849_v59 = vpop.f32.mrb[19].mxu0  ;;  %v1901_v63 = vadd.f32 %v1890_v42, %v1415_v19  ;;  %v1892_v58 = vpop.f32.mrb[19].mxu1 }
 0x251   : > { %v3015_v3 = vmul.f32 -1.442695, %v1896_v61  ;;  %v1900_v22 = vadd.f32 %v1849_v59, %v1364_v8  ;;  %v1902_v12 = vadd.f32 %v1892_v58, %v1417_v16  ;;  %v3016_v62 = vmul.f32 -1.442695, %v1898_v26 }
 0x252   : > { %3266 = vpow2.f32 %v3014_v60  ;;  %v3017_v25 = vmul.f32 -1.442695, %v1899_v24 }
 0x253   : > { %3268 = vpow2.f32 %v3015_v3  ;;  %v3018_v10 = vmul.f32 -1.442695, %v1900_v22  ;;  %v3019_v0 = vmul.f32 -1.442695, %v1902_v12 }
 0x254   : > { %3270 = vpow2.f32 %v3017_v25 }
 0x255   : > { %3272 = vpow2.f32 %v3018_v10  ;;  %v4814_v10 = vmov 0.0  }
 0x256   : > { %3274 = vtanh.f32 %v1897_v11 }
 0x257   : > { %3276 = vpow2.f32 %v3016_v62 }
 0x258   : > { %3278 = vpow2.f32 %v3019_v0 }
 0x25c   : > { %v3267_v1 = vpop.eup %3266 }
 0x25d   : > { %v3269_v4 = vpop.eup %3268  ;;  %v1906_v9 = vadd.f32 1.0, %v3267_v1  ;;  %v4897_v1 = vld [vmem:[#allocation23_spill] sm:$0xff] }
 0x25e   : > { %v1912_v18 = vadd.f32 1.0, %v3269_v4  ;;  %v3271_v61 = vpop.eup %3270  ;;  %v4898_v4 = vld [vmem:[#allocation24_spill] sm:$0xff] }
 0x25f   : > { %3280 = vrcp.f32 %v1906_v9  ;;  %v3273_v59 = vpop.eup %3272  ;;  %v1930_v60 = vadd.f32 1.0, %v3271_v61  ;;  %v4899_v9 = vld [vmem:[#allocation25_spill] sm:$0xff]  ;;  %v4901_v61 = vld [vmem:[#allocation27_spill] sm:$0xff] }
 0x260   : > { %3282 = vrcp.f32 %v1912_v18  ;;  %v1936_v8 = vadd.f32 1.0, %v3273_v59  ;;  %v3275_v58 = vpop.eup %3274  ;;  %v4900_v18 = vld [vmem:[#allocation26_spill] sm:$0xff]  ;;  %v4902_v59 = vld [vmem:[#allocation28_spill] sm:$0xff] }
 0x261   : > { %3284 = vtanh.f32 %v1901_v63  ;;  %v3277_v16 = vpop.eup %3276 }
 0x262   : > { %3286 = vrcp.f32 %v1930_v60  ;;  %v3279_v5 = vpop.eup %3278  ;;  %v1919_v17 = vadd.f32 1.0, %v3277_v16  ;;  %v4903_v60 = vld [vmem:[#allocation29_spill] sm:$0xff]  ;;  %v4906_v16 = vld [vmem:[#allocation32_spill] sm:$0xff] }
 0x263   : > { %3288 = vrcp.f32 %v1936_v8  ;;  %v1943_v21 = vadd.f32 1.0, %v3279_v5  ;;  %v4904_v8 = vld [vmem:[#allocation30_spill] sm:$0xff]  ;;  %v4907_v5 = vld [vmem:[#allocation33_spill] sm:$0xff] }
 0x264   : > { %3290 = vrcp.f32 %v1919_v17  ;;  %v4911_v17 = vld [vmem:[#allocation37_spill] sm:$0xff] }
 0x269   : > { %v3281_v2 = vpop.eup %3280 }
 0x26a   : > { %v3283_v14 = vpop.eup %3282  ;;  %v1923_v11 = vmul.f32 %v3281_v2, %v3275_v58  ;;  %v4905_v58 = vld [vmem:[#allocation31_spill] sm:$0xff]  ;;  %v4908_v2 = vld [vmem:[#allocation34_spill] sm:$0xff] }
 0x26b   : > { %v3285_v15 = vpop.eup %3284  ;;  %v1922_v6 = vmul.f32 0.0, %v3283_v14  ;;  %v4909_v14 = vld [vmem:[#allocation35_spill] sm:$0xff] }
 0x26c   : > { %v3287_v19 = vpop.eup %3286 }
 0x26d   : > { %v3289_v20 = vpop.eup %3288  ;;  %v4505_v7 = vadd.f32 %v1923_v11, %v1922_v6  ;;  %v1947_v13 = vmul.f32 %v3287_v19, %v3285_v15  ;;  %v4910_v11 = vld [vmem:[#allocation36_spill] sm:$0xff]  ;;  %v4912_v15 = vld [vmem:[#allocation38_spill] sm:$0xff]  ;;  %v4913_v6 = vld [vmem:[#allocation39_spill] sm:$0xff] }
 0x26e   : > { %v1946_v26 = vmul.f32 0.0, %v3289_v20  ;;  %v3291_v42 = vpop.eup %3290  ;;  %v4914_v19 = vld [vmem:[#allocation40_spill] sm:$0xff]  ;;  %v4915_v20 = vld [vmem:[#allocation41_spill] sm:$0xff] }
 0x26f   : > { %3292 = vtanh.f32 %v4505_v7 }
 0x270   : > { %v4508_v24 = vadd.f32 %v1947_v13, %v1946_v26  ;;  %3294 = vrcp.f32 %v1943_v21  ;;  %v4916_v13 = vld [vmem:[#allocation42_spill] sm:$0xff]  ;;  %v4917_v21 = vld [vmem:[#allocation43_spill] sm:$0xff]  ;;  %v4918_v26 = vld [vmem:[#allocation44_spill] sm:$0xff] }
 0x272   : > { %3296 = vtanh.f32 %v4508_v24 }
 0x279   : > { %v3293_v3 = vpop.eup %3292 }
 0x27a   : > { %v1926_v22 = vmul.f32 %v3293_v3, %v3291_v42  ;;  %v3295_v63 = vpop.eup %3294  ;;  %v4919_v42 = vld [vmem:[#allocation45_spill] sm:$0xff]  ;;  %v4920_v3 = vld [vmem:[#allocation46_spill] sm:$0xff] }
 0x27c   : > { %v3297_v25 = vpop.eup %3296  ;;  %1953 = vst [vmem:[#allocation3] sm:$0xff] %v1926_v22  ;;  %2422 = vst [vmem:[#allocation2] sm:$0xff] %v1926_v22  ;;  %v1960_v0 = vpack.c.bf16 %v4814_v10, %v1926_v22  ;;  %v4921_v22 = vld [vmem:[#allocation47_spill] sm:$0xff] }
 0x27d   : > { %v1950_v12 = vmul.f32 %v3297_v25, %v3295_v63  ;;  %v4922_v63 = vld [vmem:[#allocation48_spill] sm:$0xff]  ;;  %v4923_v25 = vld [vmem:[#allocation49_spill] sm:$0xff] }
 0x27f   : > { %1955 = vst [vmem:[#allocation3 + $0x38] sm:$0xff] %v1950_v12  ;;  %v1961_v62 = vpack.c.bf16 %v1950_v12, %v4814_v10  ;;  %2429 = vst [vmem:[#allocation2 + $0x38] sm:$0xff] %v1950_v12  ;;  %v4924_v12 = vld [vmem:[#allocation50_spill] sm:$0xff]  ;;  %v4927_v10 = vld [vmem:[#allocation53_spill] sm:$0xff] }
 0x281   : > { %1994 = vmatprep.mubr.bf16.mxu0 %v1961_v62  ;;  %2037 = vmatprep.mubr.bf16.mxu1 %v1961_v62  ;;  %v4925_v62 = vld [vmem:[#allocation51_spill] sm:$0xff] }
 0x282   : > { %1995 = vmatmul.mubr.bf16.vlgmr.msra.gmra.mrb[20].mxu0 %v1960_v0  ;;  %2038 = vmatmul.mubr.bf16.vlgmr.msra.gmra.mrb[20].mxu1 %v1960_v0  ;;  %v4926_v0 = vld [vmem:[#allocation52_spill] sm:$0xff] }
 0x283   : > { %2117 = vmatpush1.bf16.msra.mxu0 %v4094_v27  ;;  %2160 = vmatpush1.bf16.msra.mxu1 %v4098_v28 }
 0x284   : > { %2118 = vmatprep.subr.bf16.mxu0 %v4101_v29  ;;  %2161 = vmatprep.subr.bf16.mxu1 %v4105_v30 }
 0x287   : > { %2119 = vmatpush1.bf16.msra.mxu0 %v4111_v31  ;;  %2162 = vmatpush1.bf16.msra.mxu1 %v4116_v32 }
 0x288   : > { %2120 = vmatprep.subr.bf16.mxu0 %v4119_v33  ;;  %2163 = vmatprep.subr.bf16.mxu1 %v4123_v35 }
 0x28b   : > { %2121 = vmatpush1.bf16.msra.mxu0 %v4129_v23  ;;  %2164 = vmatpush1.bf16.msra.mxu1 %v4134_v36 }
 0x28c   : > { %2122 = vmatprep.subr.bf16.mxu0 %v4137_v37  ;;  %2165 = vmatprep.subr.bf16.mxu1 %v4141_v38 }
 0x28f   : > { %2123 = vmatpush1.bf16.msra.mxu0 %v4146_v34  ;;  %2166 = vmatpush1.bf16.msra.mxu1 %v4152_v39 }
 0x290   : > { %2124 = vmatprep.subr.bf16.mxu0 %v4155_v40  ;;  %2167 = vmatprep.subr.bf16.mxu1 %v4159_v41 }
 0x293   : > { %2125 = vmatpush1.bf16.msra.mxu0 %v4165_v46  ;;  %2168 = vmatpush1.bf16.msra.mxu1 %v4170_v43 }
 0x294   : > { %2126 = vmatprep.subr.bf16.mxu0 %v4173_v44  ;;  %2169 = vmatprep.subr.bf16.mxu1 %v4177_v45 }
 0x297   : > { %2127 = vmatpush1.bf16.msra.mxu0 %v4181_v47  ;;  %2170 = vmatpush1.bf16.msra.mxu1 %v4186_v48 }
 0x298   : > { %2128 = vmatprep.subr.bf16.mxu0 %v4189_v49  ;;  %2171 = vmatprep.subr.bf16.mxu1 %v4193_v50 }
 0x29b   : > { %2129 = vmatpush1.bf16.msra.mxu0 %v4197_v51  ;;  %2172 = vmatpush1.bf16.msra.mxu1 %v4202_v52 }
 0x29c   : > { %2130 = vmatprep.subr.bf16.mxu0 %v4205_v53  ;;  %2173 = vmatprep.subr.bf16.mxu1 %v4209_v54 }
 0x29f   : > { %2131 = vmatpush1.bf16.msra.mxu0 %v4213_v55  ;;  %2174 = vmatpush1.bf16.msra.mxu1 %v4218_v56 }
 0x2a0   : > { %2132 = vmatprep.subr.bf16.mxu0 %v4221_v57  ;;  %2175 = vmatprep.subr.bf16.mxu1 %v4897_v1 }
 0x2a3   : > { %2133 = vmatpush1.bf16.msra.mxu0 %v4898_v4  ;;  %2176 = vmatpush1.bf16.msra.mxu1 %v4899_v9 }
 0x2a4   : > { %2134 = vmatprep.subr.bf16.mxu0 %v4900_v18  ;;  %2177 = vmatprep.subr.bf16.mxu1 %v4901_v61 }
 0x2a7   : > { %2135 = vmatpush1.bf16.msra.mxu0 %v4902_v59  ;;  %2178 = vmatpush1.bf16.msra.mxu1 %v4903_v60 }
 0x2a8   : > { %2136 = vmatprep.subr.bf16.mxu0 %v4904_v8  ;;  %2179 = vmatprep.subr.bf16.mxu1 %v4905_v58  ;;  %v4936_v58 = vld [vmem:[#allocation75_spill] sm:$0xff] }
 0x2ab   : > { %2137 = vmatpush1.bf16.msra.mxu0 %v4906_v16  ;;  %2180 = vmatpush1.bf16.msra.mxu1 %v4907_v5 }
 0x2ac   : > { %2138 = vmatprep.subr.bf16.mxu0 %v4908_v2  ;;  %2181 = vmatprep.subr.bf16.mxu1 %v4909_v14 }
 0x2af   : > { %2139 = vmatpush1.bf16.msra.mxu0 %v4910_v11  ;;  %2182 = vmatpush1.bf16.msra.mxu1 %v4911_v17 }
 0x2b0   : > { %2140 = vmatprep.subr.bf16.mxu0 %v4912_v15  ;;  %2183 = vmatprep.subr.bf16.mxu1 %v4913_v6  ;;  %v4932_v6 = vld [vmem:[#allocation55_spill] sm:$0xff]  ;;  %v4933_v15 = vld [vmem:[#allocation57_spill] sm:$0xff] }
 0x2b3   : > { %2141 = vmatpush1.bf16.msra.mxu0 %v4914_v19  ;;  %2184 = vmatpush1.bf16.msra.mxu1 %v4915_v20  ;;  %v4931_v20 = vld [vmem:[#allocation56_spill] sm:$0xff] }
 0x2b4   : > { %2142 = vmatprep.subr.bf16.mxu0 %v4916_v13  ;;  %2185 = vmatprep.subr.bf16.mxu1 %v4917_v21  ;;  %v4928_v21 = vld [vmem:[#allocation21_spill] sm:$0xff]  ;;  %v4930_v13 = vld [vmem:[#allocation54_spill] sm:$0xff] }
 0x2b7   : > { %2143 = vmatpush1.bf16.msra.mxu0 %v4918_v26  ;;  %2186 = vmatpush1.bf16.msra.mxu1 %v4919_v42  ;;  %v4929_v26 = vld [vmem:[#allocation22_spill] sm:$0xff] }
 0x2b8   : > { %2144 = vmatprep.subr.bf16.mxu0 %v4920_v3  ;;  %2187 = vmatprep.subr.bf16.mxu1 %v4921_v22 }
 0x2bb   : > { %2145 = vmatpush1.bf16.msra.mxu0 %v4922_v63  ;;  %2188 = vmatpush1.bf16.msra.mxu1 %v4923_v25 }
 0x2bc   : > { %2146 = vmatprep.subr.bf16.mxu0 %v4924_v12  ;;  %2189 = vmatprep.subr.bf16.mxu1 %v4925_v62 }
 0x2bf   : > { %2147 = vmatpush1.bf16.msra.mxu0 %v4926_v0  ;;  %2190 = vmatpush1.bf16.msra.mxu1 %v4927_v10  ;;  %v4934_v10 = vld [vmem:[#allocation74_spill] sm:$0xff] }
 0x2c0   : > { %2268 = vmatprep.subr.bf16.mxu0 %v4928_v21  ;;  %2311 = vmatprep.subr.bf16.mxu1 %v4929_v26  ;;  %v4935_v21 = vld [vmem:[#allocation76_spill] sm:$0xff] }
 0x355   : > { %v1996_v42 = vpop.f32.mrb[20].mxu0  ;;  %v2039_v3 = vpop.f32.mrb[20].mxu1 }
 0x356   : > { %v2048_v22 = vadd.f32 %v1996_v42, %v4930_v13  ;;  %v2050_v63 = vadd.f32 %v2039_v3, %v4931_v20  ;;  %v1998_v19 = vpop.f32.mrb[21].mxu0  ;;  %v2041_v25 = vpop.f32.mrb[21].mxu1  ;;  %v4937_v42 = vld [vmem:[#allocation77_spill] sm:$0xff] }
 0x357   : > { %v2049_v12 = vadd.f32 %v1998_v19, %v4932_v6  ;;  %v2051_v62 = vadd.f32 %v2041_v25, %v4933_v15  ;;  %v2000_v17 = vpop.f32.mrb[22].mxu0  ;;  %v2043_v0 = vpop.f32.mrb[22].mxu1 }
 0x358   : > { %v3020_v11 = vmul.f32 -1.442695, %v2048_v22  ;;  %v2052_v14 = vadd.f32 %v2000_v17, %v4934_v10  ;;  %v2054_v2 = vadd.f32 %v2043_v0, %v4935_v21  ;;  %v2002_v26 = vpop.f32.mrb[23].mxu0  ;;  %v2045_v5 = vpop.f32.mrb[23].mxu1 }
 0x359   : > { %v3021_v16 = vmul.f32 -1.442695, %v2049_v12  ;;  %v2053_v13 = vadd.f32 %v2002_v26, %v4936_v58  ;;  %v2055_v20 = vadd.f32 %v2045_v5, %v4937_v42  ;;  %v3022_v15 = vmul.f32 -1.442695, %v2051_v62 }
 0x35a   : > { %3298 = vpow2.f32 %v3020_v11  ;;  %v3023_v3 = vmul.f32 -1.442695, %v2052_v14 }
 0x35b   : > { %3300 = vpow2.f32 %v3021_v16  ;;  %v3024_v6 = vmul.f32 -1.442695, %v2053_v13  ;;  %v3025_v17 = vmul.f32 -1.442695, %v2055_v20 }
 0x35c   : > { %3302 = vpow2.f32 %v3023_v3 }
 0x35d   : > { %3304 = vpow2.f32 %v3024_v6 }
 0x35e   : > { %3306 = vtanh.f32 %v2050_v63 }
 0x35f   : > { %3308 = vpow2.f32 %v3022_v15 }
 0x360   : > { %3310 = vtanh.f32 %v2054_v2 }
 0x364   : > { %v3299_v19 = vpop.eup %3298 }
 0x365   : > { %v3301_v22 = vpop.eup %3300  ;;  %v2059_v10 = vadd.f32 1.0, %v3299_v19 }
 0x366   : > { %v2065_v25 = vadd.f32 1.0, %v3301_v22  ;;  %v3303_v12 = vpop.eup %3302 }
 0x367   : > { %3312 = vrcp.f32 %v2059_v10  ;;  %v2083_v58 = vadd.f32 1.0, %v3303_v12  ;;  %v3305_v5 = vpop.eup %3304 }
 0x368   : > { %3314 = vrcp.f32 %v2065_v25  ;;  %v2089_v16 = vadd.f32 1.0, %v3305_v5  ;;  %v3307_v14 = vpop.eup %3306  ;;  %v4938_v5 = vmov 0.0  }
 0x369   : > { %3316 = vpow2.f32 %v3025_v17  ;;  %v3309_v11 = vpop.eup %3308 }
 0x36a   : > { %3318 = vrcp.f32 %v2083_v58  ;;  %v3311_v62 = vpop.eup %3310  ;;  %v2072_v26 = vadd.f32 1.0, %v3309_v11  ;;  %v4967_v11 = vld [vmem:[#allocation72_spill] sm:$0xff] }
 0x36b   : > { %3320 = vrcp.f32 %v2089_v16 }
 0x36c   : > { %3322 = vrcp.f32 %v2072_v26  ;;  %v4968_v26 = vld [vmem:[#allocation71_spill] sm:$0xff] }
 0x371   : > { %v3313_v0 = vpop.eup %3312 }
 0x372   : > { %v3315_v63 = vpop.eup %3314  ;;  %v2076_v21 = vmul.f32 %v3313_v0, %v3307_v14 }
 0x373   : > { %v3317_v13 = vpop.eup %3316  ;;  %v2075_v42 = vmul.f32 %v3315_v63, %v4505_v7 }
 0x374   : > { %v3319_v2 = vpop.eup %3318  ;;  %v2096_v15 = vadd.f32 1.0, %v3317_v13 }
 0x375   : > { %v4586_v20 = vadd.f32 %v2076_v21, %v2075_v42  ;;  %v2100_v3 = vmul.f32 %v3319_v2, %v3311_v62  ;;  %v3321_v6 = vpop.eup %3320  ;;  %v4969_v42 = vld [vmem:[#allocation73_spill] sm:$0xff] }
 0x376   : > { %v2099_v19 = vmul.f32 %v3321_v6, %v4508_v24  ;;  %v3323_v10 = vpop.eup %3322  ;;  %v4964_v24 = vld [vmem:[#allocation59_spill] sm:$0xff] }
 0x377   : > { %3324 = vtanh.f32 %v4586_v20 }
 0x378   : > { %v4590_v22 = vadd.f32 %v2100_v3, %v2099_v19  ;;  %3326 = vrcp.f32 %v2096_v15 }
 0x37a   : > { %3328 = vtanh.f32 %v4590_v22 }
 0x381   : > { %v3325_v17 = vpop.eup %3324 }
 0x382   : > { %v2079_v25 = vmul.f32 %v3325_v17, %v3323_v10  ;;  %v3327_v7 = vpop.eup %3326 }
 0x384   : > { %2107 = vst [vmem:[#allocation3 + $0x10] sm:$0xff] %v2079_v25  ;;  %2424 = vst [vmem:[#allocation2 + $0x10] sm:$0xff] %v2079_v25  ;;  %v3329_v12 = vpop.eup %3328  ;;  %v2114_v14 = vpack.c.bf16 %v4938_v5, %v2079_v25 }
 0x385   : > { %v2103_v58 = vmul.f32 %v3329_v12, %v3327_v7 }
 0x387   : > { %2109 = vst [vmem:[#allocation3 + $0x28] sm:$0xff] %v2103_v58  ;;  %v2115_v16 = vpack.c.bf16 %v2103_v58, %v4938_v5  ;;  %2427 = vst [vmem:[#allocation2 + $0x28] sm:$0xff] %v2103_v58 }
 0x389   : > { %2148 = vmatprep.mubr.bf16.mxu0 %v2115_v16  ;;  %2191 = vmatprep.mubr.bf16.mxu1 %v2115_v16 }
 0x38a   : > { %2149 = vmatmul.mubr.bf16.vlgmr.msra.gmra.mrb[24].mxu0 %v2114_v14  ;;  %2192 = vmatmul.mubr.bf16.vlgmr.msra.gmra.mrb[24].mxu1 %v2114_v14 }
 0x38b   : > { %2269 = vmatpush1.bf16.msra.mxu0 %v4094_v27  ;;  %2312 = vmatpush1.bf16.msra.mxu1 %v4098_v28  ;;  %v4939_v27 = vld [vmem:[#allocation31_spill] sm:$0xff]  ;;  %v4940_v28 = vld [vmem:[#allocation32_spill] sm:$0xff] }
 0x38c   : > { %2270 = vmatprep.subr.bf16.mxu0 %v4101_v29  ;;  %2313 = vmatprep.subr.bf16.mxu1 %v4105_v30  ;;  %v4941_v29 = vld [vmem:[#allocation33_spill] sm:$0xff]  ;;  %v4942_v30 = vld [vmem:[#allocation34_spill] sm:$0xff] }
 0x38f   : > { %2271 = vmatpush1.bf16.msra.mxu0 %v4111_v31  ;;  %2314 = vmatpush1.bf16.msra.mxu1 %v4116_v32  ;;  %v4943_v31 = vld [vmem:[#allocation35_spill] sm:$0xff]  ;;  %v4944_v32 = vld [vmem:[#allocation36_spill] sm:$0xff] }
 0x390   : > { %2272 = vmatprep.subr.bf16.mxu0 %v4119_v33  ;;  %2315 = vmatprep.subr.bf16.mxu1 %v4123_v35  ;;  %v4945_v33 = vld [vmem:[#allocation37_spill] sm:$0xff]  ;;  %v4946_v35 = vld [vmem:[#allocation38_spill] sm:$0xff] }
 0x393   : > { %2273 = vmatpush1.bf16.msra.mxu0 %v4129_v23  ;;  %2316 = vmatpush1.bf16.msra.mxu1 %v4134_v36  ;;  %v4947_v23 = vld [vmem:[#allocation39_spill] sm:$0xff]  ;;  %v4948_v36 = vld [vmem:[#allocation40_spill] sm:$0xff] }
 0x394   : > { %2274 = vmatprep.subr.bf16.mxu0 %v4137_v37  ;;  %2317 = vmatprep.subr.bf16.mxu1 %v4141_v38  ;;  %v4949_v37 = vld [vmem:[#allocation41_spill] sm:$0xff]  ;;  %v4950_v38 = vld [vmem:[#allocation42_spill] sm:$0xff] }
 0x397   : > { %2275 = vmatpush1.bf16.msra.mxu0 %v4146_v34  ;;  %2318 = vmatpush1.bf16.msra.mxu1 %v4152_v39  ;;  %v4951_v34 = vld [vmem:[#allocation43_spill] sm:$0xff]  ;;  %v4952_v39 = vld [vmem:[#allocation44_spill] sm:$0xff] }
 0x398   : > { %2276 = vmatprep.subr.bf16.mxu0 %v4155_v40  ;;  %2319 = vmatprep.subr.bf16.mxu1 %v4159_v41  ;;  %v4953_v40 = vld [vmem:[#allocation45_spill] sm:$0xff]  ;;  %v4954_v41 = vld [vmem:[#allocation46_spill] sm:$0xff] }
 0x39b   : > { %2277 = vmatpush1.bf16.msra.mxu0 %v4165_v46  ;;  %2320 = vmatpush1.bf16.msra.mxu1 %v4170_v43  ;;  %v4955_v46 = vld [vmem:[#allocation47_spill] sm:$0xff]  ;;  %v4956_v43 = vld [vmem:[#allocation48_spill] sm:$0xff] }
 0x39c   : > { %2278 = vmatprep.subr.bf16.mxu0 %v4173_v44  ;;  %2321 = vmatprep.subr.bf16.mxu1 %v4177_v45  ;;  %v4957_v44 = vld [vmem:[#allocation49_spill] sm:$0xff]  ;;  %v4958_v45 = vld [vmem:[#allocation50_spill] sm:$0xff] }
 0x39f   : > { %2279 = vmatpush1.bf16.msra.mxu0 %v4181_v47  ;;  %2322 = vmatpush1.bf16.msra.mxu1 %v4186_v48  ;;  %v4959_v47 = vld [vmem:[#allocation51_spill] sm:$0xff]  ;;  %v4960_v48 = vld [vmem:[#allocation52_spill] sm:$0xff] }
 0x3a0   : > { %2280 = vmatprep.subr.bf16.mxu0 %v4189_v49  ;;  %2323 = vmatprep.subr.bf16.mxu1 %v4193_v50  ;;  %v4961_v49 = vld [vmem:[#allocation53_spill] sm:$0xff] }
 0x3a3   : > { %2281 = vmatpush1.bf16.msra.mxu0 %v4197_v51  ;;  %2324 = vmatpush1.bf16.msra.mxu1 %v4202_v52  ;;  %v4962_v52 = vld [vmem:[#allocation58_spill] sm:$0xff] }
 0x3a4   : > { %2282 = vmatprep.subr.bf16.mxu0 %v4205_v53  ;;  %2325 = vmatprep.subr.bf16.mxu1 %v4209_v54  ;;  %v4963_v54 = vld [vmem:[#allocation60_spill] sm:$0xff] }
 0x3a7   : > { %2283 = vmatpush1.bf16.msra.mxu0 %v4213_v55  ;;  %2326 = vmatpush1.bf16.msra.mxu1 %v4218_v56 }
 0x3a8   : > { %2284 = vmatprep.subr.bf16.mxu0 %v4221_v57  ;;  %2327 = vmatprep.subr.bf16.mxu1 %v4897_v1 }
 0x3ab   : > { %2285 = vmatpush1.bf16.msra.mxu0 %v4898_v4  ;;  %2328 = vmatpush1.bf16.msra.mxu1 %v4899_v9  ;;  %v4965_v4 = vld [vmem:[#allocation62_spill] sm:$0xff] }
 0x3ac   : > { %2286 = vmatprep.subr.bf16.mxu0 %v4900_v18  ;;  %2329 = vmatprep.subr.bf16.mxu1 %v4901_v61 }
 0x3af   : > { %2287 = vmatpush1.bf16.msra.mxu0 %v4902_v59  ;;  %2330 = vmatpush1.bf16.msra.mxu1 %v4903_v60  ;;  %v4966_v60 = vld [vmem:[#allocation69_spill] sm:$0xff] }
 0x3b0   : > { %2288 = vmatprep.subr.bf16.mxu0 %v4904_v8  ;;  %2331 = vmatprep.subr.bf16.mxu1 %v4939_v27 }
 0x3b3   : > { %2289 = vmatpush1.bf16.msra.mxu0 %v4940_v28  ;;  %2332 = vmatpush1.bf16.msra.mxu1 %v4941_v29 }
 0x3b4   : > { %2290 = vmatprep.subr.bf16.mxu0 %v4942_v30  ;;  %2333 = vmatprep.subr.bf16.mxu1 %v4943_v31 }
 0x3b7   : > { %2291 = vmatpush1.bf16.msra.mxu0 %v4944_v32  ;;  %2334 = vmatpush1.bf16.msra.mxu1 %v4945_v33 }
 0x3b8   : > { %2292 = vmatprep.subr.bf16.mxu0 %v4946_v35  ;;  %2335 = vmatprep.subr.bf16.mxu1 %v4947_v23 }
 0x3bb   : > { %2293 = vmatpush1.bf16.msra.mxu0 %v4948_v36  ;;  %2336 = vmatpush1.bf16.msra.mxu1 %v4949_v37 }
 0x3bc   : > { %2294 = vmatprep.subr.bf16.mxu0 %v4950_v38  ;;  %2337 = vmatprep.subr.bf16.mxu1 %v4951_v34 }
 0x3bf   : > { %2295 = vmatpush1.bf16.msra.mxu0 %v4952_v39  ;;  %2338 = vmatpush1.bf16.msra.mxu1 %v4953_v40 }
 0x3c0   : > { %2296 = vmatprep.subr.bf16.mxu0 %v4954_v41  ;;  %2339 = vmatprep.subr.bf16.mxu1 %v4955_v46 }
 0x3c3   : > { %2297 = vmatpush1.bf16.msra.mxu0 %v4956_v43  ;;  %2340 = vmatpush1.bf16.msra.mxu1 %v4957_v44 }
 0x3c4   : > { %2298 = vmatprep.subr.bf16.mxu0 %v4958_v45  ;;  %2341 = vmatprep.subr.bf16.mxu1 %v4959_v47 }
 0x3c7   : > { %2299 = vmatpush1.bf16.msra.mxu0 %v4960_v48  ;;  %2342 = vmatpush1.bf16.msra.mxu1 %v4961_v49 }
 0x45d   : > { %v2150_v50 = vpop.f32.mrb[24].mxu0  ;;  %v2193_v51 = vpop.f32.mrb[24].mxu1 }
 0x45e   : > { %v2202_v53 = vadd.f32 %v2150_v50, %v4962_v52  ;;  %v2204_v55 = vadd.f32 %v2193_v51, %v4963_v54  ;;  %v2152_v56 = vpop.f32.mrb[25].mxu0  ;;  %v2195_v57 = vpop.f32.mrb[25].mxu1  ;;  %v4970_v51 = vld [vmem:[#allocation61_spill] sm:$0xff] }
 0x45f   : > { %v2203_v1 = vadd.f32 %v2152_v56, %v4964_v24  ;;  %v2205_v9 = vadd.f32 %v2195_v57, %v4965_v4  ;;  %v2154_v18 = vpop.f32.mrb[26].mxu0  ;;  %v2197_v61 = vpop.f32.mrb[26].mxu1  ;;  %v4972_v57 = vld [vmem:[#allocation63_spill] sm:$0xff] }
 0x460   : > { %v3026_v59 = vmul.f32 -1.442695, %v2202_v53  ;;  %v2206_v8 = vadd.f32 %v2154_v18, %v4966_v60  ;;  %v2208_v62 = vadd.f32 %v2197_v61, %v4967_v11  ;;  %v2156_v0 = vpop.f32.mrb[27].mxu0  ;;  %v2199_v63 = vpop.f32.mrb[27].mxu1  ;;  %v4971_v53 = vld [vmem:[#allocation64_spill] sm:$0xff] }
 0x461   : > { %v3027_v21 = vmul.f32 -1.442695, %v2203_v1  ;;  %v2207_v13 = vadd.f32 %v2156_v0, %v4968_v26  ;;  %v2209_v2 = vadd.f32 %v2199_v63, %v4969_v42  ;;  %v3028_v15 = vmul.f32 -1.442695, %v2205_v9  ;;  %v4973_v1 = vld [vmem:[#allocation65_spill] sm:$0xff]  ;;  %v4975_v60 = vld [vmem:[#allocation68_spill] sm:$0xff] }
 0x462   : > { %3330 = vpow2.f32 %v3026_v59  ;;  %v3029_v3 = vmul.f32 -1.442695, %v2206_v8  ;;  %v4976_v63 = vld [vmem:[#allocation67_spill] sm:$0xff]  ;;  %v4977_v26 = vld [vmem:[#allocation70_spill] sm:$0xff] }
 0x463   : > { %3332 = vpow2.f32 %v3027_v21  ;;  %v3030_v6 = vmul.f32 -1.442695, %v2207_v13  ;;  %v3031_v25 = vmul.f32 -1.442695, %v2209_v2 }
 0x464   : > { %3334 = vpow2.f32 %v3029_v3 }
 0x465   : > { %3336 = vpow2.f32 %v3030_v6 }
 0x466   : > { %3338 = vtanh.f32 %v2204_v55 }
 0x467   : > { %3340 = vpow2.f32 %v3028_v15 }
 0x468   : > { %3342 = vtanh.f32 %v2208_v62 }
 0x46c   : > { %v3331_v19 = vpop.eup %3330 }
 0x46d   : > { %v3333_v10 = vpop.eup %3332  ;;  %v2213_v17 = vadd.f32 1.0, %v3331_v19 }
 0x46e   : > { %v2219_v7 = vadd.f32 1.0, %v3333_v10  ;;  %v3335_v12 = vpop.eup %3334 }
 0x46f   : > { %3344 = vrcp.f32 %v2213_v17  ;;  %v2237_v58 = vadd.f32 1.0, %v3335_v12  ;;  %v3337_v16 = vpop.eup %3336 }
 0x470   : > { %3346 = vrcp.f32 %v2219_v7  ;;  %v2243_v14 = vadd.f32 1.0, %v3337_v16  ;;  %v3339_v27 = vpop.eup %3338 }
 0x471   : > { %3348 = vpow2.f32 %v3031_v25  ;;  %v3341_v28 = vpop.eup %3340 }
 0x472   : > { %3350 = vrcp.f32 %v2237_v58  ;;  %v3343_v29 = vpop.eup %3342  ;;  %v2226_v33 = vadd.f32 1.0, %v3341_v28 }
 0x473   : > { %3352 = vrcp.f32 %v2243_v14 }
 0x474   : > { %3354 = vrcp.f32 %v2226_v33 }
 0x479   : > { %v3345_v30 = vpop.eup %3344 }
 0x47a   : > { %v3347_v31 = vpop.eup %3346  ;;  %v2230_v32 = vmul.f32 %v3345_v30, %v3339_v27 }
 0x47b   : > { %v3349_v35 = vpop.eup %3348  ;;  %v2229_v23 = vmul.f32 %v3347_v31, %v4586_v20 }
 0x47c   : > { %v3351_v36 = vpop.eup %3350  ;;  %v2250_v39 = vadd.f32 1.0, %v3349_v35 }
 0x47d   : > { %v4666_v37 = vadd.f32 %v2230_v32, %v2229_v23  ;;  %v2254_v38 = vmul.f32 %v3351_v36, %v3343_v29  ;;  %v3353_v34 = vpop.eup %3352 }
 0x47e   : > { %v2253_v40 = vmul.f32 %v3353_v34, %v4590_v22  ;;  %v3355_v46 = vpop.eup %3354 }
 0x47f   : > { %3356 = vtanh.f32 %v4666_v37 }
 0x480   : > { %v4670_v41 = vadd.f32 %v2254_v38, %v2253_v40  ;;  %3358 = vrcp.f32 %v2250_v39 }
 0x482   : > { %3360 = vtanh.f32 %v4670_v41 }
 0x489   : > { %v3357_v43 = vpop.eup %3356 }
 0x48a   : > { %v2233_v44 = vmul.f32 %v3357_v43, %v3355_v46  ;;  %v3359_v20 = vpop.eup %3358 }
 0x48c   : > { %2260 = vst [vmem:[#allocation3 + $0x20] sm:$0xff] %v2233_v44  ;;  %2426 = vst [vmem:[#allocation2 + $0x20] sm:$0xff] %v2233_v44  ;;  %v3361_v45 = vpop.eup %3360  ;;  %v2266_v49 = vpack.c.bf16 %v4938_v5, %v2233_v44 }
 0x48d   : > { %v2257_v47 = vmul.f32 %v3361_v45, %v3359_v20 }
 0x48f   : > { %2261 = vst [vmem:[#allocation3 + $0x18] sm:$0xff] %v2257_v47  ;;  %v2267_v48 = vpack.c.bf16 %v2257_v47, %v4938_v5  ;;  %2425 = vst [vmem:[#allocation2 + $0x18] sm:$0xff] %v2257_v47  ;;  %v4974_v5 = vld [vmem:[#allocation66_spill] sm:$0xff]  ;;  %v3394_v47 = vld [vmem:[#allocation11 + $0x40] sm:$0xff] (!%p3038_p3)  }
 0x490   : > { %3063 = vmatprep.subr.bf16.mxu0 (!%p3038_p3), %v3394_v47 }
 0x491   : > { %2300 = vmatprep.mubr.bf16.mxu0 %v2267_v48  ;;  %2343 = vmatprep.mubr.bf16.mxu1 %v2267_v48  ;;  %v3395_v48 = vld [vmem:[#allocation11] sm:$0xff] (!%p3038_p3)  }
 0x492   : > { %2301 = vmatmul.mubr.bf16.vlgmr.msra.gmra.mrb[28].mxu0 %v2266_v49  ;;  %2344 = vmatmul.mubr.bf16.vlgmr.msra.gmra.mrb[28].mxu1 %v2266_v49  ;;  %v3397_v49 = vld [vmem:[#allocation11 + $0x8] sm:$0xff] (!%p3038_p3)  }
 0x493   : > { %3064 = vmatpush3.bf16.msra.mxu0 (!%p3038_p3), %v3395_v48 }
 0x565   : > { %v2302_v22 = vpop.f32.mrb[28].mxu0  ;;  %v2345_v50 = vpop.f32.mrb[28].mxu1 }
 0x566   : > { %v2354_v52 = vadd.f32 %v2302_v22, %v4970_v51  ;;  %v2356_v54 = vadd.f32 %v2345_v50, %v4971_v53  ;;  %v2304_v55 = vpop.f32.mrb[29].mxu0  ;;  %v2347_v56 = vpop.f32.mrb[29].mxu1  ;;  %v3398_v22 = vld [vmem:[#allocation11 + $0x50] sm:$0xff] (!%p3038_p3)   ;;  %v3400_v51 = vld [vmem:[#allocation11 + $0x58] sm:$0xff] (!%p3038_p3)   ;;  %v3402_v53 = vld [vmem:[#allocation11 + $0x60] sm:$0xff] (!%p3038_p3)  }
 0x567   : > { %v2355_v24 = vadd.f32 %v2304_v55, %v4972_v57  ;;  %v2357_v4 = vadd.f32 %v2347_v56, %v4973_v1  ;;  %v2306_v9 = vpop.f32.mrb[30].mxu0  ;;  %v2349_v18 = vpop.f32.mrb[30].mxu1  ;;  %v3399_v50 = vld [vmem:[#allocation11 + $0x10] sm:$0xff] (!%p3038_p3)   ;;  %v3404_v55 = vld [vmem:[#allocation11 + $0x68] sm:$0xff] (!%p3038_p3)  }
 0x568   : > { %v3032_v61 = vmul.f32 -1.442695, %v2354_v52  ;;  %v2358_v59 = vadd.f32 %v2306_v9, %v4974_v5  ;;  %v2360_v8 = vadd.f32 %v2349_v18, %v4975_v60  ;;  %v2308_v11 = vpop.f32.mrb[31].mxu0  ;;  %v2351_v62 = vpop.f32.mrb[31].mxu1  ;;  %v3401_v52 = vld [vmem:[#allocation11 + $0x18] sm:$0xff] (!%p3038_p3)   ;;  %v2437_v57 = vld [vmem:[#allocation3 + $0x18] sm:$0xff] (!%p3038_p3) }
 0x569   : > { %v3033_v0 = vmul.f32 -1.442695, %v2355_v24  ;;  %v2359_v21 = vadd.f32 %v2308_v11, %v4976_v63  ;;  %v2361_v13 = vadd.f32 %v2351_v62, %v4977_v26  ;;  %v3034_v3 = vmul.f32 -1.442695, %v2357_v4  ;;  %v2439_v24 = vld [vmem:[#allocation3 + $0x28] sm:$0xff] (!%p3038_p3)  ;;  %v2441_v1 = vld [vmem:[#allocation3 + $0x38] sm:$0xff] (!%p3038_p3) }
 0x56a   : > { %3362 = vpow2.f32 %v3032_v61  ;;  %v3035_v42 = vmul.f32 -1.442695, %v2358_v59  ;;  %v2445_v9 = vpack.c.bf16 (!%p3038_p3), %v2437_v57, %v2437_v57  ;;  %v2447_v18 = vpack.c.bf16 (!%p3038_p3), %v2439_v24, %v2439_v24  ;;  %v2434_v61 = vld [vmem:[#allocation3] sm:$0xff] (!%p3038_p3)  ;;  %v2436_v5 = vld [vmem:[#allocation3 + $0x10] sm:$0xff] (!%p3038_p3) }
 0x56b   : > { %3364 = vpow2.f32 %v3033_v0  ;;  %v3036_v2 = vmul.f32 -1.442695, %v2359_v21  ;;  %v3037_v10 = vmul.f32 -1.442695, %v2361_v13  ;;  %v2449_v59 = vpack.c.bf16 (!%p3038_p3), %v2441_v1, %v2441_v1  ;;  %v2438_v60 = vld [vmem:[#allocation3 + $0x20] sm:$0xff] (!%p3038_p3)  ;;  %v3405_v0 = vld [vmem:[#allocation11 + $0x28] sm:$0xff] (!%p3038_p3)  }
 0x56c   : > { %3366 = vpow2.f32 %v3035_v42  ;;  %v2442_v11 = vpack.c.bf16 (!%p3038_p3), %v2434_v61, %v2434_v61  ;;  %v2444_v62 = vpack.c.bf16 (!%p3038_p3), %v2436_v5, %v2436_v5  ;;  %v2500_v21 = vunpack.c.l.b16 (!%p3038_p3), %v2445_v9  ;;  %v3406_v42 = vld [vmem:[#allocation11 + $0x70] sm:$0xff] (!%p3038_p3)  }
 0x56d   : > { %3368 = vpow2.f32 %v3036_v2  ;;  %v2502_v26 = vunpack.c.l.b16 (!%p3038_p3), %v2447_v18  ;;  %v2446_v13 = vpack.c.bf16 (!%p3038_p3), %v2438_v60, %v2438_v60  ;;  %v2504_v2 = vunpack.c.l.b16 (!%p3038_p3), %v2449_v59 }
 0x56e   : > { %3370 = vtanh.f32 %v2356_v54  ;;  %v3403_v54 = vld [vmem:[#allocation11 + $0x20] sm:$0xff] (!%p3038_p3)  }
 0x56f   : > { %3372 = vpow2.f32 %v3034_v3 }
 0x570   : > { %3374 = vtanh.f32 %v2360_v8 }
 0x574   : > { %v3363_v6 = vpop.eup %3362 }
 0x575   : > { %v3365_v15 = vpop.eup %3364  ;;  %v2365_v19 = vadd.f32 1.0, %v3363_v6  ;;  %v2497_v6 = vunpack.c.l.b16 (!%p3038_p3), %v2442_v11 }
 0x576   : > { %v2371_v17 = vadd.f32 1.0, %v3365_v15  ;;  %v3367_v25 = vpop.eup %3366  ;;  %v2499_v15 = vunpack.c.l.b16 (!%p3038_p3), %v2444_v62 }
 0x577   : > { %3376 = vrcp.f32 %v2365_v19  ;;  %v2389_v7 = vadd.f32 1.0, %v3367_v25  ;;  %v3369_v12 = vpop.eup %3368  ;;  %v2501_v25 = vunpack.c.l.b16 (!%p3038_p3), %v2446_v13 }
 0x578   : > { %3378 = vrcp.f32 %v2371_v17  ;;  %v2395_v58 = vadd.f32 1.0, %v3369_v12  ;;  %v3371_v16 = vpop.eup %3370  ;;  %v2518_v17 = vrot.slane (!%p3038_p3), %v2502_v26, 5 }
 0x579   : > { %3380 = vpow2.f32 %v3037_v10  ;;  %v3373_v14 = vpop.eup %3372  ;;  %v2516_v10 = vrot.slane (!%p3038_p3), %v2500_v21, 6 }
 0x57a   : > { %3382 = vrcp.f32 %v2389_v7  ;;  %v3375_v27 = vpop.eup %3374  ;;  %v2378_v31 = vadd.f32 1.0, %v3373_v14  ;;  %v2520_v7 = vrot.slane (!%p3038_p3), %v2504_v2, 4  ;;  %v3407_v14 = vld [vmem:[#allocation11 + $0x30] sm:$0xff] (!%p3038_p3)  }
 0x57b   : > { %3384 = vrcp.f32 %v2395_v58  ;;  %v2505_v58 = vrot.slane (!%p3038_p3), %v2497_v6, 7 }
 0x57c   : > { %3386 = vrcp.f32 %v2378_v31 }
 0x581   : > { %v3377_v28 = vpop.eup %3376 }
 0x582   : > { %v3379_v29 = vpop.eup %3378  ;;  %v2382_v30 = vmul.f32 %v3377_v28, %v3371_v16  ;;  %v2506_v16 = vrot.slane (!%p3038_p3), %v2499_v15, 6  ;;  %v2509_v28 = vrot.slane (!%p3038_p3), %v2501_v25, 5 }
 0x583   : > { %v3381_v32 = vpop.eup %3380  ;;  %v2381_v33 = vmul.f32 %v3379_v29, %v4666_v37  ;;  %v3408_v29 = vld [vmem:[#allocation11 + $0x78] sm:$0xff] (!%p3038_p3)  }
 0x584   : > { %v3383_v35 = vpop.eup %3382  ;;  %v2402_v34 = vadd.f32 1.0, %v3381_v32  ;;  %v2508_v31 = vsel (!%p3038_p3), %vm2507_vm0, %v2506_v16, %v2505_v58 }
 0x585   : > { %v2383_v23 = vadd.f32 %v2382_v30, %v2381_v33  ;;  %v2406_v36 = vmul.f32 %v3383_v35, %v3375_v27  ;;  %v3385_v38 = vpop.eup %3384  ;;  %v2511_v35 = vsel (!%p3038_p3), %vm2510_vm1, %v2509_v28, %v2508_v31 }
 0x586   : > { %v2405_v39 = vmul.f32 %v3385_v38, %v4670_v41  ;;  %v3387_v46 = vpop.eup %3386  ;;  %v3396_v41 = vld [vmem:[#allocation11 + $0x48] sm:$0xff] (!%p3038_p3)  }
 0x587   : > { %3388 = vtanh.f32 %v2383_v23  ;;  %3065 = vmatprep.subr.bf16.mxu0 (!%p3038_p3), %v3396_v41 }
 0x588   : > { %v2407_v40 = vadd.f32 %v2406_v36, %v2405_v39  ;;  %3390 = vrcp.f32 %v2402_v34  ;;  %3066 = vmatpush3.bf16.msra.mxu0 (!%p3038_p3), %v3397_v49  ;;  %v3409_v36 = vld [vmem:[#allocation11 + $0x38] sm:$0xff] (!%p3038_p3)   ;;  %v4978_v49 = vlaneseq (!%p3038_p3) }
 0x589   : > { %3067 = vmatprep.subr.bf16.mxu0 (!%p3038_p3), %v3398_v22 }
 0x58a   : > { %3392 = vtanh.f32 %v2407_v40  ;;  %v2670_v22 = vand.u32 (!%p3038_p3), 127, %v4978_v49 }
 0x58c   : > { %3068 = vmatpush3.bf16.msra.mxu0 (!%p3038_p3), %v3399_v50  ;;  %vm2671_vm4 = vcmp.lt.s32.totalorder (!%p3038_p3), %v2670_v22, 6 }
 0x58d   : > { %3069 = vmatprep.subr.bf16.mxu0 (!%p3038_p3), %v3400_v51 }
 0x590   : > { %3070 = vmatpush3.bf16.msra.mxu0 (!%p3038_p3), %v3401_v52 }
 0x591   : > { %v3389_v43 = vpop.eup %3388  ;;  %2433 = sbr.rel (%p3038_p3) target bundleno = 1990 (0x7c6), region = 72  ;;  %3071 = vmatprep.subr.bf16.mxu0 (!%p3038_p3), %v3402_v53 }
 0x592   : > { %v2385_v44 = vmul.f32 %v3389_v43, %v3387_v46  ;;  %v3391_v20 = vpop.eup %3390  ;;  %v3039_v46 = vld [vmem:[#allocation13] ss:$0 sm:$0xff] (!%p3038_p3) }
 0x594   : > { %2412 = vst [vmem:[#allocation3 + $0x30] sm:$0xff] %v2385_v44  ;;  %2428 = vst [vmem:[#allocation2 + $0x30] sm:$0xff] %v2385_v44  ;;  %v3393_v45 = vpop.eup %3392  ;;  %3072 = vmatpush3.bf16.msra.mxu0 (!%p3038_p3), %v3403_v54 }
 0x595   : > { %v2409_v37 = vmul.f32 %v3393_v45, %v3391_v20  ;;  %3073 = vmatprep.subr.bf16.mxu0 (!%p3038_p3), %v3404_v55 }
 0x597   : > { %2413 = vst [vmem:[#allocation3 + $0x8] sm:$0xff] %v2409_v37  ;;  %2423 = vst [vmem:[#allocation2 + $0x8] sm:$0xff] %v2409_v37 }
 0x598   : > { %3074 = vmatpush3.bf16.msra.mxu0 %v3405_v0 }
 0x599   : > { %3075 = vmatprep.subr.bf16.mxu0 %v3406_v42 }
 0x59b   : > { %v2440_v8 = vld [vmem:[#allocation3 + $0x30] sm:$0xff] }
 0x59c   : > { %v2448_v3 = vpack.c.bf16 %v2440_v8, %v2440_v8  ;;  %3076 = vmatpush3.bf16.msra.mxu0 %v3407_v14 }
 0x59d   : > { %3077 = vmatprep.subr.bf16.mxu0 %v3408_v29 }
 0x59e   : > { %v2435_v56 = vld [vmem:[#allocation3 + $0x8] sm:$0xff]  ;;  %v2503_v12 = vunpack.c.l.b16 %v2448_v3 }
 0x59f   : > { %v2443_v4 = vpack.c.bf16 %v2435_v56, %v2435_v56 }
 0x5a0   : > { %v2512_v32 = vrot.slane %v2503_v12, 4  ;;  %3078 = vmatpush3.bf16.msra.mxu0 %v3409_v36 }
 0x5a1   : > { %v2498_v63 = vunpack.c.l.b16 %v2443_v4 }
 0x5a2   : > { %v2514_v38 = vsel %vm2513_vm2, %v2512_v32, %v2511_v35 }
 0x5a3   : > { %v2515_v19 = vrot.slane %v2498_v63, 7  ;;  %v2522_v34 = vpack.c.b16 %v2514_v38, %v2514_v38 }
 0x5a5   : > { %v2517_v27 = vsel %vm2507_vm0, %v2516_v10, %v2515_v19 }
 0x5a6   : > { %v2519_v30 = vsel %vm2510_vm1, %v2518_v17, %v2517_v27 }
 0x5a7   : > { %v2521_v33 = vsel %vm2513_vm2, %v2520_v7, %v2519_v30 }
 0x5a8   : > { %v2523_v23 = vpack.c.b16 %v2521_v33, %v2521_v33 }
 0x5aa   : > { %2654 = vmatprep.mubr.bf16.mxu0 %v2523_v23 }
 0x5ab   : > { %2655 = vmatmul.mubr.bf16.vlgmr.msra.gmra.mrb[0].mxu0 %v2522_v34 }
 0x67e   : > { %v3079_v39 = vpop.f32.mrb[0].mxu0 }
 0x67f   : > { %v3080_v40 = vpop.f32.mrb[1].mxu0 }
 0x680   : > { %v3081_v43 = vadd.f32 %v3080_v40, %v3079_v39  ;;  %v3082_v44 = vpop.f32.mrb[2].mxu0 }
 0x681   : > { %v3083_v20 = vpop.f32.mrb[3].mxu0 }
 0x682   : > { %v2657_v45 = vadd.f32 %v3081_v43, %v3039_v46 }
 0x684   : > { %v2663_v37 = vsel %vm2662_vm3, %v2657_v45, -inf }
 0x685   : > { %2664 = vmax.xlane.f32.xlu0 %v2663_v37 }
 0x712   : > { %v2665_v47 = vpop.xlane.xlu0 %2664 }
 0x713   : > { %v2666_v48 = vsub.f32 %v2657_v45, %v2665_v47 }
 0x715   : > { %v2667_v41 = vmul.f32 1.442695, %v2666_v48 }
 0x717   : > { %3410 = vpow2.f32 %v2667_v41 }
 0x721   : > { %v3411_v50 = vpop.eup %3410 }
 0x722   : > { %v2672_v51 = vsel %vm2671_vm4, %v3411_v50, 0.0 }
 0x723   : > { %v2673_v52 = vsel %vm2662_vm3, %v2672_v51, 0.0 }
 0x724   : > { %2674 = vadd.xlane.f32.xlu0 %v2673_v52 }
 0x7b1   : > { %v2675_v53 = vpop.xlane.xlu0 %2674 }
 0x7b2   : > { %3412 = vrcp.f32 %v2675_v53 }
 0x7bc   : > { %v3413_v54 = vpop.eup %3412 }
 0x7bd   : > { %v2677_v55 = vmul.f32 %v3413_v54, %v2675_v53 }
 0x7bf   : > { %v2678_v56 = vsub.f32 2.0, %v2677_v55 }
 0x7c1   : > { %v2679_v57 = vmul.f32 %v3413_v54, %v2678_v56 }
 0x7c3   : > { %v2680_v24 = vmul.f32 %v2679_v57, %v2672_v51 }
 0x7c5   : > { %2681 = vst [vmem:[#allocation14] sm:$0xf] %v2680_v24 }
 0x7c6 PF: > { %p3125_p0 = scmp.eq.s32.totalorder %s3702_s25, 7  ;;  %s3647_s9 = smov [#allocation14]  }
 0x7c7   : > { %s2689_s19 = sshll.u32 %s3647_s9, 4  ;;  %s2690_s19 = int_to_ptr.vmem [resolvable:$true] %s2689_s19 }
 0x7c8   : > { %s3560_s29 = scalar_lea.vmem %s2690_s19, 64  ;;  %p3567_p4 = scmp.lt.s32.totalorder %s2690_s19, %s2690_s19 }
 0x7c9   : > { %p3561_p8 = scmp.ne.s32.totalorder %s2690_s19, %s3560_s29  ;;  %p3568_p7 = scmp.lt.s32.totalorder %s3560_s29, %s3560_s29 }
 0x7cb   : > { %p3562_p12 = pnand %p3561_p8, %p3125_p0  ;;  %p3569_p5 = por %p3568_p7, %p3567_p4 }
 0x7cd   : > { %p3563_p6 = pneg %p3562_p12 }
 0x7cf   : > { %p3570_p13 = pnand %p3569_p5, %p3563_p6 }
 0x7d1   : > { %3573 = shalt.err (!%p3570_p13)
}
 0x7d2   : > { %s3574_s27 = scalar_lea.hbm %s4735_s6, 64 }
 0x7d3   : > { %p3575_p11 = scmp.ne.s32.totalorder %s4735_s6, %s3574_s27  ;;  %p3580_p10 = scmp.lt.u32.totalorder %s3574_s27, %s4735_s6 }
 0x7d5   : > { %p3576_p9 = pnand %p3575_p11, %p3125_p0 }
 0x7d7   : > { %p3577_p2 = pneg %p3576_p9 }
 0x7d9   : > { %p3582_p1 = pnand %p3580_p10, %p3577_p2 }
 0x7db   : > { %3585 = shalt.err (!%p3582_p1)
}
 0x7dc   : > { %3100 = dma.vmem_to_hbm [thread:$0]  (%p3125_p0), %s2690_s19, 64, %s4735_s6, [#allocation7]  }
 0x7dd   : > { %3615 = dma.done.wait (%p3125_p0), [#allocation7], 64  }
 0x7de   : > { %3617 = vsyncadd (%p3125_p0), [#allocation7], 4294967232 }
 0x7df PF: > { %s4979_s17 = sld [smem:[#allocation19_spill]]  ;;  %s4980_s23 = sld [smem:[#allocation20_spill]] }
 0x7e0   : > { %p21_p3 = scmp.ge.s32.totalorder %s3705_s26, 10   ;;  %s4981_s21 = smov %s3624_s22 }
 0x7e1   : > { %s4983_s24 = smov %s3705_s26 }
 0x7e2   :  { %23 = sbr.rel (!%p21_p3) target bundleno = 9 (0x9), region = 124 }
 0x7e5   : > { %s4982_s22 = smov %s4979_s17 }
 0x7e9   :  { %2702 = vsyncpa [#allocation6], 1 }
 0x7ea   :  { %2704 = vsyncpa [#allocation6 + $0x1], 1 }
 0x7eb   :  { %2705 = vsyncpa [#allocation9], 1 }
 0x7ec   :  { %2707 = vsyncpa [#allocation9 + $0x1], 1 }
 0x7ed   :  { %2708 = vsyncpa [#allocation12], 1 }
 0x7ee   :  { %2709 = vsyncpa [#allocation7], 1 }
 0x7ef   :  { %2711 = vsyncpa [#allocation7 + $0x1], 1 }

</bundles_post_ra>
